<compile_context>
chip_gen: v5e
topology: v5e:2x2
jax: 0.10.0
libtpu: 0.0.40
codegen_flags: <defaults>
</compile_context>

<pallas_src>
import functools

import jax
import jax.numpy as jnp
from jax import lax
from jax.experimental import pallas as pl
from jax.experimental.pallas import tpu as pltpu

PAD = 0
BOS = 1
LN_EPS = 1e-12

VMEM_LIMIT = 48 * 1024 * 1024  # safe on v5e/v6e (128 MiB) and v7x (64 MiB)

# tile targets (collapse to full extents for the small demo shapes)
TM, TN, TK = 256, 512, 512


def _pick_tile(dim, target, align):
    """Largest tile <= target that divides `dim` and is a multiple of `align`,
    else the full dim (full-extent blocks are always layout-legal)."""
    if dim <= target:
        return dim
    t = (target // align) * align
    while t >= align:
        if dim % t == 0:
            return t
        t -= align
    return dim


# ----------------------------------------------------------------------------
# In-kernel helpers
# ----------------------------------------------------------------------------
def _gelu_exact(x):
    # Exact (erf-based) GELU, matching HF Bert hidden_act="gelu".
    # erf via Abramowitz & Stegun 7.1.26 (|error| < 1.5e-7), using only ops
    # with guaranteed Mosaic lowerings (exp, mul, add, div, select).
    z = x * 0.7071067811865476  # x / sqrt(2)
    a = jnp.abs(z)
    t = 1.0 / (1.0 + 0.3275911 * a)
    poly = t * (0.254829592 + t * (-0.284496736 + t * (1.421413741
               + t * (-1.453152027 + t * 1.061405429))))
    erf_abs = 1.0 - poly * jnp.exp(-a * a)
    erf = jnp.where(z >= 0.0, erf_abs, -erf_abs)
    return 0.5 * x * (1.0 + erf)


def _layernorm(y, gamma, beta, eps):
    mu = jnp.mean(y, axis=-1, keepdims=True)
    var = jnp.mean(jnp.square(y - mu), axis=-1, keepdims=True)
    return (y - mu) * lax.rsqrt(var + eps) * gamma + beta


# ----------------------------------------------------------------------------
# Kernel A: tiled linear (+ optional fused GELU epilogue)
# ----------------------------------------------------------------------------
def _linear_kernel(activation, x_ref, w_ref, b_ref, o_ref, acc_ref):
    k = pl.program_id(2)

    @pl.when(k == 0)
    def _():
        acc_ref[...] = jnp.zeros_like(acc_ref)

    acc_ref[...] += jnp.dot(x_ref[...], w_ref[...],
                            preferred_element_type=jnp.float32)

    @pl.when(k == pl.num_programs(2) - 1)
    def _():
        y = acc_ref[...] + b_ref[...]
        if activation == "gelu":
            y = _gelu_exact(y)
        o_ref[...] = y.astype(o_ref.dtype)


def linear(x, w, b, activation=None):
    """y = act(x @ w + b).  x: [M, K], w: [K, N], b: [N] -> [M, N]."""
    M, K = x.shape
    N = w.shape[1]
    tm = _pick_tile(M, TM, 8)
    tn = _pick_tile(N, TN, 128)
    tk = _pick_tile(K, TK, 128)
    grid = (M // tm, N // tn, K // tk)
    cost = pl.CostEstimate(
        flops=2 * M * N * K,
        transcendentals=(M * N if activation == "gelu" else 0),
        bytes_accessed=4 * (M * K + K * N + M * N))
    return pl.pallas_call(
        functools.partial(_linear_kernel, activation),
        out_shape=jax.ShapeDtypeStruct((M, N), jnp.float32),
        grid=grid,
        in_specs=[
            pl.BlockSpec((tm, tk), lambda i, j, k: (i, k)),
            pl.BlockSpec((tk, tn), lambda i, j, k: (k, j)),
            pl.BlockSpec((1, tn), lambda i, j, k: (0, j)),
        ],
        out_specs=pl.BlockSpec((tm, tn), lambda i, j, k: (i, j)),
        scratch_shapes=[pltpu.VMEM((tm, tn), jnp.float32)],
        compiler_params=pltpu.CompilerParams(
            dimension_semantics=("parallel", "parallel", "arbitrary"),
            vmem_limit_bytes=VMEM_LIMIT),
        cost_estimate=cost,
    )(x, w, b.reshape(1, N))


# ----------------------------------------------------------------------------
# Kernel B: tiled linear + (optional GELU) + (optional residual) + LayerNorm
#           (full N per block so the LN reduction stays inside one tile)
# ----------------------------------------------------------------------------
def _linear_ln_kernel(activation, has_residual, eps, *refs):
    if has_residual:
        x_ref, w_ref, b_ref, r_ref, g_ref, bt_ref, o_ref, acc_ref = refs
    else:
        x_ref, w_ref, b_ref, g_ref, bt_ref, o_ref, acc_ref = refs
        r_ref = None
    k = pl.program_id(1)

    @pl.when(k == 0)
    def _():
        acc_ref[...] = jnp.zeros_like(acc_ref)

    acc_ref[...] += jnp.dot(x_ref[...], w_ref[...],
                            preferred_element_type=jnp.float32)

    @pl.when(k == pl.num_programs(1) - 1)
    def _():
        y = acc_ref[...] + b_ref[...]
        if activation == "gelu":
            y = _gelu_exact(y)
        if has_residual:
            y = y + r_ref[...]
        o_ref[...] = _layernorm(y, g_ref[...], bt_ref[...], eps).astype(o_ref.dtype)


def linear_ln(x, w, b, gamma, beta, residual=None, activation=None, eps=LN_EPS):
    """LayerNorm(act(x @ w + b) [+ residual]) * gamma + beta."""
    M, K = x.shape
    N = w.shape[1]
    tm = _pick_tile(M, TM, 8)
    tk = _pick_tile(K, TK, 128)
    grid = (M // tm, K // tk)
    has_residual = residual is not None

    in_specs = [
        pl.BlockSpec((tm, tk), lambda i, k: (i, k)),
        pl.BlockSpec((tk, N), lambda i, k: (k, 0)),
        pl.BlockSpec((1, N), lambda i, k: (0, 0)),
    ]
    args = [x, w, b.reshape(1, N)]
    if has_residual:
        in_specs.append(pl.BlockSpec((tm, N), lambda i, k: (i, 0)))
        args.append(residual)
    in_specs += [pl.BlockSpec((1, N), lambda i, k: (0, 0)),
                 pl.BlockSpec((1, N), lambda i, k: (0, 0))]
    args += [gamma.reshape(1, N), beta.reshape(1, N)]

    cost = pl.CostEstimate(
        flops=2 * M * N * K + 8 * M * N,
        transcendentals=(M * N if activation == "gelu" else 0),
        bytes_accessed=4 * (M * K + K * N + (2 + has_residual) * M * N))
    return pl.pallas_call(
        functools.partial(_linear_ln_kernel, activation, has_residual, eps),
        out_shape=jax.ShapeDtypeStruct((M, N), jnp.float32),
        grid=grid,
        in_specs=in_specs,
        out_specs=pl.BlockSpec((tm, N), lambda i, k: (i, 0)),
        scratch_shapes=[pltpu.VMEM((tm, N), jnp.float32)],
        compiler_params=pltpu.CompilerParams(
            dimension_semantics=("parallel", "arbitrary"),
            vmem_limit_bytes=VMEM_LIMIT),
        cost_estimate=cost,
    )(*args)


# ----------------------------------------------------------------------------
# Kernel C: embeddings sum + LayerNorm (word + position + mode)
# ----------------------------------------------------------------------------
def _embed_ln_kernel(eps, w_ref, p_ref, m_ref, g_ref, b_ref, o_ref):
    y = (w_ref[...][0] + p_ref[...][0] + m_ref[...][0]).astype(jnp.float32)
    y = _layernorm(y, g_ref[...], b_ref[...], eps)
    o_ref[...] = y[None].astype(o_ref.dtype)


def embed_layernorm(word, pos, mode, gamma, beta, eps=LN_EPS):
    """word: [B,S,H], pos: [1,S,H], mode: [B,1,H] -> LN(word+pos+mode)."""
    B, S, H = word.shape
    ts = _pick_tile(S, TM, 8)
    grid = (B, S // ts)
    return pl.pallas_call(
        functools.partial(_embed_ln_kernel, eps),
        out_shape=jax.ShapeDtypeStruct((B, S, H), jnp.float32),
        grid=grid,
        in_specs=[
            pl.BlockSpec((1, ts, H), lambda b, i: (b, i, 0)),
            pl.BlockSpec((1, ts, H), lambda b, i: (0, i, 0)),
            pl.BlockSpec((1, 1, H), lambda b, i: (b, 0, 0)),
            pl.BlockSpec((1, H), lambda b, i: (0, 0)),
            pl.BlockSpec((1, H), lambda b, i: (0, 0)),
        ],
        out_specs=pl.BlockSpec((1, ts, H), lambda b, i: (b, i, 0)),
        compiler_params=pltpu.CompilerParams(
            dimension_semantics=("parallel", "parallel"),
            vmem_limit_bytes=VMEM_LIMIT),
    )(word, pos, mode, gamma.reshape(1, H), beta.reshape(1, H))


# ----------------------------------------------------------------------------
# Kernel D: multi-head attention (causal mask generated in-kernel; no mask DMA)
# ----------------------------------------------------------------------------
def _attention_kernel(scale, causal, q_ref, k_ref, v_ref, o_ref):
    q = q_ref[...][0]            # (NH, Sq, DH)
    k = k_ref[...][0]            # (NH, Sk, DH)
    v = v_ref[...][0]            # (NH, Sk, DH)

    s = jnp.einsum("hqd,hkd->hqk", q, k,
                   preferred_element_type=jnp.float32) * scale
    if causal:
        Sq, Sk = s.shape[1], s.shape[2]
        rows = lax.broadcasted_iota(jnp.int32, (Sq, Sk), 0)
        cols = lax.broadcasted_iota(jnp.int32, (Sq, Sk), 1)
        # matches PyTorch additive mask: (1 - lower_tri) * -10000
        s = jnp.where((cols <= rows)[None, :, :], s, s - 10000.0)
    s = s - jnp.max(s, axis=-1, keepdims=True)
    p = jnp.exp(s)
    p = p * pl.reciprocal(jnp.sum(p, axis=-1, keepdims=True), approx=True)
    out = jnp.einsum("hqk,hkd->hqd", p, v, preferred_element_type=jnp.float32)
    o_ref[...] = out[None].astype(o_ref.dtype)


def attention(q, k, v, causal):
    """q: [B, NH, Sq, DH], k/v: [B, NH, Sk, DH] -> [B, NH, Sq, DH]."""
    B, NH, Sq, DH = q.shape
    Sk = k.shape[2]
    scale = 1.0 / float(DH) ** 0.5
    cost = pl.CostEstimate(
        flops=4 * B * NH * Sq * Sk * DH,
        transcendentals=B * NH * Sq * Sk,
        bytes_accessed=4 * B * NH * (2 * Sq * DH + 2 * Sk * DH))
    # TODO(synk): for long sequences, tile Sk with an online-softmax
    # accumulator and block per head; at these shapes per-batch blocks fit VMEM.
    return pl.pallas_call(
        functools.partial(_attention_kernel, scale, causal),
        out_shape=jax.ShapeDtypeStruct((B, NH, Sq, DH), jnp.float32),
        grid=(B,),
        in_specs=[
            pl.BlockSpec((1, NH, Sq, DH), lambda b: (b, 0, 0, 0)),
            pl.BlockSpec((1, NH, Sk, DH), lambda b: (b, 0, 0, 0)),
            pl.BlockSpec((1, NH, Sk, DH), lambda b: (b, 0, 0, 0)),
        ],
        out_specs=pl.BlockSpec((1, NH, Sq, DH), lambda b: (b, 0, 0, 0)),
        compiler_params=pltpu.CompilerParams(
            dimension_semantics=("parallel",),
            vmem_limit_bytes=VMEM_LIMIT),
        cost_estimate=cost,
    )(q, k, v)


# ----------------------------------------------------------------------------
# Model glue (plain JAX around the Pallas kernels)
# ----------------------------------------------------------------------------
def bert_layer(lp, hidden, img_feat, NH):
    B, S, H = hidden.shape
    DH = H // NH
    Nk = img_feat.shape[1]
    x2 = hidden.reshape(B * S, H)
    img2 = img_feat.reshape(B * Nk, H)

    # --- self attention (causal), fused QKV projection ---
    qkv = linear(x2, lp["qkv_w"], lp["qkv_b"])                       # [B*S, 3H]
    qkv = qkv.reshape(B, S, 3, NH, DH).transpose(2, 0, 3, 1, 4)      # [3,B,NH,S,DH]
    ctx = attention(qkv[0], qkv[1], qkv[2], causal=True)             # [B,NH,S,DH]
    ctx = ctx.transpose(0, 2, 1, 3).reshape(B * S, H)
    h1 = linear_ln(ctx, lp["ao_w"], lp["ao_b"], lp["ln1_g"], lp["ln1_b"],
                   residual=x2)

    # --- cross attention to img_feat (unmasked), fused K/V projection ---
    qc = linear(h1, lp["cq_w"], lp["cq_b"]).reshape(B, S, NH, DH).transpose(0, 2, 1, 3)
    kv = linear(img2, lp["ckv_w"], lp["ckv_b"])                      # [B*Nk, 2H]
    kv = kv.reshape(B, Nk, 2, NH, DH).transpose(2, 0, 3, 1, 4)       # [2,B,NH,Nk,DH]
    ctx_c = attention(qc, kv[0], kv[1], causal=False)
    ctx_c = ctx_c.transpose(0, 2, 1, 3).reshape(B * S, H)
    h2 = linear_ln(ctx_c, lp["co_w"], lp["co_b"], lp["ln2_g"], lp["ln2_b"],
                   residual=h1)

    # --- feed forward (GELU fused into in-proj, residual+LN into out-proj) ---
    inter = linear(h2, lp["ffn_in_w"], lp["ffn_in_b"], activation="gelu")
    h3 = linear_ln(inter, lp["ffn_out_w"], lp["ffn_out_b"],
                   lp["ln3_g"], lp["ln3_b"], residual=h2)
    return h3.reshape(B, S, H)


def decoder_forward(params, img_feat, token_ids, mode_embed, NH):
    B, T = token_ids.shape
    H = params["word_emb"].shape[1]
    V = params["cls_dec_w"].shape[1]

    # prepend BOS
    start = jnp.full((B, 1), BOS, dtype=token_ids.dtype)
    tok = jnp.concatenate([start, token_ids], axis=1)                # [B, S]
    S = T + 1

    # Embeddings: word + position + mode, LayerNorm fused in one kernel.
    # TODO(synk): the embedding gather stays in XLA (jnp.take) — no clean
    # Pallas gather at these shapes.
    word = jnp.take(params["word_emb"], tok, axis=0)                 # [B, S, H]
    pos = params["pos_emb"][:S][None]                                # [1, S, H]
    emb = embed_layernorm(word, pos, mode_embed,
                          params["emb_ln_g"], params["emb_ln_b"])    # [B, S, H]

    hidden = emb
    for lp in params["layers"]:
        hidden = bert_layer(lp, hidden, img_feat, NH)

    # BertLMPredictionHead: dense + GELU + LayerNorm (fused) + vocab projection
    h2 = hidden.reshape(B * S, H)
    t = linear_ln(h2, params["cls_t_w"], params["cls_t_b"],
                  params["cls_ln_g"], params["cls_ln_b"], activation="gelu")
    logits = linear(t, params["cls_dec_w"], params["cls_dec_b"])
    return logits.reshape(B, S, V)


# ----------------------------------------------------------------------------
# Deterministic synthetic parameters
# ----------------------------------------------------------------------------
def init_params(key, H, I, V, L, max_pos=512):
    keys = iter(jax.random.split(key, 512))

    def dense(k, din, dout):
        return (0.02 * jax.random.normal(k, (din, dout), jnp.float32),
                jnp.zeros((dout,), jnp.float32))

    p = {}
    word = 0.02 * jax.random.normal(next(keys), (V, H), jnp.float32)
    p["word_emb"] = word.at[PAD].set(0.0)  # padding_idx=PAD
    p["pos_emb"] = 0.02 * jax.random.normal(next(keys), (max_pos, H), jnp.float32)
    p["emb_ln_g"] = jnp.ones((H,), jnp.float32)
    p["emb_ln_b"] = jnp.zeros((H,), jnp.float32)

    layers = []
    for _ in range(L):
        lp = {}
        q_w, q_b = dense(next(keys), H, H)
        k_w, k_b = dense(next(keys), H, H)
        v_w, v_b = dense(next(keys), H, H)
        lp["qkv_w"] = jnp.concatenate([q_w, k_w, v_w], axis=1)       # [H, 3H]
        lp["qkv_b"] = jnp.concatenate([q_b, k_b, v_b], axis=0)
        lp["ao_w"], lp["ao_b"] = dense(next(keys), H, H)
        lp["cq_w"], lp["cq_b"] = dense(next(keys), H, H)
        ck_w, ck_b = dense(next(keys), H, H)
        cv_w, cv_b = dense(next(keys), H, H)
        lp["ckv_w"] = jnp.concatenate([ck_w, cv_w], axis=1)          # [H, 2H]
        lp["ckv_b"] = jnp.concatenate([ck_b, cv_b], axis=0)
        lp["co_w"], lp["co_b"] = dense(next(keys), H, H)
        lp["ffn_in_w"], lp["ffn_in_b"] = dense(next(keys), H, I)
        lp["ffn_out_w"], lp["ffn_out_b"] = dense(next(keys), I, H)
        for ln in ["ln1", "ln2", "ln3"]:
            lp[ln + "_g"] = jnp.ones((H,), jnp.float32)
            lp[ln + "_b"] = jnp.zeros((H,), jnp.float32)
        layers.append(lp)
    p["layers"] = layers

    p["cls_t_w"], p["cls_t_b"] = dense(next(keys), H, H)
    p["cls_ln_g"] = jnp.ones((H,), jnp.float32)
    p["cls_ln_b"] = jnp.zeros((H,), jnp.float32)
    p["cls_dec_w"], p["cls_dec_b"] = dense(next(keys), H, V)
    return p


# ----------------------------------------------------------------------------
if __name__ == "__main__":
    # small synthetic config (stand-in for BertConfig defaults)
    B, T, H, NH, I, V, NIMG, L = 2, 8, 32, 4, 64, 64, 16, 2

    key = jax.random.PRNGKey(0)
    kp, kt, ki, km = jax.random.split(key, 4)

    params = init_params(kp, H, I, V, L)
    token_ids = jax.random.randint(kt, (B, T), 2, V, dtype=jnp.int32)
    img_feat = jax.random.normal(ki, (B, NIMG, H), jnp.float32)
    mode_embed = jax.random.normal(km, (B, 1, H), jnp.float32)

    fwd = jax.jit(functools.partial(decoder_forward, NH=NH))
    preds = fwd(params, img_feat, token_ids, mode_embed)
    preds = jax.block_until_ready(preds)
    assert preds.shape == (B, T + 1, V), preds.shape
    assert bool(jnp.all(jnp.isfinite(preds)))
    print("KERNEL_OK")
</pallas_src>

<mosaic_0001>
module attributes {stable_mosaic.version = 11 : i64} {
  func.func @_attention_kernel(%arg0: i32, %arg1: memref<1x4x9x8xf32, #tpu.memory_space<vmem>>, %arg2: memref<1x4x9x8xf32, #tpu.memory_space<vmem>>, %arg3: memref<1x4x9x8xf32, #tpu.memory_space<vmem>>, %arg4: memref<1x4x9x8xf32, #tpu.memory_space<vmem>>) attributes {dimension_semantics = [#tpu.dimension_semantics<parallel>], iteration_bounds = array<i64: 2>, scalar_prefetch = 0 : i64, scratch_operands = 0 : i64, tpu.core_type = #tpu.core_type<tc>, window_params = [{transform_indices = @transform_0, window_bounds = array<i64: 1, 4, 9, 8>}, {transform_indices = @transform_1, window_bounds = array<i64: 1, 4, 9, 8>}, {transform_indices = @transform_2, window_bounds = array<i64: 1, 4, 9, 8>}, {transform_indices = @transform_3, window_bounds = array<i64: 1, 4, 9, 8>}]} {
    %c0 = arith.constant 0 : index
    %c0_0 = arith.constant 0 : index
    %c0_1 = arith.constant 0 : index
    %c0_2 = arith.constant 0 : index
    %0 = vector.load %arg1[%c0, %c0_0, %c0_1, %c0_2] : memref<1x4x9x8xf32, #tpu.memory_space<vmem>>, vector<1x4x9x8xf32>
    %1 = vector.shape_cast %0 : vector<1x4x9x8xf32> to vector<4x9x8xf32>
    %c0_3 = arith.constant 0 : index
    %c0_4 = arith.constant 0 : index
    %c0_5 = arith.constant 0 : index
    %c0_6 = arith.constant 0 : index
    %2 = vector.load %arg2[%c0_3, %c0_4, %c0_5, %c0_6] : memref<1x4x9x8xf32, #tpu.memory_space<vmem>>, vector<1x4x9x8xf32>
    %3 = vector.shape_cast %2 : vector<1x4x9x8xf32> to vector<4x9x8xf32>
    %c0_7 = arith.constant 0 : index
    %c0_8 = arith.constant 0 : index
    %c0_9 = arith.constant 0 : index
    %c0_10 = arith.constant 0 : index
    %4 = vector.load %arg3[%c0_7, %c0_8, %c0_9, %c0_10] : memref<1x4x9x8xf32, #tpu.memory_space<vmem>>, vector<1x4x9x8xf32>
    %5 = vector.shape_cast %4 : vector<1x4x9x8xf32> to vector<4x9x8xf32>
    "tpu.trace_start"() <{level = 10 : i32, message = "hqd,hkd->hqk"}> : () -> ()
    %cst = arith.constant dense<0.000000e+00> : vector<4x9x9xf32>
    %6 = tpu.matmul %1, %3, %cst {dimension_numbers = #tpu.dot_dimension_numbers<[2], [2], [1], [1], [0, 0, 0, 1, 1, 1], [0], [0]>} : vector<4x9x8xf32>, vector<4x9x8xf32>, vector<4x9x9xf32> -> vector<4x9x9xf32>
    "tpu.trace_stop"() : () -> ()
    %cst_11 = arith.constant 0.353553385 : f32
    %7 = vector.broadcast %cst_11 : f32 to vector<4x9x9xf32>
    %8 = arith.mulf %6, %7 : vector<4x9x9xf32>
    %9 = tpu.iota {dimensions = array<i32: 0>} : vector<9x9xi32>
    %10 = tpu.iota {dimensions = array<i32: 1>} : vector<9x9xi32>
    %11 = arith.cmpi sle, %10, %9 : vector<9x9xi32>
    %12 = vector.shape_cast %11 : vector<9x9xi1> to vector<1x9x9xi1>
    %cst_12 = arith.constant 1.000000e+04 : f32
    %13 = vector.broadcast %cst_12 : f32 to vector<4x9x9xf32>
    %14 = arith.subf %8, %13 : vector<4x9x9xf32>
    %15 = vector.shape_cast %12 : vector<1x9x9xi1> to vector<1x9x9xi1>
    %16 = vector.broadcast %15 : vector<1x9x9xi1> to vector<4x9x9xi1>
    %17 = arith.select %16, %8, %14 : vector<4x9x9xi1>, vector<4x9x9xf32>
    %cst_13 = arith.constant dense<0xFF800000> : vector<4x9xf32>
    %18 = vector.multi_reduction <maximumf>, %17, %cst_13 [2] : vector<4x9x9xf32> to vector<4x9xf32>
    %19 = vector.shape_cast %18 : vector<4x9xf32> to vector<4x9x1xf32>
    %20 = vector.broadcast %19 : vector<4x9x1xf32> to vector<4x9x9xf32>
    %21 = arith.subf %17, %20 : vector<4x9x9xf32>
    %22 = math.exp %21 : vector<4x9x9xf32>
    %cst_14 = arith.constant dense<0.000000e+00> : vector<4x9xf32>
    %23 = vector.multi_reduction <add>, %22, %cst_14 [2] : vector<4x9x9xf32> to vector<4x9xf32>
    %24 = vector.shape_cast %23 : vector<4x9xf32> to vector<4x9x1xf32>
    %25 = tpu.reciprocal %24 {approx = true} : vector<4x9x1xf32> -> vector<4x9x1xf32>
    %26 = vector.broadcast %25 : vector<4x9x1xf32> to vector<4x9x9xf32>
    %27 = arith.mulf %22, %26 : vector<4x9x9xf32>
    "tpu.trace_start"() <{level = 10 : i32, message = "hqk,hkd->hqd"}> : () -> ()
    %cst_15 = arith.constant dense<0.000000e+00> : vector<4x9x8xf32>
    %28 = tpu.matmul %27, %5, %cst_15 {dimension_numbers = #tpu.dot_dimension_numbers<[2], [1], [1], [2], [0, 0, 0, 1, 1, 2], [0], [0]>} : vector<4x9x9xf32>, vector<4x9x8xf32>, vector<4x9x8xf32> -> vector<4x9x8xf32>
    "tpu.trace_stop"() : () -> ()
    %29 = vector.shape_cast %28 : vector<4x9x8xf32> to vector<1x4x9x8xf32>
    %c0_16 = arith.constant 0 : index
    %c0_17 = arith.constant 0 : index
    %c0_18 = arith.constant 0 : index
    %c0_19 = arith.constant 0 : index
    %30 = vector.load %arg4[%c0_16, %c0_17, %c0_18, %c0_19] : memref<1x4x9x8xf32, #tpu.memory_space<vmem>>, vector<1x4x9x8xf32>
    tpu.vector_store %arg4[%c0_16, %c0_17, %c0_18, %c0_19], %29 {strides = array<i32>} : memref<1x4x9x8xf32, #tpu.memory_space<vmem>>, vector<1x4x9x8xf32>,
    return
  }
  func.func @transform_0(%arg0: i32) -> (i32, i32, i32, i32) {
    %c0_i32 = arith.constant 0 : i32
    %c0_i32_0 = arith.constant 0 : i32
    %c0_i32_1 = arith.constant 0 : i32
    %c0_i32_2 = arith.constant 0 : i32
    return %arg0, %c0_i32, %c0_i32_0, %c0_i32_1 : i32, i32, i32, i32
  }
  func.func @transform_1(%arg0: i32) -> (i32, i32, i32, i32) {
    %c0_i32 = arith.constant 0 : i32
    %c0_i32_0 = arith.constant 0 : i32
    %c0_i32_1 = arith.constant 0 : i32
    %c0_i32_2 = arith.constant 0 : i32
    return %arg0, %c0_i32, %c0_i32_0, %c0_i32_1 : i32, i32, i32, i32
  }
  func.func @transform_2(%arg0: i32) -> (i32, i32, i32, i32) {
    %c0_i32 = arith.constant 0 : i32
    %c0_i32_0 = arith.constant 0 : i32
    %c0_i32_1 = arith.constant 0 : i32
    %c0_i32_2 = arith.constant 0 : i32
    return %arg0, %c0_i32, %c0_i32_0, %c0_i32_1 : i32, i32, i32, i32
  }
  func.func @transform_3(%arg0: i32) -> (i32, i32, i32, i32) {
    %c0_i32 = arith.constant 0 : i32
    %c0_i32_0 = arith.constant 0 : i32
    %c0_i32_1 = arith.constant 0 : i32
    %c0_i32_2 = arith.constant 0 : i32
    return %arg0, %c0_i32, %c0_i32_0, %c0_i32_1 : i32, i32, i32, i32
  }
}

module attributes {stable_mosaic.version = 11 : i64} {
  func.func @_linear_kernel(%arg0: i32, %arg1: i32, %arg2: i32, %arg3: memref<18x32xf32, #tpu.memory_space<vmem>>, %arg4: memref<32x96xf32, #tpu.memory_space<vmem>>, %arg5: memref<1x96xf32, #tpu.memory_space<vmem>>, %arg6: memref<18x96xf32, #tpu.memory_space<vmem>>, %arg7: memref<18x96xf32, #tpu.memory_space<vmem>>) attributes {dimension_semantics = [#tpu.dimension_semantics<parallel>, #tpu.dimension_semantics<parallel>, #tpu.dimension_semantics<arbitrary>], iteration_bounds = array<i64: 1, 1, 1>, scalar_prefetch = 0 : i64, scratch_operands = 1 : i64, tpu.core_type = #tpu.core_type<tc>, window_params = [{transform_indices = @transform_0, window_bounds = array<i64: 18, 32>}, {transform_indices = @transform_1, window_bounds = array<i64: 32, 96>}, {transform_indices = @transform_2, window_bounds = array<i64: 1, 96>}, {transform_indices = @transform_3, window_bounds = array<i64: 18, 96>}]} {
    %c0_i32 = arith.constant 0 : i32
    %0 = arith.cmpi eq, %arg2, %c0_i32 : i32
    %1 = arith.extui %0 : i1 to i32
    %c0_i32_0 = arith.constant 0 : i32
    %2 = arith.cmpi ne, %1, %c0_i32_0 : i32
    scf.if %2 {
      %cst_10 = arith.constant 0.000000e+00 : f32
      %12 = vector.broadcast %cst_10 : f32 to vector<18x96xf32>
      %c0_11 = arith.constant 0 : index
      %c0_12 = arith.constant 0 : index
      %13 = vector.load %arg7[%c0_11, %c0_12] : memref<18x96xf32, #tpu.memory_space<vmem>>, vector<18x96xf32>
      tpu.vector_store %arg7[%c0_11, %c0_12], %12 {strides = array<i32>} : memref<18x96xf32, #tpu.memory_space<vmem>>, vector<18x96xf32>,
    } else {
    }
    %c0 = arith.constant 0 : index
    %c0_1 = arith.constant 0 : index
    %3 = vector.load %arg7[%c0, %c0_1] : memref<18x96xf32, #tpu.memory_space<vmem>>, vector<18x96xf32>
    %c0_2 = arith.constant 0 : index
    %c0_3 = arith.constant 0 : index
    %4 = vector.load %arg3[%c0_2, %c0_3] : memref<18x32xf32, #tpu.memory_space<vmem>>, vector<18x32xf32>
    %c0_4 = arith.constant 0 : index
    %c0_5 = arith.constant 0 : index
    %5 = vector.load %arg4[%c0_4, %c0_5] : memref<32x96xf32, #tpu.memory_space<vmem>>, vector<32x96xf32>
    %cst = arith.constant dense<0.000000e+00> : vector<18x96xf32>
    %6 = tpu.matmul %4, %5, %cst {dimension_numbers = #tpu.dot_dimension_numbers<[1], [0], [0], [1], [0, 0, 1, 1], [], []>} : vector<18x32xf32>, vector<32x96xf32>, vector<18x96xf32> -> vector<18x96xf32>
    %7 = arith.addf %3, %6 : vector<18x96xf32>
    %c0_6 = arith.constant 0 : index
    %c0_7 = arith.constant 0 : index
    %8 = vector.load %arg7[%c0_6, %c0_7] : memref<18x96xf32, #tpu.memory_space<vmem>>, vector<18x96xf32>
    tpu.vector_store %arg7[%c0_6, %c0_7], %7 {strides = array<i32>} : memref<18x96xf32, #tpu.memory_space<vmem>>, vector<18x96xf32>,
    %c0_i32_8 = arith.constant 0 : i32
    %9 = arith.cmpi eq, %arg2, %c0_i32_8 : i32
    %10 = arith.extui %9 : i1 to i32
    %c0_i32_9 = arith.constant 0 : i32
    %11 = arith.cmpi ne, %10, %c0_i32_9 : i32
    scf.if %11 {
      %c0_10 = arith.constant 0 : index
      %c0_11 = arith.constant 0 : index
      %12 = vector.load %arg7[%c0_10, %c0_11] : memref<18x96xf32, #tpu.memory_space<vmem>>, vector<18x96xf32>
      %c0_12 = arith.constant 0 : index
      %c0_13 = arith.constant 0 : index
      %13 = vector.load %arg5[%c0_12, %c0_13] : memref<1x96xf32, #tpu.memory_space<vmem>>, vector<1x96xf32>
      %14 = vector.broadcast %13 : vector<1x96xf32> to vector<18x96xf32>
      %15 = arith.addf %12, %14 : vector<18x96xf32>
      %c0_14 = arith.constant 0 : index
      %c0_15 = arith.constant 0 : index
      %16 = vector.load %arg6[%c0_14, %c0_15] : memref<18x96xf32, #tpu.memory_space<vmem>>, vector<18x96xf32>
      tpu.vector_store %arg6[%c0_14, %c0_15], %15 {strides = array<i32>} : memref<18x96xf32, #tpu.memory_space<vmem>>, vector<18x96xf32>,
    } else {
    }
    return
  }
  func.func @transform_0(%arg0: i32, %arg1: i32, %arg2: i32) -> (i32, i32) {
    %c0_i32 = arith.constant 0 : i32
    return %arg0, %arg2 : i32, i32
  }
  func.func @transform_1(%arg0: i32, %arg1: i32, %arg2: i32) -> (i32, i32) {
    %c0_i32 = arith.constant 0 : i32
    return %arg2, %arg1 : i32, i32
  }
  func.func @transform_2(%arg0: i32, %arg1: i32, %arg2: i32) -> (i32, i32) {
    %c0_i32 = arith.constant 0 : i32
    %c0_i32_0 = arith.constant 0 : i32
    return %c0_i32, %arg1 : i32, i32
  }
  func.func @transform_3(%arg0: i32, %arg1: i32, %arg2: i32) -> (i32, i32) {
    %c0_i32 = arith.constant 0 : i32
    return %arg0, %arg1 : i32, i32
  }
}

module attributes {stable_mosaic.version = 11 : i64} {
  func.func @_embed_ln_kernel(%arg0: i32, %arg1: i32, %arg2: memref<1x9x32xf32, #tpu.memory_space<vmem>>, %arg3: memref<1x9x32xf32, #tpu.memory_space<vmem>>, %arg4: memref<1x1x32xf32, #tpu.memory_space<vmem>>, %arg5: memref<1x32xf32, #tpu.memory_space<vmem>>, %arg6: memref<1x32xf32, #tpu.memory_space<vmem>>, %arg7: memref<1x9x32xf32, #tpu.memory_space<vmem>>) attributes {dimension_semantics = [#tpu.dimension_semantics<parallel>, #tpu.dimension_semantics<parallel>], iteration_bounds = array<i64: 2, 1>, scalar_prefetch = 0 : i64, scratch_operands = 0 : i64, tpu.core_type = #tpu.core_type<tc>, window_params = [{transform_indices = @transform_0, window_bounds = array<i64: 1, 9, 32>}, {transform_indices = @transform_1, window_bounds = array<i64: 1, 9, 32>}, {transform_indices = @transform_2, window_bounds = array<i64: 1, 1, 32>}, {pipeline_mode = #tpu.pipeline_mode<synchronous>, transform_indices = @transform_3, window_bounds = array<i64: 1, 32>}, {pipeline_mode = #tpu.pipeline_mode<synchronous>, transform_indices = @transform_4, window_bounds = array<i64: 1, 32>}, {transform_indices = @transform_5, window_bounds = array<i64: 1, 9, 32>}]} {
    %c0 = arith.constant 0 : index
    %c0_0 = arith.constant 0 : index
    %c0_1 = arith.constant 0 : index
    %0 = vector.load %arg2[%c0, %c0_0, %c0_1] : memref<1x9x32xf32, #tpu.memory_space<vmem>>, vector<1x9x32xf32>
    %1 = vector.shape_cast %0 : vector<1x9x32xf32> to vector<9x32xf32>
    %c0_2 = arith.constant 0 : index
    %c0_3 = arith.constant 0 : index
    %c0_4 = arith.constant 0 : index
    %2 = vector.load %arg3[%c0_2, %c0_3, %c0_4] : memref<1x9x32xf32, #tpu.memory_space<vmem>>, vector<1x9x32xf32>
    %3 = vector.shape_cast %2 : vector<1x9x32xf32> to vector<9x32xf32>
    %4 = arith.addf %1, %3 : vector<9x32xf32>
    %c0_5 = arith.constant 0 : index
    %c0_6 = arith.constant 0 : index
    %c0_7 = arith.constant 0 : index
    %5 = vector.load %arg4[%c0_5, %c0_6, %c0_7] : memref<1x1x32xf32, #tpu.memory_space<vmem>>, vector<1x1x32xf32>
    %6 = vector.shape_cast %5 : vector<1x1x32xf32> to vector<1x32xf32>
    %7 = vector.broadcast %6 : vector<1x32xf32> to vector<9x32xf32>
    %8 = arith.addf %4, %7 : vector<9x32xf32>
    %c0_8 = arith.constant 0 : index
    %c0_9 = arith.constant 0 : index
    %9 = vector.load %arg5[%c0_8, %c0_9] : memref<1x32xf32, #tpu.memory_space<vmem>>, vector<1x32xf32>
    %c0_10 = arith.constant 0 : index
    %c0_11 = arith.constant 0 : index
    %10 = vector.load %arg6[%c0_10, %c0_11] : memref<1x32xf32, #tpu.memory_space<vmem>>, vector<1x32xf32>
    %cst = arith.constant dense<0.000000e+00> : vector<9xf32>
    %11 = vector.multi_reduction <add>, %8, %cst [1] : vector<9x32xf32> to vector<9xf32>
    %12 = vector.shape_cast %11 : vector<9xf32> to vector<9x1xf32>
    %cst_12 = arith.constant 3.200000e+01 : f32
    %13 = vector.broadcast %cst_12 : f32 to vector<9x1xf32>
    %14 = arith.divf %12, %13 : vector<9x1xf32>
    %15 = vector.broadcast %14 : vector<9x1xf32> to vector<9x32xf32>
    %16 = arith.subf %8, %15 : vector<9x32xf32>
    %17 = arith.mulf %16, %16 : vector<9x32xf32>
    %cst_13 = arith.constant dense<0.000000e+00> : vector<9xf32>
    %18 = vector.multi_reduction <add>, %17, %cst_13 [1] : vector<9x32xf32> to vector<9xf32>
    %19 = vector.shape_cast %18 : vector<9xf32> to vector<9x1xf32>
    %cst_14 = arith.constant 3.200000e+01 : f32
    %20 = vector.broadcast %cst_14 : f32 to vector<9x1xf32>
    %21 = arith.divf %19, %20 : vector<9x1xf32>
    %22 = vector.broadcast %14 : vector<9x1xf32> to vector<9x32xf32>
    %23 = arith.subf %8, %22 : vector<9x32xf32>
    %cst_15 = arith.constant 9.99999996E-13 : f32
    %24 = vector.broadcast %cst_15 : f32 to vector<9x1xf32>
    %25 = arith.addf %21, %24 : vector<9x1xf32>
    %26 = math.rsqrt %25 : vector<9x1xf32>
    %27 = vector.broadcast %26 : vector<9x1xf32> to vector<9x32xf32>
    %28 = arith.mulf %23, %27 : vector<9x32xf32>
    %29 = vector.broadcast %9 : vector<1x32xf32> to vector<9x32xf32>
    %30 = arith.mulf %28, %29 : vector<9x32xf32>
    %31 = vector.broadcast %10 : vector<1x32xf32> to vector<9x32xf32>
    %32 = arith.addf %30, %31 : vector<9x32xf32>
    %33 = vector.shape_cast %32 : vector<9x32xf32> to vector<1x9x32xf32>
    %c0_16 = arith.constant 0 : index
    %c0_17 = arith.constant 0 : index
    %c0_18 = arith.constant 0 : index
    %34 = vector.load %arg7[%c0_16, %c0_17, %c0_18] : memref<1x9x32xf32, #tpu.memory_space<vmem>>, vector<1x9x32xf32>
    tpu.vector_store %arg7[%c0_16, %c0_17, %c0_18], %33 {strides = array<i32>} : memref<1x9x32xf32, #tpu.memory_space<vmem>>, vector<1x9x32xf32>,
    return
  }
  func.func @transform_0(%arg0: i32, %arg1: i32) -> (i32, i32, i32) {
    %c0_i32 = arith.constant 0 : i32
    %c0_i32_0 = arith.constant 0 : i32
    return %arg0, %arg1, %c0_i32 : i32, i32, i32
  }
  func.func @transform_1(%arg0: i32, %arg1: i32) -> (i32, i32, i32) {
    %c0_i32 = arith.constant 0 : i32
    %c0_i32_0 = arith.constant 0 : i32
    %c0_i32_1 = arith.constant 0 : i32
    return %c0_i32, %arg1, %c0_i32_0 : i32, i32, i32
  }
  func.func @transform_2(%arg0: i32, %arg1: i32) -> (i32, i32, i32) {
    %c0_i32 = arith.constant 0 : i32
    %c0_i32_0 = arith.constant 0 : i32
    %c0_i32_1 = arith.constant 0 : i32
    return %arg0, %c0_i32, %c0_i32_0 : i32, i32, i32
  }
  func.func @transform_3(%arg0: i32, %arg1: i32) -> (i32, i32) {
    %c0_i32 = arith.constant 0 : i32
    %c0_i32_0 = arith.constant 0 : i32
    %c0_i32_1 = arith.constant 0 : i32
    return %c0_i32, %c0_i32_0 : i32, i32
  }
  func.func @transform_4(%arg0: i32, %arg1: i32) -> (i32, i32) {
    %c0_i32 = arith.constant 0 : i32
    %c0_i32_0 = arith.constant 0 : i32
    %c0_i32_1 = arith.constant 0 : i32
    return %c0_i32, %c0_i32_0 : i32, i32
  }
  func.func @transform_5(%arg0: i32, %arg1: i32) -> (i32, i32, i32) {
    %c0_i32 = arith.constant 0 : i32
    %c0_i32_0 = arith.constant 0 : i32
    return %arg0, %arg1, %c0_i32 : i32, i32, i32
  }
}

module attributes {stable_mosaic.version = 11 : i64} {
  func.func @_linear_ln_kernel(%arg0: i32, %arg1: i32, %arg2: memref<18x32xf32, #tpu.memory_space<vmem>>, %arg3: memref<32x32xf32, #tpu.memory_space<vmem>>, %arg4: memref<1x32xf32, #tpu.memory_space<vmem>>, %arg5: memref<18x32xf32, #tpu.memory_space<vmem>>, %arg6: memref<1x32xf32, #tpu.memory_space<vmem>>, %arg7: memref<1x32xf32, #tpu.memory_space<vmem>>, %arg8: memref<18x32xf32, #tpu.memory_space<vmem>>, %arg9: memref<18x32xf32, #tpu.memory_space<vmem>>) attributes {dimension_semantics = [#tpu.dimension_semantics<parallel>, #tpu.dimension_semantics<arbitrary>], iteration_bounds = array<i64: 1, 1>, scalar_prefetch = 0 : i64, scratch_operands = 1 : i64, tpu.core_type = #tpu.core_type<tc>, window_params = [{transform_indices = @transform_0, window_bounds = array<i64: 18, 32>}, {transform_indices = @transform_1, window_bounds = array<i64: 32, 32>}, {pipeline_mode = #tpu.pipeline_mode<synchronous>, transform_indices = @transform_2, window_bounds = array<i64: 1, 32>}, {transform_indices = @transform_3, window_bounds = array<i64: 18, 32>}, {pipeline_mode = #tpu.pipeline_mode<synchronous>, transform_indices = @transform_4, window_bounds = array<i64: 1, 32>}, {pipeline_mode = #tpu.pipeline_mode<synchronous>, transform_indices = @transform_5, window_bounds = array<i64: 1, 32>}, {transform_indices = @transform_6, window_bounds = array<i64: 18, 32>}]} {
    %c0_i32 = arith.constant 0 : i32
    %0 = arith.cmpi eq, %arg1, %c0_i32 : i32
    %1 = arith.extui %0 : i1 to i32
    %c0_i32_0 = arith.constant 0 : i32
    %2 = arith.cmpi ne, %1, %c0_i32_0 : i32
    scf.if %2 {
      %cst_10 = arith.constant 0.000000e+00 : f32
      %12 = vector.broadcast %cst_10 : f32 to vector<18x32xf32>
      %c0_11 = arith.constant 0 : index
      %c0_12 = arith.constant 0 : index
      %13 = vector.load %arg9[%c0_11, %c0_12] : memref<18x32xf32, #tpu.memory_space<vmem>>, vector<18x32xf32>
      tpu.vector_store %arg9[%c0_11, %c0_12], %12 {strides = array<i32>} : memref<18x32xf32, #tpu.memory_space<vmem>>, vector<18x32xf32>,
    } else {
    }
    %c0 = arith.constant 0 : index
    %c0_1 = arith.constant 0 : index
    %3 = vector.load %arg9[%c0, %c0_1] : memref<18x32xf32, #tpu.memory_space<vmem>>, vector<18x32xf32>
    %c0_2 = arith.constant 0 : index
    %c0_3 = arith.constant 0 : index
    %4 = vector.load %arg2[%c0_2, %c0_3] : memref<18x32xf32, #tpu.memory_space<vmem>>, vector<18x32xf32>
    %c0_4 = arith.constant 0 : index
    %c0_5 = arith.constant 0 : index
    %5 = vector.load %arg3[%c0_4, %c0_5] : memref<32x32xf32, #tpu.memory_space<vmem>>, vector<32x32xf32>
    %cst = arith.constant dense<0.000000e+00> : vector<18x32xf32>
    %6 = tpu.matmul %4, %5, %cst {dimension_numbers = #tpu.dot_dimension_numbers<[1], [0], [0], [1], [0, 0, 1, 1], [], []>} : vector<18x32xf32>, vector<32x32xf32>, vector<18x32xf32> -> vector<18x32xf32>
    %7 = arith.addf %3, %6 : vector<18x32xf32>
    %c0_6 = arith.constant 0 : index
    %c0_7 = arith.constant 0 : index
    %8 = vector.load %arg9[%c0_6, %c0_7] : memref<18x32xf32, #tpu.memory_space<vmem>>, vector<18x32xf32>
    tpu.vector_store %arg9[%c0_6, %c0_7], %7 {strides = array<i32>} : memref<18x32xf32, #tpu.memory_space<vmem>>, vector<18x32xf32>,
    %c0_i32_8 = arith.constant 0 : i32
    %9 = arith.cmpi eq, %arg1, %c0_i32_8 : i32
    %10 = arith.extui %9 : i1 to i32
    %c0_i32_9 = arith.constant 0 : i32
    %11 = arith.cmpi ne, %10, %c0_i32_9 : i32
    scf.if %11 {
      %c0_10 = arith.constant 0 : index
      %c0_11 = arith.constant 0 : index
      %12 = vector.load %arg9[%c0_10, %c0_11] : memref<18x32xf32, #tpu.memory_space<vmem>>, vector<18x32xf32>
      %c0_12 = arith.constant 0 : index
      %c0_13 = arith.constant 0 : index
      %13 = vector.load %arg4[%c0_12, %c0_13] : memref<1x32xf32, #tpu.memory_space<vmem>>, vector<1x32xf32>
      %14 = vector.broadcast %13 : vector<1x32xf32> to vector<18x32xf32>
      %15 = arith.addf %12, %14 : vector<18x32xf32>
      %c0_14 = arith.constant 0 : index
      %c0_15 = arith.constant 0 : index
      %16 = vector.load %arg5[%c0_14, %c0_15] : memref<18x32xf32, #tpu.memory_space<vmem>>, vector<18x32xf32>
      %17 = arith.addf %15, %16 : vector<18x32xf32>
      %c0_16 = arith.constant 0 : index
      %c0_17 = arith.constant 0 : index
      %18 = vector.load %arg6[%c0_16, %c0_17] : memref<1x32xf32, #tpu.memory_space<vmem>>, vector<1x32xf32>
      %c0_18 = arith.constant 0 : index
      %c0_19 = arith.constant 0 : index
      %19 = vector.load %arg7[%c0_18, %c0_19] : memref<1x32xf32, #tpu.memory_space<vmem>>, vector<1x32xf32>
      %cst_20 = arith.constant dense<0.000000e+00> : vector<18xf32>
      %20 = vector.multi_reduction <add>, %17, %cst_20 [1] : vector<18x32xf32> to vector<18xf32>
      %21 = vector.shape_cast %20 : vector<18xf32> to vector<18x1xf32>
      %cst_21 = arith.constant 3.200000e+01 : f32
      %22 = vector.broadcast %cst_21 : f32 to vector<18x1xf32>
      %23 = arith.divf %21, %22 : vector<18x1xf32>
      %24 = vector.broadcast %23 : vector<18x1xf32> to vector<18x32xf32>
      %25 = arith.subf %17, %24 : vector<18x32xf32>
      %26 = arith.mulf %25, %25 : vector<18x32xf32>
      %cst_22 = arith.constant dense<0.000000e+00> : vector<18xf32>
      %27 = vector.multi_reduction <add>, %26, %cst_22 [1] : vector<18x32xf32> to vector<18xf32>
      %28 = vector.shape_cast %27 : vector<18xf32> to vector<18x1xf32>
      %cst_23 = arith.constant 3.200000e+01 : f32
      %29 = vector.broadcast %cst_23 : f32 to vector<18x1xf32>
      %30 = arith.divf %28, %29 : vector<18x1xf32>
      %31 = vector.broadcast %23 : vector<18x1xf32> to vector<18x32xf32>
      %32 = arith.subf %17, %31 : vector<18x32xf32>
      %cst_24 = arith.constant 9.99999996E-13 : f32
      %33 = vector.broadcast %cst_24 : f32 to vector<18x1xf32>
      %34 = arith.addf %30, %33 : vector<18x1xf32>
      %35 = math.rsqrt %34 : vector<18x1xf32>
      %36 = vector.broadcast %35 : vector<18x1xf32> to vector<18x32xf32>
      %37 = arith.mulf %32, %36 : vector<18x32xf32>
      %38 = vector.broadcast %18 : vector<1x32xf32> to vector<18x32xf32>
      %39 = arith.mulf %37, %38 : vector<18x32xf32>
      %40 = vector.broadcast %19 : vector<1x32xf32> to vector<18x32xf32>
      %41 = arith.addf %39, %40 : vector<18x32xf32>
      %c0_25 = arith.constant 0 : index
      %c0_26 = arith.constant 0 : index
      %42 = vector.load %arg8[%c0_25, %c0_26] : memref<18x32xf32, #tpu.memory_space<vmem>>, vector<18x32xf32>
      tpu.vector_store %arg8[%c0_25, %c0_26], %41 {strides = array<i32>} : memref<18x32xf32, #tpu.memory_space<vmem>>, vector<18x32xf32>,
    } else {
    }
    return
  }
  func.func @transform_0(%arg0: i32, %arg1: i32) -> (i32, i32) {
    %c0_i32 = arith.constant 0 : i32
    return %arg0, %arg1 : i32, i32
  }
  func.func @transform_1(%arg0: i32, %arg1: i32) -> (i32, i32) {
    %c0_i32 = arith.constant 0 : i32
    %c0_i32_0 = arith.constant 0 : i32
    return %arg1, %c0_i32 : i32, i32
  }
  func.func @transform_2(%arg0: i32, %arg1: i32) -> (i32, i32) {
    %c0_i32 = arith.constant 0 : i32
    %c0_i32_0 = arith.constant 0 : i32
    %c0_i32_1 = arith.constant 0 : i32
    return %c0_i32, %c0_i32_0 : i32, i32
  }
  func.func @transform_3(%arg0: i32, %arg1: i32) -> (i32, i32) {
    %c0_i32 = arith.constant 0 : i32
    %c0_i32_0 = arith.constant 0 : i32
    return %arg0, %c0_i32 : i32, i32
  }
  func.func @transform_4(%arg0: i32, %arg1: i32) -> (i32, i32) {
    %c0_i32 = arith.constant 0 : i32
    %c0_i32_0 = arith.constant 0 : i32
    %c0_i32_1 = arith.constant 0 : i32
    return %c0_i32, %c0_i32_0 : i32, i32
  }
  func.func @transform_5(%arg0: i32, %arg1: i32) -> (i32, i32) {
    %c0_i32 = arith.constant 0 : i32
    %c0_i32_0 = arith.constant 0 : i32
    %c0_i32_1 = arith.constant 0 : i32
    return %c0_i32, %c0_i32_0 : i32, i32
  }
  func.func @transform_6(%arg0: i32, %arg1: i32) -> (i32, i32) {
    %c0_i32 = arith.constant 0 : i32
    %c0_i32_0 = arith.constant 0 : i32
    return %arg0, %c0_i32 : i32, i32
  }
}

module attributes {stable_mosaic.version = 11 : i64} {
  func.func @_linear_kernel(%arg0: i32, %arg1: i32, %arg2: i32, %arg3: memref<18x32xf32, #tpu.memory_space<vmem>>, %arg4: memref<32x32xf32, #tpu.memory_space<vmem>>, %arg5: memref<1x32xf32, #tpu.memory_space<vmem>>, %arg6: memref<18x32xf32, #tpu.memory_space<vmem>>, %arg7: memref<18x32xf32, #tpu.memory_space<vmem>>) attributes {dimension_semantics = [#tpu.dimension_semantics<parallel>, #tpu.dimension_semantics<parallel>, #tpu.dimension_semantics<arbitrary>], iteration_bounds = array<i64: 1, 1, 1>, scalar_prefetch = 0 : i64, scratch_operands = 1 : i64, tpu.core_type = #tpu.core_type<tc>, window_params = [{transform_indices = @transform_0, window_bounds = array<i64: 18, 32>}, {transform_indices = @transform_1, window_bounds = array<i64: 32, 32>}, {transform_indices = @transform_2, window_bounds = array<i64: 1, 32>}, {transform_indices = @transform_3, window_bounds = array<i64: 18, 32>}]} {
    %c0_i32 = arith.constant 0 : i32
    %0 = arith.cmpi eq, %arg2, %c0_i32 : i32
    %1 = arith.extui %0 : i1 to i32
    %c0_i32_0 = arith.constant 0 : i32
    %2 = arith.cmpi ne, %1, %c0_i32_0 : i32
    scf.if %2 {
      %cst_10 = arith.constant 0.000000e+00 : f32
      %12 = vector.broadcast %cst_10 : f32 to vector<18x32xf32>
      %c0_11 = arith.constant 0 : index
      %c0_12 = arith.constant 0 : index
      %13 = vector.load %arg7[%c0_11, %c0_12] : memref<18x32xf32, #tpu.memory_space<vmem>>, vector<18x32xf32>
      tpu.vector_store %arg7[%c0_11, %c0_12], %12 {strides = array<i32>} : memref<18x32xf32, #tpu.memory_space<vmem>>, vector<18x32xf32>,
    } else {
    }
    %c0 = arith.constant 0 : index
    %c0_1 = arith.constant 0 : index
    %3 = vector.load %arg7[%c0, %c0_1] : memref<18x32xf32, #tpu.memory_space<vmem>>, vector<18x32xf32>
    %c0_2 = arith.constant 0 : index
    %c0_3 = arith.constant 0 : index
    %4 = vector.load %arg3[%c0_2, %c0_3] : memref<18x32xf32, #tpu.memory_space<vmem>>, vector<18x32xf32>
    %c0_4 = arith.constant 0 : index
    %c0_5 = arith.constant 0 : index
    %5 = vector.load %arg4[%c0_4, %c0_5] : memref<32x32xf32, #tpu.memory_space<vmem>>, vector<32x32xf32>
    %cst = arith.constant dense<0.000000e+00> : vector<18x32xf32>
    %6 = tpu.matmul %4, %5, %cst {dimension_numbers = #tpu.dot_dimension_numbers<[1], [0], [0], [1], [0, 0, 1, 1], [], []>} : vector<18x32xf32>, vector<32x32xf32>, vector<18x32xf32> -> vector<18x32xf32>
    %7 = arith.addf %3, %6 : vector<18x32xf32>
    %c0_6 = arith.constant 0 : index
    %c0_7 = arith.constant 0 : index
    %8 = vector.load %arg7[%c0_6, %c0_7] : memref<18x32xf32, #tpu.memory_space<vmem>>, vector<18x32xf32>
    tpu.vector_store %arg7[%c0_6, %c0_7], %7 {strides = array<i32>} : memref<18x32xf32, #tpu.memory_space<vmem>>, vector<18x32xf32>,
    %c0_i32_8 = arith.constant 0 : i32
    %9 = arith.cmpi eq, %arg2, %c0_i32_8 : i32
    %10 = arith.extui %9 : i1 to i32
    %c0_i32_9 = arith.constant 0 : i32
    %11 = arith.cmpi ne, %10, %c0_i32_9 : i32
    scf.if %11 {
      %c0_10 = arith.constant 0 : index
      %c0_11 = arith.constant 0 : index
      %12 = vector.load %arg7[%c0_10, %c0_11] : memref<18x32xf32, #tpu.memory_space<vmem>>, vector<18x32xf32>
      %c0_12 = arith.constant 0 : index
      %c0_13 = arith.constant 0 : index
      %13 = vector.load %arg5[%c0_12, %c0_13] : memref<1x32xf32, #tpu.memory_space<vmem>>, vector<1x32xf32>
      %14 = vector.broadcast %13 : vector<1x32xf32> to vector<18x32xf32>
      %15 = arith.addf %12, %14 : vector<18x32xf32>
      %c0_14 = arith.constant 0 : index
      %c0_15 = arith.constant 0 : index
      %16 = vector.load %arg6[%c0_14, %c0_15] : memref<18x32xf32, #tpu.memory_space<vmem>>, vector<18x32xf32>
      tpu.vector_store %arg6[%c0_14, %c0_15], %15 {strides = array<i32>} : memref<18x32xf32, #tpu.memory_space<vmem>>, vector<18x32xf32>,
    } else {
    }
    return
  }
  func.func @transform_0(%arg0: i32, %arg1: i32, %arg2: i32) -> (i32, i32) {
    %c0_i32 = arith.constant 0 : i32
    return %arg0, %arg2 : i32, i32
  }
  func.func @transform_1(%arg0: i32, %arg1: i32, %arg2: i32) -> (i32, i32) {
    %c0_i32 = arith.constant 0 : i32
    return %arg2, %arg1 : i32, i32
  }
  func.func @transform_2(%arg0: i32, %arg1: i32, %arg2: i32) -> (i32, i32) {
    %c0_i32 = arith.constant 0 : i32
    %c0_i32_0 = arith.constant 0 : i32
    return %c0_i32, %arg1 : i32, i32
  }
  func.func @transform_3(%arg0: i32, %arg1: i32, %arg2: i32) -> (i32, i32) {
    %c0_i32 = arith.constant 0 : i32
    return %arg0, %arg1 : i32, i32
  }
}

module attributes {stable_mosaic.version = 11 : i64} {
  func.func @_linear_kernel(%arg0: i32, %arg1: i32, %arg2: i32, %arg3: memref<32x32xf32, #tpu.memory_space<vmem>>, %arg4: memref<32x64xf32, #tpu.memory_space<vmem>>, %arg5: memref<1x64xf32, #tpu.memory_space<vmem>>, %arg6: memref<32x64xf32, #tpu.memory_space<vmem>>, %arg7: memref<32x64xf32, #tpu.memory_space<vmem>>) attributes {dimension_semantics = [#tpu.dimension_semantics<parallel>, #tpu.dimension_semantics<parallel>, #tpu.dimension_semantics<arbitrary>], iteration_bounds = array<i64: 1, 1, 1>, scalar_prefetch = 0 : i64, scratch_operands = 1 : i64, tpu.core_type = #tpu.core_type<tc>, window_params = [{transform_indices = @transform_0, window_bounds = array<i64: 32, 32>}, {transform_indices = @transform_1, window_bounds = array<i64: 32, 64>}, {transform_indices = @transform_2, window_bounds = array<i64: 1, 64>}, {transform_indices = @transform_3, window_bounds = array<i64: 32, 64>}]} {
    %c0_i32 = arith.constant 0 : i32
    %0 = arith.cmpi eq, %arg2, %c0_i32 : i32
    %1 = arith.extui %0 : i1 to i32
    %c0_i32_0 = arith.constant 0 : i32
    %2 = arith.cmpi ne, %1, %c0_i32_0 : i32
    scf.if %2 {
      %cst_10 = arith.constant 0.000000e+00 : f32
      %12 = vector.broadcast %cst_10 : f32 to vector<32x64xf32>
      %c0_11 = arith.constant 0 : index
      %c0_12 = arith.constant 0 : index
      %13 = vector.load %arg7[%c0_11, %c0_12] : memref<32x64xf32, #tpu.memory_space<vmem>>, vector<32x64xf32>
      tpu.vector_store %arg7[%c0_11, %c0_12], %12 {strides = array<i32>} : memref<32x64xf32, #tpu.memory_space<vmem>>, vector<32x64xf32>,
    } else {
    }
    %c0 = arith.constant 0 : index
    %c0_1 = arith.constant 0 : index
    %3 = vector.load %arg7[%c0, %c0_1] : memref<32x64xf32, #tpu.memory_space<vmem>>, vector<32x64xf32>
    %c0_2 = arith.constant 0 : index
    %c0_3 = arith.constant 0 : index
    %4 = vector.load %arg3[%c0_2, %c0_3] : memref<32x32xf32, #tpu.memory_space<vmem>>, vector<32x32xf32>
    %c0_4 = arith.constant 0 : index
    %c0_5 = arith.constant 0 : index
    %5 = vector.load %arg4[%c0_4, %c0_5] : memref<32x64xf32, #tpu.memory_space<vmem>>, vector<32x64xf32>
    %cst = arith.constant dense<0.000000e+00> : vector<32x64xf32>
    %6 = tpu.matmul %4, %5, %cst {dimension_numbers = #tpu.dot_dimension_numbers<[1], [0], [0], [1], [0, 0, 1, 1], [], []>} : vector<32x32xf32>, vector<32x64xf32>, vector<32x64xf32> -> vector<32x64xf32>
    %7 = arith.addf %3, %6 : vector<32x64xf32>
    %c0_6 = arith.constant 0 : index
    %c0_7 = arith.constant 0 : index
    %8 = vector.load %arg7[%c0_6, %c0_7] : memref<32x64xf32, #tpu.memory_space<vmem>>, vector<32x64xf32>
    tpu.vector_store %arg7[%c0_6, %c0_7], %7 {strides = array<i32>} : memref<32x64xf32, #tpu.memory_space<vmem>>, vector<32x64xf32>,
    %c0_i32_8 = arith.constant 0 : i32
    %9 = arith.cmpi eq, %arg2, %c0_i32_8 : i32
    %10 = arith.extui %9 : i1 to i32
    %c0_i32_9 = arith.constant 0 : i32
    %11 = arith.cmpi ne, %10, %c0_i32_9 : i32
    scf.if %11 {
      %c0_10 = arith.constant 0 : index
      %c0_11 = arith.constant 0 : index
      %12 = vector.load %arg7[%c0_10, %c0_11] : memref<32x64xf32, #tpu.memory_space<vmem>>, vector<32x64xf32>
      %c0_12 = arith.constant 0 : index
      %c0_13 = arith.constant 0 : index
      %13 = vector.load %arg5[%c0_12, %c0_13] : memref<1x64xf32, #tpu.memory_space<vmem>>, vector<1x64xf32>
      %14 = vector.broadcast %13 : vector<1x64xf32> to vector<32x64xf32>
      %15 = arith.addf %12, %14 : vector<32x64xf32>
      %c0_14 = arith.constant 0 : index
      %c0_15 = arith.constant 0 : index
      %16 = vector.load %arg6[%c0_14, %c0_15] : memref<32x64xf32, #tpu.memory_space<vmem>>, vector<32x64xf32>
      tpu.vector_store %arg6[%c0_14, %c0_15], %15 {strides = array<i32>} : memref<32x64xf32, #tpu.memory_space<vmem>>, vector<32x64xf32>,
    } else {
    }
    return
  }
  func.func @transform_0(%arg0: i32, %arg1: i32, %arg2: i32) -> (i32, i32) {
    %c0_i32 = arith.constant 0 : i32
    return %arg0, %arg2 : i32, i32
  }
  func.func @transform_1(%arg0: i32, %arg1: i32, %arg2: i32) -> (i32, i32) {
    %c0_i32 = arith.constant 0 : i32
    return %arg2, %arg1 : i32, i32
  }
  func.func @transform_2(%arg0: i32, %arg1: i32, %arg2: i32) -> (i32, i32) {
    %c0_i32 = arith.constant 0 : i32
    %c0_i32_0 = arith.constant 0 : i32
    return %c0_i32, %arg1 : i32, i32
  }
  func.func @transform_3(%arg0: i32, %arg1: i32, %arg2: i32) -> (i32, i32) {
    %c0_i32 = arith.constant 0 : i32
    return %arg0, %arg1 : i32, i32
  }
}

module attributes {stable_mosaic.version = 11 : i64} {
  func.func @_attention_kernel(%arg0: i32, %arg1: memref<1x4x9x8xf32, #tpu.memory_space<vmem>>, %arg2: memref<1x4x16x8xf32, #tpu.memory_space<vmem>>, %arg3: memref<1x4x16x8xf32, #tpu.memory_space<vmem>>, %arg4: memref<1x4x9x8xf32, #tpu.memory_space<vmem>>) attributes {dimension_semantics = [#tpu.dimension_semantics<parallel>], iteration_bounds = array<i64: 2>, scalar_prefetch = 0 : i64, scratch_operands = 0 : i64, tpu.core_type = #tpu.core_type<tc>, window_params = [{transform_indices = @transform_0, window_bounds = array<i64: 1, 4, 9, 8>}, {transform_indices = @transform_1, window_bounds = array<i64: 1, 4, 16, 8>}, {transform_indices = @transform_2, window_bounds = array<i64: 1, 4, 16, 8>}, {transform_indices = @transform_3, window_bounds = array<i64: 1, 4, 9, 8>}]} {
    %c0 = arith.constant 0 : index
    %c0_0 = arith.constant 0 : index
    %c0_1 = arith.constant 0 : index
    %c0_2 = arith.constant 0 : index
    %0 = vector.load %arg1[%c0, %c0_0, %c0_1, %c0_2] : memref<1x4x9x8xf32, #tpu.memory_space<vmem>>, vector<1x4x9x8xf32>
    %1 = vector.shape_cast %0 : vector<1x4x9x8xf32> to vector<4x9x8xf32>
    %c0_3 = arith.constant 0 : index
    %c0_4 = arith.constant 0 : index
    %c0_5 = arith.constant 0 : index
    %c0_6 = arith.constant 0 : index
    %2 = vector.load %arg2[%c0_3, %c0_4, %c0_5, %c0_6] : memref<1x4x16x8xf32, #tpu.memory_space<vmem>>, vector<1x4x16x8xf32>
    %3 = vector.shape_cast %2 : vector<1x4x16x8xf32> to vector<4x16x8xf32>
    %c0_7 = arith.constant 0 : index
    %c0_8 = arith.constant 0 : index
    %c0_9 = arith.constant 0 : index
    %c0_10 = arith.constant 0 : index
    %4 = vector.load %arg3[%c0_7, %c0_8, %c0_9, %c0_10] : memref<1x4x16x8xf32, #tpu.memory_space<vmem>>, vector<1x4x16x8xf32>
    %5 = vector.shape_cast %4 : vector<1x4x16x8xf32> to vector<4x16x8xf32>
    "tpu.trace_start"() <{level = 10 : i32, message = "hqd,hkd->hqk"}> : () -> ()
    %cst = arith.constant dense<0.000000e+00> : vector<4x9x16xf32>
    %6 = tpu.matmul %1, %3, %cst {dimension_numbers = #tpu.dot_dimension_numbers<[2], [2], [1], [1], [0, 0, 0, 1, 1, 1], [0], [0]>} : vector<4x9x8xf32>, vector<4x16x8xf32>, vector<4x9x16xf32> -> vector<4x9x16xf32>
    "tpu.trace_stop"() : () -> ()
    %cst_11 = arith.constant 0.353553385 : f32
    %7 = vector.broadcast %cst_11 : f32 to vector<4x9x16xf32>
    %8 = arith.mulf %6, %7 : vector<4x9x16xf32>
    %cst_12 = arith.constant dense<0xFF800000> : vector<4x9xf32>
    %9 = vector.multi_reduction <maximumf>, %8, %cst_12 [2] : vector<4x9x16xf32> to vector<4x9xf32>
    %10 = vector.shape_cast %9 : vector<4x9xf32> to vector<4x9x1xf32>
    %11 = vector.broadcast %10 : vector<4x9x1xf32> to vector<4x9x16xf32>
    %12 = arith.subf %8, %11 : vector<4x9x16xf32>
    %13 = math.exp %12 : vector<4x9x16xf32>
    %cst_13 = arith.constant dense<0.000000e+00> : vector<4x9xf32>
    %14 = vector.multi_reduction <add>, %13, %cst_13 [2] : vector<4x9x16xf32> to vector<4x9xf32>
    %15 = vector.shape_cast %14 : vector<4x9xf32> to vector<4x9x1xf32>
    %16 = tpu.reciprocal %15 {approx = true} : vector<4x9x1xf32> -> vector<4x9x1xf32>
    %17 = vector.broadcast %16 : vector<4x9x1xf32> to vector<4x9x16xf32>
    %18 = arith.mulf %13, %17 : vector<4x9x16xf32>
    "tpu.trace_start"() <{level = 10 : i32, message = "hqk,hkd->hqd"}> : () -> ()
    %cst_14 = arith.constant dense<0.000000e+00> : vector<4x9x8xf32>
    %19 = tpu.matmul %18, %5, %cst_14 {dimension_numbers = #tpu.dot_dimension_numbers<[2], [1], [1], [2], [0, 0, 0, 1, 1, 2], [0], [0]>} : vector<4x9x16xf32>, vector<4x16x8xf32>, vector<4x9x8xf32> -> vector<4x9x8xf32>
    "tpu.trace_stop"() : () -> ()
    %20 = vector.shape_cast %19 : vector<4x9x8xf32> to vector<1x4x9x8xf32>
    %c0_15 = arith.constant 0 : index
    %c0_16 = arith.constant 0 : index
    %c0_17 = arith.constant 0 : index
    %c0_18 = arith.constant 0 : index
    %21 = vector.load %arg4[%c0_15, %c0_16, %c0_17, %c0_18] : memref<1x4x9x8xf32, #tpu.memory_space<vmem>>, vector<1x4x9x8xf32>
    tpu.vector_store %arg4[%c0_15, %c0_16, %c0_17, %c0_18], %20 {strides = array<i32>} : memref<1x4x9x8xf32, #tpu.memory_space<vmem>>, vector<1x4x9x8xf32>,
    return
  }
  func.func @transform_0(%arg0: i32) -> (i32, i32, i32, i32) {
    %c0_i32 = arith.constant 0 : i32
    %c0_i32_0 = arith.constant 0 : i32
    %c0_i32_1 = arith.constant 0 : i32
    %c0_i32_2 = arith.constant 0 : i32
    return %arg0, %c0_i32, %c0_i32_0, %c0_i32_1 : i32, i32, i32, i32
  }
  func.func @transform_1(%arg0: i32) -> (i32, i32, i32, i32) {
    %c0_i32 = arith.constant 0 : i32
    %c0_i32_0 = arith.constant 0 : i32
    %c0_i32_1 = arith.constant 0 : i32
    %c0_i32_2 = arith.constant 0 : i32
    return %arg0, %c0_i32, %c0_i32_0, %c0_i32_1 : i32, i32, i32, i32
  }
  func.func @transform_2(%arg0: i32) -> (i32, i32, i32, i32) {
    %c0_i32 = arith.constant 0 : i32
    %c0_i32_0 = arith.constant 0 : i32
    %c0_i32_1 = arith.constant 0 : i32
    %c0_i32_2 = arith.constant 0 : i32
    return %arg0, %c0_i32, %c0_i32_0, %c0_i32_1 : i32, i32, i32, i32
  }
  func.func @transform_3(%arg0: i32) -> (i32, i32, i32, i32) {
    %c0_i32 = arith.constant 0 : i32
    %c0_i32_0 = arith.constant 0 : i32
    %c0_i32_1 = arith.constant 0 : i32
    %c0_i32_2 = arith.constant 0 : i32
    return %arg0, %c0_i32, %c0_i32_0, %c0_i32_1 : i32, i32, i32, i32
  }
}

module attributes {stable_mosaic.version = 11 : i64} {
  func.func @_linear_kernel(%arg0: i32, %arg1: i32, %arg2: i32, %arg3: memref<18x32xf32, #tpu.memory_space<vmem>>, %arg4: memref<32x64xf32, #tpu.memory_space<vmem>>, %arg5: memref<1x64xf32, #tpu.memory_space<vmem>>, %arg6: memref<18x64xf32, #tpu.memory_space<vmem>>, %arg7: memref<18x64xf32, #tpu.memory_space<vmem>>) attributes {dimension_semantics = [#tpu.dimension_semantics<parallel>, #tpu.dimension_semantics<parallel>, #tpu.dimension_semantics<arbitrary>], iteration_bounds = array<i64: 1, 1, 1>, scalar_prefetch = 0 : i64, scratch_operands = 1 : i64, tpu.core_type = #tpu.core_type<tc>, window_params = [{transform_indices = @transform_0, window_bounds = array<i64: 18, 32>}, {transform_indices = @transform_1, window_bounds = array<i64: 32, 64>}, {transform_indices = @transform_2, window_bounds = array<i64: 1, 64>}, {transform_indices = @transform_3, window_bounds = array<i64: 18, 64>}]} {
    %c0_i32 = arith.constant 0 : i32
    %0 = arith.cmpi eq, %arg2, %c0_i32 : i32
    %1 = arith.extui %0 : i1 to i32
    %c0_i32_0 = arith.constant 0 : i32
    %2 = arith.cmpi ne, %1, %c0_i32_0 : i32
    scf.if %2 {
      %cst_10 = arith.constant 0.000000e+00 : f32
      %12 = vector.broadcast %cst_10 : f32 to vector<18x64xf32>
      %c0_11 = arith.constant 0 : index
      %c0_12 = arith.constant 0 : index
      %13 = vector.load %arg7[%c0_11, %c0_12] : memref<18x64xf32, #tpu.memory_space<vmem>>, vector<18x64xf32>
      tpu.vector_store %arg7[%c0_11, %c0_12], %12 {strides = array<i32>} : memref<18x64xf32, #tpu.memory_space<vmem>>, vector<18x64xf32>,
    } else {
    }
    %c0 = arith.constant 0 : index
    %c0_1 = arith.constant 0 : index
    %3 = vector.load %arg7[%c0, %c0_1] : memref<18x64xf32, #tpu.memory_space<vmem>>, vector<18x64xf32>
    %c0_2 = arith.constant 0 : index
    %c0_3 = arith.constant 0 : index
    %4 = vector.load %arg3[%c0_2, %c0_3] : memref<18x32xf32, #tpu.memory_space<vmem>>, vector<18x32xf32>
    %c0_4 = arith.constant 0 : index
    %c0_5 = arith.constant 0 : index
    %5 = vector.load %arg4[%c0_4, %c0_5] : memref<32x64xf32, #tpu.memory_space<vmem>>, vector<32x64xf32>
    %cst = arith.constant dense<0.000000e+00> : vector<18x64xf32>
    %6 = tpu.matmul %4, %5, %cst {dimension_numbers = #tpu.dot_dimension_numbers<[1], [0], [0], [1], [0, 0, 1, 1], [], []>} : vector<18x32xf32>, vector<32x64xf32>, vector<18x64xf32> -> vector<18x64xf32>
    %7 = arith.addf %3, %6 : vector<18x64xf32>
    %c0_6 = arith.constant 0 : index
    %c0_7 = arith.constant 0 : index
    %8 = vector.load %arg7[%c0_6, %c0_7] : memref<18x64xf32, #tpu.memory_space<vmem>>, vector<18x64xf32>
    tpu.vector_store %arg7[%c0_6, %c0_7], %7 {strides = array<i32>} : memref<18x64xf32, #tpu.memory_space<vmem>>, vector<18x64xf32>,
    %c0_i32_8 = arith.constant 0 : i32
    %9 = arith.cmpi eq, %arg2, %c0_i32_8 : i32
    %10 = arith.extui %9 : i1 to i32
    %c0_i32_9 = arith.constant 0 : i32
    %11 = arith.cmpi ne, %10, %c0_i32_9 : i32
    scf.if %11 {
      %c0_10 = arith.constant 0 : index
      %c0_11 = arith.constant 0 : index
      %12 = vector.load %arg7[%c0_10, %c0_11] : memref<18x64xf32, #tpu.memory_space<vmem>>, vector<18x64xf32>
      %c0_12 = arith.constant 0 : index
      %c0_13 = arith.constant 0 : index
      %13 = vector.load %arg5[%c0_12, %c0_13] : memref<1x64xf32, #tpu.memory_space<vmem>>, vector<1x64xf32>
      %14 = vector.broadcast %13 : vector<1x64xf32> to vector<18x64xf32>
      %15 = arith.addf %12, %14 : vector<18x64xf32>
      %cst_14 = arith.constant 0.707106769 : f32
      %16 = vector.broadcast %cst_14 : f32 to vector<18x64xf32>
      %17 = arith.mulf %15, %16 : vector<18x64xf32>
      %18 = math.absf %17 : vector<18x64xf32>
      %cst_15 = arith.constant 0.327591091 : f32
      %19 = vector.broadcast %cst_15 : f32 to vector<18x64xf32>
      %20 = arith.mulf %19, %18 : vector<18x64xf32>
      %cst_16 = arith.constant 1.000000e+00 : f32
      %21 = vector.broadcast %cst_16 : f32 to vector<18x64xf32>
      %22 = arith.addf %21, %20 : vector<18x64xf32>
      %cst_17 = arith.constant 1.000000e+00 : f32
      %23 = vector.broadcast %cst_17 : f32 to vector<18x64xf32>
      %24 = arith.divf %23, %22 : vector<18x64xf32>
      %cst_18 = arith.constant 1.06140542 : f32
      %25 = vector.broadcast %cst_18 : f32 to vector<18x64xf32>
      %26 = arith.mulf %24, %25 : vector<18x64xf32>
      %cst_19 = arith.constant -1.45315206 : f32
      %27 = vector.broadcast %cst_19 : f32 to vector<18x64xf32>
      %28 = arith.addf %27, %26 : vector<18x64xf32>
      %29 = arith.mulf %24, %28 : vector<18x64xf32>
      %cst_20 = arith.constant 1.42141378 : f32
      %30 = vector.broadcast %cst_20 : f32 to vector<18x64xf32>
      %31 = arith.addf %30, %29 : vector<18x64xf32>
      %32 = arith.mulf %24, %31 : vector<18x64xf32>
      %cst_21 = arith.constant -0.284496725 : f32
      %33 = vector.broadcast %cst_21 : f32 to vector<18x64xf32>
      %34 = arith.addf %33, %32 : vector<18x64xf32>
      %35 = arith.mulf %24, %34 : vector<18x64xf32>
      %cst_22 = arith.constant 0.254829586 : f32
      %36 = vector.broadcast %cst_22 : f32 to vector<18x64xf32>
      %37 = arith.addf %36, %35 : vector<18x64xf32>
      %38 = arith.mulf %24, %37 : vector<18x64xf32>
      %cst_23 = arith.constant 0.000000e+00 : f32
      %39 = vector.broadcast %cst_23 : f32 to vector<18x64xf32>
      %40 = arith.subf %39, %18 : vector<18x64xf32>
      %41 = arith.mulf %40, %18 : vector<18x64xf32>
      %42 = math.exp %41 : vector<18x64xf32>
      %43 = arith.mulf %38, %42 : vector<18x64xf32>
      %cst_24 = arith.constant 1.000000e+00 : f32
      %44 = vector.broadcast %cst_24 : f32 to vector<18x64xf32>
      %45 = arith.subf %44, %43 : vector<18x64xf32>
      %cst_25 = arith.constant 0.000000e+00 : f32
      %46 = vector.broadcast %cst_25 : f32 to vector<18x64xf32>
      %47 = arith.cmpf oge, %17, %46 : vector<18x64xf32>
      %cst_26 = arith.constant 0.000000e+00 : f32
      %48 = vector.broadcast %cst_26 : f32 to vector<18x64xf32>
      %49 = arith.subf %48, %45 : vector<18x64xf32>
      %50 = arith.select %47, %45, %49 : vector<18x64xi1>, vector<18x64xf32>
      %cst_27 = arith.constant 5.000000e-01 : f32
      %51 = vector.broadcast %cst_27 : f32 to vector<18x64xf32>
      %52 = arith.mulf %51, %15 : vector<18x64xf32>
      %cst_28 = arith.constant 1.000000e+00 : f32
      %53 = vector.broadcast %cst_28 : f32 to vector<18x64xf32>
      %54 = arith.addf %53, %50 : vector<18x64xf32>
      %55 = arith.mulf %52, %54 : vector<18x64xf32>
      %c0_29 = arith.constant 0 : index
      %c0_30 = arith.constant 0 : index
      %56 = vector.load %arg6[%c0_29, %c0_30] : memref<18x64xf32, #tpu.memory_space<vmem>>, vector<18x64xf32>
      tpu.vector_store %arg6[%c0_29, %c0_30], %55 {strides = array<i32>} : memref<18x64xf32, #tpu.memory_space<vmem>>, vector<18x64xf32>,
    } else {
    }
    return
  }
  func.func @transform_0(%arg0: i32, %arg1: i32, %arg2: i32) -> (i32, i32) {
    %c0_i32 = arith.constant 0 : i32
    return %arg0, %arg2 : i32, i32
  }
  func.func @transform_1(%arg0: i32, %arg1: i32, %arg2: i32) -> (i32, i32) {
    %c0_i32 = arith.constant 0 : i32
    return %arg2, %arg1 : i32, i32
  }
  func.func @transform_2(%arg0: i32, %arg1: i32, %arg2: i32) -> (i32, i32) {
    %c0_i32 = arith.constant 0 : i32
    %c0_i32_0 = arith.constant 0 : i32
    return %c0_i32, %arg1 : i32, i32
  }
  func.func @transform_3(%arg0: i32, %arg1: i32, %arg2: i32) -> (i32, i32) {
    %c0_i32 = arith.constant 0 : i32
    return %arg0, %arg1 : i32, i32
  }
}

module attributes {stable_mosaic.version = 11 : i64} {
  func.func @_linear_ln_kernel(%arg0: i32, %arg1: i32, %arg2: memref<18x64xf32, #tpu.memory_space<vmem>>, %arg3: memref<64x32xf32, #tpu.memory_space<vmem>>, %arg4: memref<1x32xf32, #tpu.memory_space<vmem>>, %arg5: memref<18x32xf32, #tpu.memory_space<vmem>>, %arg6: memref<1x32xf32, #tpu.memory_space<vmem>>, %arg7: memref<1x32xf32, #tpu.memory_space<vmem>>, %arg8: memref<18x32xf32, #tpu.memory_space<vmem>>, %arg9: memref<18x32xf32, #tpu.memory_space<vmem>>) attributes {dimension_semantics = [#tpu.dimension_semantics<parallel>, #tpu.dimension_semantics<arbitrary>], iteration_bounds = array<i64: 1, 1>, scalar_prefetch = 0 : i64, scratch_operands = 1 : i64, tpu.core_type = #tpu.core_type<tc>, window_params = [{transform_indices = @transform_0, window_bounds = array<i64: 18, 64>}, {transform_indices = @transform_1, window_bounds = array<i64: 64, 32>}, {pipeline_mode = #tpu.pipeline_mode<synchronous>, transform_indices = @transform_2, window_bounds = array<i64: 1, 32>}, {transform_indices = @transform_3, window_bounds = array<i64: 18, 32>}, {pipeline_mode = #tpu.pipeline_mode<synchronous>, transform_indices = @transform_4, window_bounds = array<i64: 1, 32>}, {pipeline_mode = #tpu.pipeline_mode<synchronous>, transform_indices = @transform_5, window_bounds = array<i64: 1, 32>}, {transform_indices = @transform_6, window_bounds = array<i64: 18, 32>}]} {
    %c0_i32 = arith.constant 0 : i32
    %0 = arith.cmpi eq, %arg1, %c0_i32 : i32
    %1 = arith.extui %0 : i1 to i32
    %c0_i32_0 = arith.constant 0 : i32
    %2 = arith.cmpi ne, %1, %c0_i32_0 : i32
    scf.if %2 {
      %cst_10 = arith.constant 0.000000e+00 : f32
      %12 = vector.broadcast %cst_10 : f32 to vector<18x32xf32>
      %c0_11 = arith.constant 0 : index
      %c0_12 = arith.constant 0 : index
      %13 = vector.load %arg9[%c0_11, %c0_12] : memref<18x32xf32, #tpu.memory_space<vmem>>, vector<18x32xf32>
      tpu.vector_store %arg9[%c0_11, %c0_12], %12 {strides = array<i32>} : memref<18x32xf32, #tpu.memory_space<vmem>>, vector<18x32xf32>,
    } else {
    }
    %c0 = arith.constant 0 : index
    %c0_1 = arith.constant 0 : index
    %3 = vector.load %arg9[%c0, %c0_1] : memref<18x32xf32, #tpu.memory_space<vmem>>, vector<18x32xf32>
    %c0_2 = arith.constant 0 : index
    %c0_3 = arith.constant 0 : index
    %4 = vector.load %arg2[%c0_2, %c0_3] : memref<18x64xf32, #tpu.memory_space<vmem>>, vector<18x64xf32>
    %c0_4 = arith.constant 0 : index
    %c0_5 = arith.constant 0 : index
    %5 = vector.load %arg3[%c0_4, %c0_5] : memref<64x32xf32, #tpu.memory_space<vmem>>, vector<64x32xf32>
    %cst = arith.constant dense<0.000000e+00> : vector<18x32xf32>
    %6 = tpu.matmul %4, %5, %cst {dimension_numbers = #tpu.dot_dimension_numbers<[1], [0], [0], [1], [0, 0, 1, 1], [], []>} : vector<18x64xf32>, vector<64x32xf32>, vector<18x32xf32> -> vector<18x32xf32>
    %7 = arith.addf %3, %6 : vector<18x32xf32>
    %c0_6 = arith.constant 0 : index
    %c0_7 = arith.constant 0 : index
    %8 = vector.load %arg9[%c0_6, %c0_7] : memref<18x32xf32, #tpu.memory_space<vmem>>, vector<18x32xf32>
    tpu.vector_store %arg9[%c0_6, %c0_7], %7 {strides = array<i32>} : memref<18x32xf32, #tpu.memory_space<vmem>>, vector<18x32xf32>,
    %c0_i32_8 = arith.constant 0 : i32
    %9 = arith.cmpi eq, %arg1, %c0_i32_8 : i32
    %10 = arith.extui %9 : i1 to i32
    %c0_i32_9 = arith.constant 0 : i32
    %11 = arith.cmpi ne, %10, %c0_i32_9 : i32
    scf.if %11 {
      %c0_10 = arith.constant 0 : index
      %c0_11 = arith.constant 0 : index
      %12 = vector.load %arg9[%c0_10, %c0_11] : memref<18x32xf32, #tpu.memory_space<vmem>>, vector<18x32xf32>
      %c0_12 = arith.constant 0 : index
      %c0_13 = arith.constant 0 : index
      %13 = vector.load %arg4[%c0_12, %c0_13] : memref<1x32xf32, #tpu.memory_space<vmem>>, vector<1x32xf32>
      %14 = vector.broadcast %13 : vector<1x32xf32> to vector<18x32xf32>
      %15 = arith.addf %12, %14 : vector<18x32xf32>
      %c0_14 = arith.constant 0 : index
      %c0_15 = arith.constant 0 : index
      %16 = vector.load %arg5[%c0_14, %c0_15] : memref<18x32xf32, #tpu.memory_space<vmem>>, vector<18x32xf32>
      %17 = arith.addf %15, %16 : vector<18x32xf32>
      %c0_16 = arith.constant 0 : index
      %c0_17 = arith.constant 0 : index
      %18 = vector.load %arg6[%c0_16, %c0_17] : memref<1x32xf32, #tpu.memory_space<vmem>>, vector<1x32xf32>
      %c0_18 = arith.constant 0 : index
      %c0_19 = arith.constant 0 : index
      %19 = vector.load %arg7[%c0_18, %c0_19] : memref<1x32xf32, #tpu.memory_space<vmem>>, vector<1x32xf32>
      %cst_20 = arith.constant dense<0.000000e+00> : vector<18xf32>
      %20 = vector.multi_reduction <add>, %17, %cst_20 [1] : vector<18x32xf32> to vector<18xf32>
      %21 = vector.shape_cast %20 : vector<18xf32> to vector<18x1xf32>
      %cst_21 = arith.constant 3.200000e+01 : f32
      %22 = vector.broadcast %cst_21 : f32 to vector<18x1xf32>
      %23 = arith.divf %21, %22 : vector<18x1xf32>
      %24 = vector.broadcast %23 : vector<18x1xf32> to vector<18x32xf32>
      %25 = arith.subf %17, %24 : vector<18x32xf32>
      %26 = arith.mulf %25, %25 : vector<18x32xf32>
      %cst_22 = arith.constant dense<0.000000e+00> : vector<18xf32>
      %27 = vector.multi_reduction <add>, %26, %cst_22 [1] : vector<18x32xf32> to vector<18xf32>
      %28 = vector.shape_cast %27 : vector<18xf32> to vector<18x1xf32>
      %cst_23 = arith.constant 3.200000e+01 : f32
      %29 = vector.broadcast %cst_23 : f32 to vector<18x1xf32>
      %30 = arith.divf %28, %29 : vector<18x1xf32>
      %31 = vector.broadcast %23 : vector<18x1xf32> to vector<18x32xf32>
      %32 = arith.subf %17, %31 : vector<18x32xf32>
      %cst_24 = arith.constant 9.99999996E-13 : f32
      %33 = vector.broadcast %cst_24 : f32 to vector<18x1xf32>
      %34 = arith.addf %30, %33 : vector<18x1xf32>
      %35 = math.rsqrt %34 : vector<18x1xf32>
      %36 = vector.broadcast %35 : vector<18x1xf32> to vector<18x32xf32>
      %37 = arith.mulf %32, %36 : vector<18x32xf32>
      %38 = vector.broadcast %18 : vector<1x32xf32> to vector<18x32xf32>
      %39 = arith.mulf %37, %38 : vector<18x32xf32>
      %40 = vector.broadcast %19 : vector<1x32xf32> to vector<18x32xf32>
      %41 = arith.addf %39, %40 : vector<18x32xf32>
      %c0_25 = arith.constant 0 : index
      %c0_26 = arith.constant 0 : index
      %42 = vector.load %arg8[%c0_25, %c0_26] : memref<18x32xf32, #tpu.memory_space<vmem>>, vector<18x32xf32>
      tpu.vector_store %arg8[%c0_25, %c0_26], %41 {strides = array<i32>} : memref<18x32xf32, #tpu.memory_space<vmem>>, vector<18x32xf32>,
    } else {
    }
    return
  }
  func.func @transform_0(%arg0: i32, %arg1: i32) -> (i32, i32) {
    %c0_i32 = arith.constant 0 : i32
    return %arg0, %arg1 : i32, i32
  }
  func.func @transform_1(%arg0: i32, %arg1: i32) -> (i32, i32) {
    %c0_i32 = arith.constant 0 : i32
    %c0_i32_0 = arith.constant 0 : i32
    return %arg1, %c0_i32 : i32, i32
  }
  func.func @transform_2(%arg0: i32, %arg1: i32) -> (i32, i32) {
    %c0_i32 = arith.constant 0 : i32
    %c0_i32_0 = arith.constant 0 : i32
    %c0_i32_1 = arith.constant 0 : i32
    return %c0_i32, %c0_i32_0 : i32, i32
  }
  func.func @transform_3(%arg0: i32, %arg1: i32) -> (i32, i32) {
    %c0_i32 = arith.constant 0 : i32
    %c0_i32_0 = arith.constant 0 : i32
    return %arg0, %c0_i32 : i32, i32
  }
  func.func @transform_4(%arg0: i32, %arg1: i32) -> (i32, i32) {
    %c0_i32 = arith.constant 0 : i32
    %c0_i32_0 = arith.constant 0 : i32
    %c0_i32_1 = arith.constant 0 : i32
    return %c0_i32, %c0_i32_0 : i32, i32
  }
  func.func @transform_5(%arg0: i32, %arg1: i32) -> (i32, i32) {
    %c0_i32 = arith.constant 0 : i32
    %c0_i32_0 = arith.constant 0 : i32
    %c0_i32_1 = arith.constant 0 : i32
    return %c0_i32, %c0_i32_0 : i32, i32
  }
  func.func @transform_6(%arg0: i32, %arg1: i32) -> (i32, i32) {
    %c0_i32 = arith.constant 0 : i32
    %c0_i32_0 = arith.constant 0 : i32
    return %arg0, %c0_i32 : i32, i32
  }
}

module attributes {stable_mosaic.version = 11 : i64} {
  func.func @_linear_ln_kernel(%arg0: i32, %arg1: i32, %arg2: memref<18x32xf32, #tpu.memory_space<vmem>>, %arg3: memref<32x32xf32, #tpu.memory_space<vmem>>, %arg4: memref<1x32xf32, #tpu.memory_space<vmem>>, %arg5: memref<1x32xf32, #tpu.memory_space<vmem>>, %arg6: memref<1x32xf32, #tpu.memory_space<vmem>>, %arg7: memref<18x32xf32, #tpu.memory_space<vmem>>, %arg8: memref<18x32xf32, #tpu.memory_space<vmem>>) attributes {dimension_semantics = [#tpu.dimension_semantics<parallel>, #tpu.dimension_semantics<arbitrary>], iteration_bounds = array<i64: 1, 1>, scalar_prefetch = 0 : i64, scratch_operands = 1 : i64, tpu.core_type = #tpu.core_type<tc>, window_params = [{transform_indices = @transform_0, window_bounds = array<i64: 18, 32>}, {transform_indices = @transform_1, window_bounds = array<i64: 32, 32>}, {pipeline_mode = #tpu.pipeline_mode<synchronous>, transform_indices = @transform_2, window_bounds = array<i64: 1, 32>}, {pipeline_mode = #tpu.pipeline_mode<synchronous>, transform_indices = @transform_3, window_bounds = array<i64: 1, 32>}, {pipeline_mode = #tpu.pipeline_mode<synchronous>, transform_indices = @transform_4, window_bounds = array<i64: 1, 32>}, {transform_indices = @transform_5, window_bounds = array<i64: 18, 32>}]} {
    %c0_i32 = arith.constant 0 : i32
    %0 = arith.cmpi eq, %arg1, %c0_i32 : i32
    %1 = arith.extui %0 : i1 to i32
    %c0_i32_0 = arith.constant 0 : i32
    %2 = arith.cmpi ne, %1, %c0_i32_0 : i32
    scf.if %2 {
      %cst_10 = arith.constant 0.000000e+00 : f32
      %12 = vector.broadcast %cst_10 : f32 to vector<18x32xf32>
      %c0_11 = arith.constant 0 : index
      %c0_12 = arith.constant 0 : index
      %13 = vector.load %arg8[%c0_11, %c0_12] : memref<18x32xf32, #tpu.memory_space<vmem>>, vector<18x32xf32>
      tpu.vector_store %arg8[%c0_11, %c0_12], %12 {strides = array<i32>} : memref<18x32xf32, #tpu.memory_space<vmem>>, vector<18x32xf32>,
    } else {
    }
    %c0 = arith.constant 0 : index
    %c0_1 = arith.constant 0 : index
    %3 = vector.load %arg8[%c0, %c0_1] : memref<18x32xf32, #tpu.memory_space<vmem>>, vector<18x32xf32>
    %c0_2 = arith.constant 0 : index
    %c0_3 = arith.constant 0 : index
    %4 = vector.load %arg2[%c0_2, %c0_3] : memref<18x32xf32, #tpu.memory_space<vmem>>, vector<18x32xf32>
    %c0_4 = arith.constant 0 : index
    %c0_5 = arith.constant 0 : index
    %5 = vector.load %arg3[%c0_4, %c0_5] : memref<32x32xf32, #tpu.memory_space<vmem>>, vector<32x32xf32>
    %cst = arith.constant dense<0.000000e+00> : vector<18x32xf32>
    %6 = tpu.matmul %4, %5, %cst {dimension_numbers = #tpu.dot_dimension_numbers<[1], [0], [0], [1], [0, 0, 1, 1], [], []>} : vector<18x32xf32>, vector<32x32xf32>, vector<18x32xf32> -> vector<18x32xf32>
    %7 = arith.addf %3, %6 : vector<18x32xf32>
    %c0_6 = arith.constant 0 : index
    %c0_7 = arith.constant 0 : index
    %8 = vector.load %arg8[%c0_6, %c0_7] : memref<18x32xf32, #tpu.memory_space<vmem>>, vector<18x32xf32>
    tpu.vector_store %arg8[%c0_6, %c0_7], %7 {strides = array<i32>} : memref<18x32xf32, #tpu.memory_space<vmem>>, vector<18x32xf32>,
    %c0_i32_8 = arith.constant 0 : i32
    %9 = arith.cmpi eq, %arg1, %c0_i32_8 : i32
    %10 = arith.extui %9 : i1 to i32
    %c0_i32_9 = arith.constant 0 : i32
    %11 = arith.cmpi ne, %10, %c0_i32_9 : i32
    scf.if %11 {
      %c0_10 = arith.constant 0 : index
      %c0_11 = arith.constant 0 : index
      %12 = vector.load %arg8[%c0_10, %c0_11] : memref<18x32xf32, #tpu.memory_space<vmem>>, vector<18x32xf32>
      %c0_12 = arith.constant 0 : index
      %c0_13 = arith.constant 0 : index
      %13 = vector.load %arg4[%c0_12, %c0_13] : memref<1x32xf32, #tpu.memory_space<vmem>>, vector<1x32xf32>
      %14 = vector.broadcast %13 : vector<1x32xf32> to vector<18x32xf32>
      %15 = arith.addf %12, %14 : vector<18x32xf32>
      %cst_14 = arith.constant 0.707106769 : f32
      %16 = vector.broadcast %cst_14 : f32 to vector<18x32xf32>
      %17 = arith.mulf %15, %16 : vector<18x32xf32>
      %18 = math.absf %17 : vector<18x32xf32>
      %cst_15 = arith.constant 0.327591091 : f32
      %19 = vector.broadcast %cst_15 : f32 to vector<18x32xf32>
      %20 = arith.mulf %19, %18 : vector<18x32xf32>
      %cst_16 = arith.constant 1.000000e+00 : f32
      %21 = vector.broadcast %cst_16 : f32 to vector<18x32xf32>
      %22 = arith.addf %21, %20 : vector<18x32xf32>
      %cst_17 = arith.constant 1.000000e+00 : f32
      %23 = vector.broadcast %cst_17 : f32 to vector<18x32xf32>
      %24 = arith.divf %23, %22 : vector<18x32xf32>
      %cst_18 = arith.constant 1.06140542 : f32
      %25 = vector.broadcast %cst_18 : f32 to vector<18x32xf32>
      %26 = arith.mulf %24, %25 : vector<18x32xf32>
      %cst_19 = arith.constant -1.45315206 : f32
      %27 = vector.broadcast %cst_19 : f32 to vector<18x32xf32>
      %28 = arith.addf %27, %26 : vector<18x32xf32>
      %29 = arith.mulf %24, %28 : vector<18x32xf32>
      %cst_20 = arith.constant 1.42141378 : f32
      %30 = vector.broadcast %cst_20 : f32 to vector<18x32xf32>
      %31 = arith.addf %30, %29 : vector<18x32xf32>
      %32 = arith.mulf %24, %31 : vector<18x32xf32>
      %cst_21 = arith.constant -0.284496725 : f32
      %33 = vector.broadcast %cst_21 : f32 to vector<18x32xf32>
      %34 = arith.addf %33, %32 : vector<18x32xf32>
      %35 = arith.mulf %24, %34 : vector<18x32xf32>
      %cst_22 = arith.constant 0.254829586 : f32
      %36 = vector.broadcast %cst_22 : f32 to vector<18x32xf32>
      %37 = arith.addf %36, %35 : vector<18x32xf32>
      %38 = arith.mulf %24, %37 : vector<18x32xf32>
      %cst_23 = arith.constant 0.000000e+00 : f32
      %39 = vector.broadcast %cst_23 : f32 to vector<18x32xf32>
      %40 = arith.subf %39, %18 : vector<18x32xf32>
      %41 = arith.mulf %40, %18 : vector<18x32xf32>
      %42 = math.exp %41 : vector<18x32xf32>
      %43 = arith.mulf %38, %42 : vector<18x32xf32>
      %cst_24 = arith.constant 1.000000e+00 : f32
      %44 = vector.broadcast %cst_24 : f32 to vector<18x32xf32>
      %45 = arith.subf %44, %43 : vector<18x32xf32>
      %cst_25 = arith.constant 0.000000e+00 : f32
      %46 = vector.broadcast %cst_25 : f32 to vector<18x32xf32>
      %47 = arith.cmpf oge, %17, %46 : vector<18x32xf32>
      %cst_26 = arith.constant 0.000000e+00 : f32
      %48 = vector.broadcast %cst_26 : f32 to vector<18x32xf32>
      %49 = arith.subf %48, %45 : vector<18x32xf32>
      %50 = arith.select %47, %45, %49 : vector<18x32xi1>, vector<18x32xf32>
      %cst_27 = arith.constant 5.000000e-01 : f32
      %51 = vector.broadcast %cst_27 : f32 to vector<18x32xf32>
      %52 = arith.mulf %51, %15 : vector<18x32xf32>
      %cst_28 = arith.constant 1.000000e+00 : f32
      %53 = vector.broadcast %cst_28 : f32 to vector<18x32xf32>
      %54 = arith.addf %53, %50 : vector<18x32xf32>
      %55 = arith.mulf %52, %54 : vector<18x32xf32>
      %c0_29 = arith.constant 0 : index
      %c0_30 = arith.constant 0 : index
      %56 = vector.load %arg5[%c0_29, %c0_30] : memref<1x32xf32, #tpu.memory_space<vmem>>, vector<1x32xf32>
      %c0_31 = arith.constant 0 : index
      %c0_32 = arith.constant 0 : index
      %57 = vector.load %arg6[%c0_31, %c0_32] : memref<1x32xf32, #tpu.memory_space<vmem>>, vector<1x32xf32>
      %cst_33 = arith.constant dense<0.000000e+00> : vector<18xf32>
      %58 = vector.multi_reduction <add>, %55, %cst_33 [1] : vector<18x32xf32> to vector<18xf32>
      %59 = vector.shape_cast %58 : vector<18xf32> to vector<18x1xf32>
      %cst_34 = arith.constant 3.200000e+01 : f32
      %60 = vector.broadcast %cst_34 : f32 to vector<18x1xf32>
      %61 = arith.divf %59, %60 : vector<18x1xf32>
      %62 = vector.broadcast %61 : vector<18x1xf32> to vector<18x32xf32>
      %63 = arith.subf %55, %62 : vector<18x32xf32>
      %64 = arith.mulf %63, %63 : vector<18x32xf32>
      %cst_35 = arith.constant dense<0.000000e+00> : vector<18xf32>
      %65 = vector.multi_reduction <add>, %64, %cst_35 [1] : vector<18x32xf32> to vector<18xf32>
      %66 = vector.shape_cast %65 : vector<18xf32> to vector<18x1xf32>
      %cst_36 = arith.constant 3.200000e+01 : f32
      %67 = vector.broadcast %cst_36 : f32 to vector<18x1xf32>
      %68 = arith.divf %66, %67 : vector<18x1xf32>
      %69 = vector.broadcast %61 : vector<18x1xf32> to vector<18x32xf32>
      %70 = arith.subf %55, %69 : vector<18x32xf32>
      %cst_37 = arith.constant 9.99999996E-13 : f32
      %71 = vector.broadcast %cst_37 : f32 to vector<18x1xf32>
      %72 = arith.addf %68, %71 : vector<18x1xf32>
      %73 = math.rsqrt %72 : vector<18x1xf32>
      %74 = vector.broadcast %73 : vector<18x1xf32> to vector<18x32xf32>
      %75 = arith.mulf %70, %74 : vector<18x32xf32>
      %76 = vector.broadcast %56 : vector<1x32xf32> to vector<18x32xf32>
      %77 = arith.mulf %75, %76 : vector<18x32xf32>
      %78 = vector.broadcast %57 : vector<1x32xf32> to vector<18x32xf32>
      %79 = arith.addf %77, %78 : vector<18x32xf32>
      %c0_38 = arith.constant 0 : index
      %c0_39 = arith.constant 0 : index
      %80 = vector.load %arg7[%c0_38, %c0_39] : memref<18x32xf32, #tpu.memory_space<vmem>>, vector<18x32xf32>
      tpu.vector_store %arg7[%c0_38, %c0_39], %79 {strides = array<i32>} : memref<18x32xf32, #tpu.memory_space<vmem>>, vector<18x32xf32>,
    } else {
    }
    return
  }
  func.func @transform_0(%arg0: i32, %arg1: i32) -> (i32, i32) {
    %c0_i32 = arith.constant 0 : i32
    return %arg0, %arg1 : i32, i32
  }
  func.func @transform_1(%arg0: i32, %arg1: i32) -> (i32, i32) {
    %c0_i32 = arith.constant 0 : i32
    %c0_i32_0 = arith.constant 0 : i32
    return %arg1, %c0_i32 : i32, i32
  }
  func.func @transform_2(%arg0: i32, %arg1: i32) -> (i32, i32) {
    %c0_i32 = arith.constant 0 : i32
    %c0_i32_0 = arith.constant 0 : i32
    %c0_i32_1 = arith.constant 0 : i32
    return %c0_i32, %c0_i32_0 : i32, i32
  }
  func.func @transform_3(%arg0: i32, %arg1: i32) -> (i32, i32) {
    %c0_i32 = arith.constant 0 : i32
    %c0_i32_0 = arith.constant 0 : i32
    %c0_i32_1 = arith.constant 0 : i32
    return %c0_i32, %c0_i32_0 : i32, i32
  }
  func.func @transform_4(%arg0: i32, %arg1: i32) -> (i32, i32) {
    %c0_i32 = arith.constant 0 : i32
    %c0_i32_0 = arith.constant 0 : i32
    %c0_i32_1 = arith.constant 0 : i32
    return %c0_i32, %c0_i32_0 : i32, i32
  }
  func.func @transform_5(%arg0: i32, %arg1: i32) -> (i32, i32) {
    %c0_i32 = arith.constant 0 : i32
    %c0_i32_0 = arith.constant 0 : i32
    return %arg0, %c0_i32 : i32, i32
  }
}

module attributes {stable_mosaic.version = 11 : i64} {
  func.func @_linear_kernel(%arg0: i32, %arg1: i32, %arg2: i32, %arg3: memref<18x32xf32, #tpu.memory_space<vmem>>, %arg4: memref<32x64xf32, #tpu.memory_space<vmem>>, %arg5: memref<1x64xf32, #tpu.memory_space<vmem>>, %arg6: memref<18x64xf32, #tpu.memory_space<vmem>>, %arg7: memref<18x64xf32, #tpu.memory_space<vmem>>) attributes {dimension_semantics = [#tpu.dimension_semantics<parallel>, #tpu.dimension_semantics<parallel>, #tpu.dimension_semantics<arbitrary>], iteration_bounds = array<i64: 1, 1, 1>, scalar_prefetch = 0 : i64, scratch_operands = 1 : i64, tpu.core_type = #tpu.core_type<tc>, window_params = [{transform_indices = @transform_0, window_bounds = array<i64: 18, 32>}, {transform_indices = @transform_1, window_bounds = array<i64: 32, 64>}, {transform_indices = @transform_2, window_bounds = array<i64: 1, 64>}, {transform_indices = @transform_3, window_bounds = array<i64: 18, 64>}]} {
    %c0_i32 = arith.constant 0 : i32
    %0 = arith.cmpi eq, %arg2, %c0_i32 : i32
    %1 = arith.extui %0 : i1 to i32
    %c0_i32_0 = arith.constant 0 : i32
    %2 = arith.cmpi ne, %1, %c0_i32_0 : i32
    scf.if %2 {
      %cst_10 = arith.constant 0.000000e+00 : f32
      %12 = vector.broadcast %cst_10 : f32 to vector<18x64xf32>
      %c0_11 = arith.constant 0 : index
      %c0_12 = arith.constant 0 : index
      %13 = vector.load %arg7[%c0_11, %c0_12] : memref<18x64xf32, #tpu.memory_space<vmem>>, vector<18x64xf32>
      tpu.vector_store %arg7[%c0_11, %c0_12], %12 {strides = array<i32>} : memref<18x64xf32, #tpu.memory_space<vmem>>, vector<18x64xf32>,
    } else {
    }
    %c0 = arith.constant 0 : index
    %c0_1 = arith.constant 0 : index
    %3 = vector.load %arg7[%c0, %c0_1] : memref<18x64xf32, #tpu.memory_space<vmem>>, vector<18x64xf32>
    %c0_2 = arith.constant 0 : index
    %c0_3 = arith.constant 0 : index
    %4 = vector.load %arg3[%c0_2, %c0_3] : memref<18x32xf32, #tpu.memory_space<vmem>>, vector<18x32xf32>
    %c0_4 = arith.constant 0 : index
    %c0_5 = arith.constant 0 : index
    %5 = vector.load %arg4[%c0_4, %c0_5] : memref<32x64xf32, #tpu.memory_space<vmem>>, vector<32x64xf32>
    %cst = arith.constant dense<0.000000e+00> : vector<18x64xf32>
    %6 = tpu.matmul %4, %5, %cst {dimension_numbers = #tpu.dot_dimension_numbers<[1], [0], [0], [1], [0, 0, 1, 1], [], []>} : vector<18x32xf32>, vector<32x64xf32>, vector<18x64xf32> -> vector<18x64xf32>
    %7 = arith.addf %3, %6 : vector<18x64xf32>
    %c0_6 = arith.constant 0 : index
    %c0_7 = arith.constant 0 : index
    %8 = vector.load %arg7[%c0_6, %c0_7] : memref<18x64xf32, #tpu.memory_space<vmem>>, vector<18x64xf32>
    tpu.vector_store %arg7[%c0_6, %c0_7], %7 {strides = array<i32>} : memref<18x64xf32, #tpu.memory_space<vmem>>, vector<18x64xf32>,
    %c0_i32_8 = arith.constant 0 : i32
    %9 = arith.cmpi eq, %arg2, %c0_i32_8 : i32
    %10 = arith.extui %9 : i1 to i32
    %c0_i32_9 = arith.constant 0 : i32
    %11 = arith.cmpi ne, %10, %c0_i32_9 : i32
    scf.if %11 {
      %c0_10 = arith.constant 0 : index
      %c0_11 = arith.constant 0 : index
      %12 = vector.load %arg7[%c0_10, %c0_11] : memref<18x64xf32, #tpu.memory_space<vmem>>, vector<18x64xf32>
      %c0_12 = arith.constant 0 : index
      %c0_13 = arith.constant 0 : index
      %13 = vector.load %arg5[%c0_12, %c0_13] : memref<1x64xf32, #tpu.memory_space<vmem>>, vector<1x64xf32>
      %14 = vector.broadcast %13 : vector<1x64xf32> to vector<18x64xf32>
      %15 = arith.addf %12, %14 : vector<18x64xf32>
      %c0_14 = arith.constant 0 : index
      %c0_15 = arith.constant 0 : index
      %16 = vector.load %arg6[%c0_14, %c0_15] : memref<18x64xf32, #tpu.memory_space<vmem>>, vector<18x64xf32>
      tpu.vector_store %arg6[%c0_14, %c0_15], %15 {strides = array<i32>} : memref<18x64xf32, #tpu.memory_space<vmem>>, vector<18x64xf32>,
    } else {
    }
    return
  }
  func.func @transform_0(%arg0: i32, %arg1: i32, %arg2: i32) -> (i32, i32) {
    %c0_i32 = arith.constant 0 : i32
    return %arg0, %arg2 : i32, i32
  }
  func.func @transform_1(%arg0: i32, %arg1: i32, %arg2: i32) -> (i32, i32) {
    %c0_i32 = arith.constant 0 : i32
    return %arg2, %arg1 : i32, i32
  }
  func.func @transform_2(%arg0: i32, %arg1: i32, %arg2: i32) -> (i32, i32) {
    %c0_i32 = arith.constant 0 : i32
    %c0_i32_0 = arith.constant 0 : i32
    return %c0_i32, %arg1 : i32, i32
  }
  func.func @transform_3(%arg0: i32, %arg1: i32, %arg2: i32) -> (i32, i32) {
    %c0_i32 = arith.constant 0 : i32
    return %arg0, %arg1 : i32, i32
  }
}

</mosaic_0001>

<bundles_post_ra>
// kernel: decoder_forward.22
= control target key start
LH: loop header
LB: loop body
LE: loop exit
PB: predicated region body
PF: predicated region fallthrough
CT: control target
= control target key end

     0   :  { %vm18_vm0 = vcmask 785408   ;;  %v110_v2 = vmov 0.0   ;;  %vm33_vm1 = vcmask 261120   ;;  %vm21_vm2 = vcmask 779264   ;;  %s173_s1 = inlined_call_operand.vmem [shape: f32[32,96], index: 1, kind: input, shape index: {}]   ;;  %s174_s0 = inlined_call_operand.vmem [shape: f32[18,32], index: 0, kind: input, shape index: {}]   ;;  %s175_s2 = inlined_call_operand.vmem [shape: f32[1,96], index: 2, kind: input, shape index: {}]   ;;  %s176_s3 = inlined_call_operand.vmem [shape: f32[18,96], index: 3, kind: output, shape index: {}]  }
   0x1   :  { %v32_v0 = vld [vmem:[%s173_s1 + $0x18] sm:$0xff]  ;;  %v31_v1 = vld [vmem:[%s173_s1 + $0x10] sm:$0xff]  ;;  %19 = vst.msk [vmem:[#allocation2] sm:$0xff] %vm18_vm0, %v110_v2  ;;  %v30_v3 = vld [vmem:[%s173_s1 + $0x8] sm:$0xff] }
   0x2   :  { %101 = vmatpush.msra.mxu2 %v32_v0  ;;  %55 = vmatpush.msra.mxu0 %v32_v0  ;;  %20 = vst.msk [vmem:[#allocation2 + $0x8] sm:$0xff] %vm18_vm0, %v110_v2  ;;  %v29_v4 = vld [vmem:[%s173_s1] sm:$0xff]  ;;  %v28_v5 = vld [vmem:[%s174_s0 + $0x10] sm:$0x3]  ;;  %v27_v7 = vld [vmem:[%s174_s0 + $0x8] sm:$0xff] }
   0x3   :  { %100 = vmatpush.msra.mxu1 %v32_v0  ;;  %v26_v6 = vld [vmem:[%s174_s0] sm:$0xff]  ;;  %22 = vst.msk [vmem:[#allocation2 + $0x10] sm:$0x3] %vm21_vm2, %v110_v2 }
   0x4   :  { %103 = vmatpush.msra.mxu2 %v31_v1  ;;  %56 = vmatpush.msra.mxu0 %v31_v1  ;;  %v109_v17 = vld [vmem:[%s175_s2] ss:$0 sm:$0xff] }
   0x5   :  { %102 = vmatpush.msra.mxu1 %v31_v1 }
   0x6   :  { %105 = vmatpush.msra.mxu2 %v30_v3  ;;  %57 = vmatpush.msra.mxu0 %v30_v3 }
   0x7   :  { %104 = vmatpush.msra.mxu1 %v30_v3 }
   0x8   :  { %107 = vmatpush.msra.mxu2 %v29_v4  ;;  %58 = vmatpush.msra.mxu0 %v29_v4  ;;  %v23_v8 = vld [vmem:[#allocation2] sm:$0xff] }
   0x9   :  { %99 = vmatmul.msk.f32.vlgmr.msra.gmra.mxu2 %vm33_vm1, %v28_v5  ;;  %106 = vmatpush.msra.mxu1 %v29_v4  ;;  %v24_v9 = vld [vmem:[#allocation2 + $0x8] sm:$0xff] }
   0xa   :  { %97 = vmatmul.msk.f32.vlgmr.msra.gmra.mxu0 %vm33_vm1, %v26_v6  ;;  %98 = vmatmul.msk.f32.vlgmr.msra.gmra.mxu1 %vm33_vm1, %v27_v7  ;;  %v25_v14 = vld [vmem:[#allocation2 + $0x10] sm:$0x3] }
  0x87   :  { %v60_v10 = vpop.f32.mrf.mxu0  ;;  %v63_v11 = vpop.f32.mrf.mxu1 }
  0x88   :  { %v69_v12 = vadd.f32 %v60_v10, %v23_v8  ;;  %v70_v13 = vadd.f32 %v63_v11, %v24_v9 }
  0x8a   :  { %73 = vst.msk [vmem:[#allocation2] sm:$0xff] %vm18_vm0, %v69_v12 }
  0x8b   :  { %74 = vst.msk [vmem:[#allocation2 + $0x8] sm:$0xff] %vm18_vm0, %v70_v13 }
  0x8c   :  { %v66_v15 = vpop.f32.mrf.mxu2 }
  0x8d   :  { %v71_v16 = vadd.f32 %v66_v15, %v25_v14 }
  0x8f   :  { %76 = vst.msk [vmem:[#allocation2 + $0x10] sm:$0x3] %vm21_vm2, %v71_v16 }
  0x91   :  { %v80_v18 = vld [vmem:[#allocation2] sm:$0xff] }
  0x92   :  { %v81_v19 = vld [vmem:[#allocation2 + $0x8] sm:$0xff]  ;;  %v87_v20 = vadd.f32 %v109_v17, %v80_v18 }
  0x93   :  { %v88_v21 = vadd.f32 %v109_v17, %v81_v19 }
  0x94   :  { %90 = vst.msk [vmem:[%s176_s3] sm:$0xff] %vm18_vm0, %v87_v20 }
  0x95   :  { %91 = vst.msk [vmem:[%s176_s3 + $0x8] sm:$0xff] %vm18_vm0, %v88_v21 }
  0x96   :  { %v82_v22 = vld [vmem:[#allocation2 + $0x10] sm:$0x3] }
  0x97   :  { %v89_v23 = vadd.f32 %v109_v17, %v82_v22 }
  0x99   :  { %92 = vst.msk [vmem:[%s176_s3 + $0x10] sm:$0x3] %vm21_vm2, %v89_v23 }

// kernel: decoder_forward.21
= control target key start
LH: loop header
LB: loop body
LE: loop exit
PB: predicated region body
PF: predicated region fallthrough
CT: control target
= control target key end

     0   :  { %s593_s18 = smov 0   ;;  %s595_s19 = smov 0   ;;  %s655_s0 = inlined_call_operand.vmem [shape: f32[2,9,32], index: 0, kind: input, shape index: {}]   ;;  %s656_s1 = inlined_call_operand.vmem [shape: f32[1,9,32], index: 1, kind: input, shape index: {}]   ;;  %s657_s2 = inlined_call_operand.vmem [shape: f32[2,1,32], index: 2, kind: input, shape index: {}]   ;;  %s658_s3 = inlined_call_operand.vmem [shape: f32[1,32], index: 3, kind: input, shape index: {}]   ;;  %s659_s4 = inlined_call_operand.vmem [shape: f32[1,32], index: 4, kind: input, shape index: {}]   ;;  %s660_s5 = inlined_call_operand.vmem [shape: f32[2,9,32], index: 5, kind: output, shape index: {}]  }
   0x1   :  { %s597_s20 = smov 0  }
   0x2 LB: > { %s27_s21 = sadd.s32 1, %s556_s19  ;;  %p495_p0 = scmp.ge.s32.totalorder %s560_s20, 1  ;;  %s560_s20 = sphi %s597_s20, %s15_s20   ;;  %s556_s19 = sphi %s595_s19, %s662_s19   ;;  %s552_s18 = sphi %s593_s18, %s661_s18  }
   0x3   : > { %p29_p1 = scmp.ge.s32.totalorder %s27_s21, 2  ;;  %p227_p2 = scmp.lt.s32.totalorder %s560_s20, 3 }
   0x5   : > { %s664_s21 = smov (%p29_p1, %s27_s21), 0  ;;  %p228_p3 = pnand %p495_p0, %p227_p2 }
   0x6   : > { %p272_p4 = scmp.lt.s32.totalorder (!%p228_p3), %s552_s18, 1 }
   0x7   : > { %231 = sbr.rel (%p228_p3) target bundleno = 297 (0x129), region = 40 }
   0xc   : > { %s666_s18 = smov (!%p272_p4, %s552_s18), 1  ;;  %v302_v0 = vld [vmem:[%s656_s1] sm:$0xff]  ;;  %v303_v4 = vld [vmem:[%s656_s1 + $0x8] sm:$0x1]  ;;  %vm314_vm0 = vcmask 261120   ;;  %vm318_vm1 = vcmask 253952  }
   0xd   : > { %s502_s22 = sshll.u32 %s666_s18, 4  ;;  %s289_s25 = scalar_lea.vmem %s657_s2, %s666_s18  ;;  %v562_v11 = vmov 32.0   ;;  %v530_v42 = vld [vmem:[%s658_s3] ss:$0 sm:$0xff] }
   0xe   : > { %s279_s30 = scalar_lea.vmem %s655_s0, %s502_s22  ;;  %v529_v1 = vld [vmem:[%s289_s25] ss:$0 sm:$0xff]  ;;  %532 = vrcp.f32 %v562_v11  ;;  %s298_s14 = scalar_lea.vmem %s660_s5, %s502_s22 }
   0xf   : > { %v300_v2 = vld [vmem:[%s279_s30] sm:$0xff]  ;;  %v301_v3 = vld [vmem:[%s279_s30 + $0x8] sm:$0x1] }
  0x10   : > { %v304_v5 = vadd.f32 %v302_v0, %v300_v2  ;;  %v305_v7 = vadd.f32 %v303_v4, %v301_v3  ;;  %v531_v45 = vld [vmem:[%s659_s4] ss:$0 sm:$0xff] }
  0x12   : > { %v310_v6 = vadd.f32 %v529_v1, %v304_v5  ;;  %v311_v9 = vadd.f32 %v529_v1, %v305_v7 }
  0x14   : > { %v315_v8 = vsel %vm314_vm0, %v310_v6, 0.0  ;;  %v319_v10 = vsel %vm318_vm1, %v311_v9, 0.0  ;;  %v533_v12 = vpop.eup %532 }
  0x15   : > { %316 = vadd.xlane.f32.xlu0 %v315_v8  ;;  %v323_v13 = vmul.f32 32.0, %v533_v12  ;;  %vm327_vm2 = vweird.f32 %v533_v12 }
  0x17   : > { %v324_v14 = vsub.f32 1.0, %v323_v13 }
  0x19   : > { %v325_v15 = vmul.f32 %v533_v12, %v324_v14 }
  0x1b   : > { %v326_v16 = vadd.f32 %v533_v12, %v325_v15 }
  0x1d   : > { %320 = vadd.xlane.f32.xlu0 %v319_v10  ;;  %v328_v17 = vsel %vm327_vm2, %v533_v12, %v326_v16 }
  0x88   : > { %v317_v18 = vpop.xlane.xlu0 %316 }
  0x89   : > { %v329_v19 = vmul.f32 %v328_v17, %v317_v18 }
  0x8b   : > { %v331_v20 = vsub.f32 %v310_v6, %v329_v19 }
  0x8d   : > { %v333_v21 = vmul.f32 %v331_v20, %v331_v20 }
  0x8f   : > { %v335_v22 = vsel %vm314_vm0, %v333_v21, 0.0 }
  0x90   : > { %336 = vadd.xlane.f32.xlu1 %v335_v22  ;;  %v321_v23 = vpop.xlane.xlu0 %320 }
  0x91   : > { %v330_v24 = vmul.f32 %v328_v17, %v321_v23 }
  0x93   : > { %v332_v25 = vsub.f32 %v311_v9, %v330_v24 }
  0x95   : > { %v334_v26 = vmul.f32 %v332_v25, %v332_v25 }
  0x97   : > { %v338_v27 = vsel %vm318_vm1, %v334_v26, 0.0 }
  0x98   : > { %339 = vadd.xlane.f32.xlu1 %v338_v27 }
 0x103   : > { %v337_v28 = vpop.xlane.xlu1 %336 }
 0x104   : > { %v341_v29 = vmul.f32 %v337_v28, %v328_v17 }
 0x106   : > { %v343_v30 = vadd.f32 1e-12, %v341_v29 }
 0x108   : > { %534 = vrsqrt.f32 %v343_v30  ;;  %vm351_vm4 = vweird.f32 %v343_v30 }
 0x10b   : > { %v340_v31 = vpop.xlane.xlu1 %339 }
 0x10c   : > { %v342_v32 = vmul.f32 %v340_v31, %v328_v17 }
 0x10e   : > { %v535_v33 = vpop.eup %534  ;;  %v344_v34 = vadd.f32 1e-12, %v342_v32 }
 0x10f   : > { %v346_v35 = vmul.f32 %v535_v33, %v343_v30  ;;  %vm352_vm3 = vweird.f32 %v535_v33 }
 0x110   : > { %536 = vrsqrt.f32 %v344_v34  ;;  %vm353_vm5 = vmor %vm351_vm4, %vm352_vm3  ;;  %vm361_vm7 = vweird.f32 %v344_v34 }
 0x111   : > { %v347_v36 = vmul.f32 %v535_v33, %v346_v35 }
 0x113   : > { %v348_v37 = vmul.f32 0.5, %v347_v36 }
 0x115   : > { %v349_v38 = vsub.f32 1.5, %v348_v37 }
 0x116   : > { %v537_v39 = vpop.eup %536 }
 0x117   : > { %v350_v40 = vmul.f32 %v535_v33, %v349_v38  ;;  %v356_v41 = vmul.f32 %v537_v39, %v344_v34  ;;  %vm362_vm6 = vweird.f32 %v537_v39 }
 0x118   : > { %vm363_vm8 = vmor %vm361_vm7, %vm362_vm6 }
 0x119   : > { %v354_v43 = vsel %vm353_vm5, %v535_v33, %v350_v40  ;;  %v357_v44 = vmul.f32 %v537_v39, %v356_v41 }
 0x11a   : > { %v365_v46 = vmul.f32 %v354_v43, %v331_v20 }
 0x11b   : > { %v358_v47 = vmul.f32 0.5, %v357_v44 }
 0x11c   : > { %v370_v48 = vmul.f32 %v530_v42, %v365_v46 }
 0x11d   : > { %v359_v49 = vsub.f32 1.5, %v358_v47 }
 0x11e   : > { %v375_v50 = vadd.f32 %v531_v45, %v370_v48 }
 0x11f   : > { %v360_v51 = vmul.f32 %v537_v39, %v359_v49 }
 0x120   : > { %377 = vst.msk [vmem:[%s298_s14] sm:$0xff] %vm314_vm0, %v375_v50 }
 0x121   : > { %v364_v52 = vsel %vm363_vm8, %v537_v39, %v360_v51 }
 0x122   : > { %v366_v53 = vmul.f32 %v364_v52, %v332_v25 }
 0x124   : > { %v371_v54 = vmul.f32 %v530_v42, %v366_v53 }
 0x126   : > { %v376_v55 = vadd.f32 %v531_v45, %v371_v54 }
 0x128   : > { %378 = vst.msk [vmem:[%s298_s14 + $0x8] sm:$0x1] %vm318_vm1, %v376_v55 }
 0x129 PF: > { %s15_s20 = sadd.s32 1, %s560_s20   ;;  %s661_s18 = smov %s556_s19 }
 0x12a   : > { %p12_p5 = scmp.ge.s32.totalorder %s15_s20, 4   ;;  %s662_s19 = smov %s664_s21 }
 0x12c   :  { %14 = sbr.rel (!%p12_p5) target bundleno = 2 (0x2), region = 76 }

// kernel: decoder_forward.23
= control target key start
LH: loop header
LB: loop body
LE: loop exit
PB: predicated region body
PF: predicated region fallthrough
CT: control target
= control target key end

     0   :  { %s841_s12 = smov 0   ;;  %s942_s0 = inlined_call_operand.vmem [shape: f32[2,4,9,8], index: 0, kind: input, shape index: {}]   ;;  %s943_s1 = inlined_call_operand.vmem [shape: f32[2,4,9,8], index: 1, kind: input, shape index: {}]   ;;  %s944_s2 = inlined_call_operand.vmem [shape: f32[2,4,9,8], index: 2, kind: input, shape index: {}]   ;;  %s945_s3 = inlined_call_operand.vmem [shape: f32[2,4,9,8], index: 3, kind: output, shape index: {}]  }
   0x1 LB: > { %s718_s13 = sadd.s32 4294967295, %s819_s12   ;;  %p722_p0 = scmp.ge.s32.totalorder %s819_s12, 1  ;;  %s819_s12 = sphi %s841_s12, %s13_s12  }
   0x2   : > { %p157_p1 = scmp.lt.s32.totalorder %s819_s12, 3 }
   0x4   : > { %p158_p2 = pnand %p722_p0, %p157_p1 }
   0x5   : > { %p191_p3 = scmp.lt.s32.totalorder (!%p158_p2), %s718_s13, 1 }
   0x6   : > { %161 = sbr.rel (%p158_p2) target bundleno = 566 (0x236), region = 32 }
   0xb   : > { %s947_s13 = smov (!%p191_p3, %s718_s13), 1  ;;  %vm235_vm0 = vcmask 64512   ;;  %v384_v16 = vlaneseq  ;;  %vm411_vm2 = vcmask 72704   ;;  %vm415_vm4 = vcmask 65536  }
   0xc   : > { %s849_s14 = sshll.u32 %s947_s13, 6  ;;  %vm507_vm5 = vcmask 1040384   ;;  %vm631_vm6 = vcmask 57344  }
   0xd   : > { %s200_s17 = scalar_lea.vmem %s943_s1, %s849_s14  ;;  %s195_s20 = scalar_lea.vmem %s942_s0, %s849_s14  ;;  %v385_v17 = vshrl.u32 %v384_v16, 7  ;;  %v388_v18 = vand.u32 127, %v384_v16 }
   0xe   : > { %v220_v0 = vld [vmem:[%s200_s17 + $0x8] sm:$0x1]  ;;  %v226_v2 = vld [vmem:[%s200_s17 + $0x38] sm:$0x1]  ;;  %v219_v3 = vld [vmem:[%s200_s17] sm:$0xff]  ;;  %s205_s23 = scalar_lea.vmem %s944_s2, %s849_s14  ;;  %s210_s26 = scalar_lea.vmem %s945_s3, %s849_s14 }
   0xf   : > { %v224_v1 = vld [vmem:[%s200_s17 + $0x28] sm:$0x1]  ;;  %731 = vmatpush.xpose.msk.msra.mxu0 %vm235_vm0, %v220_v0  ;;  %v223_v4 = vld [vmem:[%s200_s17 + $0x20] sm:$0xff]  ;;  %743 = vmatpush.xpose.msk.msra.mxu3 %vm235_vm0, %v226_v2  ;;  %v222_v5 = vld [vmem:[%s200_s17 + $0x18] sm:$0x1]  ;;  %vm389_vm1 = vcmp.le.s32.totalorder %v388_v18, %v385_v17  ;;  %v386_v38 = vadd.s32 8, %v385_v17 }
  0x10   : > { %739 = vmatpush.xpose.msk.msra.mxu2 %vm235_vm0, %v224_v1  ;;  %735 = vmatpush.xpose.msk.msra.mxu1 %vm235_vm0, %v222_v5  ;;  %v225_v6 = vld [vmem:[%s200_s17 + $0x30] sm:$0xff]  ;;  %v211_v8 = vld [vmem:[%s195_s20] sm:$0xff]  ;;  %v216_v12 = vld [vmem:[%s195_s20 + $0x28] sm:$0x1] }
  0x11   : > { %v221_v7 = vld [vmem:[%s200_s17 + $0x10] sm:$0xff]  ;;  %v215_v9 = vld [vmem:[%s195_s20 + $0x20] sm:$0xff]  ;;  %v212_v13 = vld [vmem:[%s195_s20 + $0x8] sm:$0x1]  ;;  %vm390_vm3 = vcmp.le.s32.totalorder %v388_v18, %v386_v38 }
  0x12   : > { %v217_v10 = vld [vmem:[%s195_s20 + $0x30] sm:$0xff]  ;;  %v218_v14 = vld [vmem:[%s195_s20 + $0x38] sm:$0x1]  ;;  %v232_v38 = vld [vmem:[%s205_s23 + $0x28] sm:$0x1] }
  0x13   : > { %732 = vmatpush.xpose.msk.msra.mxu0 %vm235_vm0, %v219_v3  ;;  %744 = vmatpush.xpose.msk.msra.mxu3 %vm235_vm0, %v225_v6  ;;  %v213_v11 = vld [vmem:[%s195_s20 + $0x10] sm:$0xff]  ;;  %v214_v15 = vld [vmem:[%s195_s20 + $0x18] sm:$0x1] }
  0x14   : > { %740 = vmatpush.xpose.msk.msra.mxu2 %vm235_vm0, %v223_v4  ;;  %736 = vmatpush.xpose.msk.msra.mxu1 %vm235_vm0, %v221_v7 }
  0x16   : > { %733 = vmatmul.msk.f32.vlgmr.msra.gmra.mxu0 %vm235_vm0, %v211_v8  ;;  %745 = vmatmul.msk.f32.vlgmr.msra.gmra.mxu3 %vm235_vm0, %v217_v10 }
  0x17   : > { %741 = vmatmul.msk.f32.vlgmr.msra.gmra.mxu2 %vm235_vm0, %v215_v9  ;;  %737 = vmatmul.msk.f32.vlgmr.msra.gmra.mxu1 %vm235_vm0, %v213_v11 }
  0x18   : > { %761 = vmatpush.msk.msrb.mxu2 %vm507_vm5, %v232_v38 }
  0x1e   : > { %734 = vmatmul.msk.f32.gmra.mxu0 %vm235_vm0, %v212_v13  ;;  %746 = vmatmul.msk.f32.gmra.mxu3 %vm235_vm0, %v218_v14 }
  0x1f   : > { %742 = vmatmul.msk.f32.gmra.mxu2 %vm235_vm0, %v216_v12  ;;  %738 = vmatmul.msk.f32.gmra.mxu1 %vm235_vm0, %v214_v15 }
  0x93   : > { %v265_v19 = vpop.f32.mrf.mxu0 }
  0x94   : > { %v376_v20 = vmul.f32 0.35355338, %v265_v19  ;;  %v300_v21 = vpop.f32.mrf.mxu1 }
  0x95   : > { %v378_v23 = vmul.f32 0.35355338, %v300_v21 }
  0x96   : > { %v747_v22 = vadd.f32 -10000.0, %v376_v20 }
  0x97   : > { %v749_v25 = vadd.f32 -10000.0, %v378_v23 }
  0x98   : > { %v403_v24 = vsel %vm389_vm1, %v376_v20, %v747_v22 }
  0x99   : > { %v412_v27 = vsel %vm411_vm2, %v403_v24, -inf  ;;  %v370_v29 = vpop.f32.mrf.mxu3  ;;  %v405_v32 = vsel %vm389_vm1, %v378_v23, %v749_v25 }
  0x9a   : > { %v335_v26 = vpop.f32.mrf.mxu2  ;;  %413 = vmax.xlane.f32.xlu1 %v412_v27  ;;  %v382_v31 = vmul.f32 0.35355338, %v370_v29  ;;  %v419_v37 = vsel %vm411_vm2, %v405_v32, -inf }
  0x9b   : > { %v380_v28 = vmul.f32 0.35355338, %v335_v26  ;;  %v268_v39 = vpop.f32.mrf.mxu0 }
  0x9c   : > { %v303_v33 = vpop.f32.mrf.mxu1  ;;  %v753_v40 = vadd.f32 -10000.0, %v382_v31  ;;  %v377_v44 = vmul.f32 0.35355338, %v268_v39  ;;  %v234_v39 = vld [vmem:[%s205_s23 + $0x38] sm:$0x1] }
  0x9d   : > { %v751_v30 = vadd.f32 -10000.0, %v380_v28  ;;  %v379_v35 = vmul.f32 0.35355338, %v303_v33  ;;  %764 = vmatpush.msk.msrb.mxu3 %vm507_vm5, %v234_v39 }
  0x9e   : > { %v409_v48 = vsel %vm389_vm1, %v382_v31, %v753_v40  ;;  %v748_v51 = vadd.f32 -10000.0, %v377_v44  ;;  %v231_v40 = vld [vmem:[%s205_s23 + $0x20] sm:$0xff] }
  0x9f   : > { %v407_v34 = vsel %vm389_vm1, %v380_v28, %v751_v30  ;;  %v750_v41 = vadd.f32 -10000.0, %v379_v35  ;;  %v431_v53 = vsel %vm411_vm2, %v409_v48, -inf  ;;  %590 = vmatpush.msrb.mxu2 %v231_v40 }
  0xa0   : > { %v425_v36 = vsel %vm411_vm2, %v407_v34, -inf  ;;  %v404_v57 = vsel %vm390_vm3, %v377_v44, %v748_v51 }
  0xa1   : > { %426 = vmax.xlane.f32.xlu0 %v425_v36  ;;  %v373_v45 = vpop.f32.mrf.mxu3  ;;  %v406_v49 = vsel %vm390_vm3, %v379_v35, %v750_v41  ;;  %v416_v59 = vsel %vm415_vm4, %v404_v57, -inf  ;;  %v228_v36 = vld [vmem:[%s205_s23 + $0x8] sm:$0x1]  ;;  %v230_v41 = vld [vmem:[%s205_s23 + $0x18] sm:$0x1] }
  0xa2   : > { %v338_v42 = vpop.f32.mrf.mxu2  ;;  %420 = vmax.xlane.f32.xlu1 %v419_v37  ;;  %v383_v46 = vmul.f32 0.35355338, %v373_v45  ;;  %v422_v55 = vsel %vm415_vm4, %v406_v49, -inf  ;;  %v227_v37 = vld [vmem:[%s205_s23] sm:$0xff]  ;;  %755 = vmatpush.msk.msrb.mxu0 %vm507_vm5, %v228_v36 }
  0xa3   : > { %v381_v43 = vmul.f32 0.35355338, %v338_v42  ;;  %v233_v42 = vld [vmem:[%s205_s23 + $0x30] sm:$0xff]  ;;  %758 = vmatpush.msk.msrb.mxu1 %vm507_vm5, %v230_v41 }
  0xa4   : > { %v754_v52 = vadd.f32 -10000.0, %v383_v46  ;;  %526 = vmatpush.msrb.mxu0 %v227_v37  ;;  %622 = vmatpush.msrb.mxu3 %v233_v42 }
  0xa5   : > { %v752_v47 = vadd.f32 -10000.0, %v381_v43 }
  0xa6   : > { %v410_v56 = vsel %vm390_vm3, %v383_v46, %v754_v52 }
  0xa7   : > { %v408_v50 = vsel %vm390_vm3, %v381_v43, %v752_v47  ;;  %v434_v58 = vsel %vm415_vm4, %v410_v56, -inf  ;;  %v229_v43 = vld [vmem:[%s205_s23 + $0x10] sm:$0xff] }
  0xa8   : > { %v428_v54 = vsel %vm415_vm4, %v408_v50, -inf  ;;  %558 = vmatpush.msrb.mxu1 %v229_v43 }
  0xa9   : > { %432 = vmax.xlane.f32.xlu0 %v431_v53  ;;  %429 = vmax.xlane.f32.xlu2 %v428_v54 }
  0xaa   : > { %423 = vmax.xlane.f32.xlu1 %v422_v55 }
  0xb1   : > { %435 = vmax.xlane.f32.xlu2 %v434_v58  ;;  %417 = vmax.xlane.f32.xlu0 %v416_v59 }
 0x10d   : > { %v414_v60 = vpop.xlane.xlu1 %413 }
 0x10e   : > { %v437_v61 = vsub.f32 %v403_v24, %v414_v60 }
 0x110   : > { %v445_v62 = vmul.f32 1.442695, %v437_v61 }
 0x112   : > { %781 = vpow2.f32 %v445_v62 }
 0x114   : > { %v427_v63 = vpop.xlane.xlu0 %426 }
 0x115   : > { %v441_v0 = vsub.f32 %v407_v34, %v427_v63  ;;  %v421_v1 = vpop.xlane.xlu1 %420 }
 0x116   : > { %v439_v3 = vsub.f32 %v405_v32, %v421_v1 }
 0x117   : > { %v453_v2 = vmul.f32 1.442695, %v441_v0 }
 0x118   : > { %v891_v4 = vpop.eup %781  ;;  %v449_v6 = vmul.f32 1.442695, %v439_v3 }
 0x119   : > { %783 = vpow2.f32 %v453_v2  ;;  %v461_v5 = vsel %vm411_vm2, %v891_v4, 0.0 }
 0x11a   : > { %462 = vadd.xlane.f32.xlu1 %v461_v5  ;;  %785 = vpow2.f32 %v449_v6 }
 0x11c   : > { %v433_v7 = vpop.xlane.xlu0 %432  ;;  %v430_v8 = vpop.xlane.xlu2 %429 }
 0x11d   : > { %v443_v9 = vsub.f32 %v409_v48, %v433_v7  ;;  %v442_v12 = vsub.f32 %v408_v50, %v430_v8  ;;  %v424_v15 = vpop.xlane.xlu1 %423 }
 0x11e   : > { %v440_v22 = vsub.f32 %v406_v49, %v424_v15 }
 0x11f   : > { %v895_v10 = vpop.eup %783  ;;  %v457_v11 = vmul.f32 1.442695, %v443_v9  ;;  %v455_v14 = vmul.f32 1.442695, %v442_v12 }
 0x120   : > { %v473_v13 = vsel %vm411_vm2, %v895_v10, 0.0  ;;  %v899_v18 = vpop.eup %785  ;;  %v451_v27 = vmul.f32 1.442695, %v440_v22 }
 0x121   : > { %787 = vpow2.f32 %v457_v11  ;;  %474 = vadd.xlane.f32.xlu2 %v473_v13  ;;  %v467_v25 = vsel %vm411_vm2, %v899_v18, 0.0 }
 0x122   : > { %789 = vpow2.f32 %v455_v14 }
 0x124   : > { %v436_v16 = vpop.xlane.xlu2 %435  ;;  %v418_v17 = vpop.xlane.xlu0 %417 }
 0x125   : > { %v444_v19 = vsub.f32 %v410_v56, %v436_v16  ;;  %v438_v20 = vsub.f32 %v404_v57, %v418_v17 }
 0x127   : > { %v901_v21 = vpop.eup %787  ;;  %v459_v23 = vmul.f32 1.442695, %v444_v19  ;;  %v447_v24 = vmul.f32 1.442695, %v438_v20 }
 0x128   : > { %v479_v26 = vsel %vm411_vm2, %v901_v21, 0.0  ;;  %v907_v28 = vpop.eup %789 }
 0x129   : > { %791 = vpow2.f32 %v459_v23  ;;  %468 = vadd.xlane.f32.xlu2 %v467_v25  ;;  %480 = vadd.xlane.f32.xlu0 %v479_v26  ;;  %v476_v32 = vsel %vm415_vm4, %v907_v28, 0.0 }
 0x12a   : > { %793 = vpow2.f32 %v447_v24 }
 0x12b   : > { %795 = vpow2.f32 %v451_v27 }
 0x12f   : > { %v792_v29 = vpop.eup %791 }
 0x130   : > { %v794_v30 = vpop.eup %793  ;;  %v482_v31 = vsel %vm415_vm4, %v792_v29, 0.0 }
 0x131   : > { %483 = vadd.xlane.f32.xlu1 %v482_v31  ;;  %477 = vadd.xlane.f32.xlu0 %v476_v32  ;;  %v464_v33 = vsel %vm415_vm4, %v794_v30, 0.0  ;;  %v796_v34 = vpop.eup %795 }
 0x132   : > { %465 = vadd.xlane.f32.xlu2 %v464_v33  ;;  %v470_v35 = vsel %vm415_vm4, %v796_v34, 0.0 }
 0x139   : > { %471 = vadd.xlane.f32.xlu0 %v470_v35 }
 0x18d   : > { %v463_v44 = vpop.xlane.xlu1 %462 }
 0x18e   : > { %797 = vrcp.f32 %v463_v44 }
 0x194   : > { %v475_v45 = vpop.xlane.xlu2 %474  ;;  %v798_v46 = vpop.eup %797 }
 0x195   : > { %799 = vrcp.f32 %v475_v45  ;;  %v493_v47 = vmul.f32 %v798_v46, %v891_v4 }
 0x197   : > { %756 = vmatmul.msk.f32.vlgmr.msrb.gmra.mxu0 %vm411_vm2, %v493_v47 }
 0x19b   : > { %v800_v48 = vpop.eup %799 }
 0x19c   : > { %v469_v49 = vpop.xlane.xlu2 %468  ;;  %v481_v50 = vpop.xlane.xlu0 %480  ;;  %v497_v51 = vmul.f32 %v800_v48, %v895_v10 }
 0x19d   : > { %801 = vrcp.f32 %v469_v49 }
 0x19e   : > { %803 = vrcp.f32 %v481_v50  ;;  %762 = vmatmul.msk.f32.vlgmr.msrb.gmra.mxu2 %vm411_vm2, %v497_v51 }
 0x1a3   : > { %v802_v52 = vpop.eup %801 }
 0x1a4   : > { %v804_v53 = vpop.eup %803  ;;  %v484_v54 = vpop.xlane.xlu1 %483  ;;  %v495_v56 = vmul.f32 %v802_v52, %v899_v18 }
 0x1a5   : > { %v478_v55 = vpop.xlane.xlu0 %477  ;;  %805 = vrcp.f32 %v484_v54  ;;  %v466_v57 = vpop.xlane.xlu2 %465  ;;  %v499_v58 = vmul.f32 %v804_v53, %v901_v21 }
 0x1a6   : > { %807 = vrcp.f32 %v466_v57  ;;  %759 = vmatmul.msk.f32.vlgmr.msrb.gmra.mxu1 %vm411_vm2, %v495_v56 }
 0x1a7   : > { %809 = vrcp.f32 %v478_v55  ;;  %765 = vmatmul.msk.f32.vlgmr.msrb.gmra.mxu3 %vm411_vm2, %v499_v58 }
 0x1ab   : > { %v806_v59 = vpop.eup %805 }
 0x1ac   : > { %v808_v60 = vpop.eup %807  ;;  %v500_v62 = vmul.f32 %v806_v59, %v792_v29 }
 0x1ad   : > { %v472_v61 = vpop.xlane.xlu0 %471  ;;  %v810_v63 = vpop.eup %809  ;;  %v494_v0 = vmul.f32 %v808_v60, %v794_v30 }
 0x1ae   : > { %811 = vrcp.f32 %v472_v61  ;;  %v498_v1 = vmul.f32 %v810_v63, %v907_v28 }
 0x1af   : > { %757 = vmatmul.msk.f32.gmra.mxu0 %vm411_vm2, %v494_v0  ;;  %766 = vmatmul.msk.f32.gmra.mxu3 %vm411_vm2, %v500_v62 }
 0x1b0   : > { %763 = vmatmul.msk.f32.gmra.mxu2 %vm411_vm2, %v498_v1 }
 0x1b4   : > { %v812_v2 = vpop.eup %811 }
 0x1b5   : > { %v496_v3 = vmul.f32 %v812_v2, %v796_v34 }
 0x1b7   : > { %760 = vmatmul.msk.f32.gmra.mxu1 %vm411_vm2, %v496_v3 }
 0x214   : > { %v528_v4 = vpop.f32.mrf.mxu0 }
 0x215   : > { %630 = vst.msk [vmem:[%s210_s26] sm:$0xff] %vm235_vm0, %v528_v4 }
 0x221   : > { %v592_v5 = vpop.f32.mrf.mxu2 }
 0x222   : > { %635 = vst.msk [vmem:[%s210_s26 + $0x20] sm:$0xff] %vm235_vm0, %v592_v5 }
 0x223   : > { %v560_v6 = vpop.f32.mrf.mxu1 }
 0x224   : > { %633 = vst.msk [vmem:[%s210_s26 + $0x10] sm:$0xff] %vm235_vm0, %v560_v6 }
 0x22a   : > { %v624_v7 = vpop.f32.mrf.mxu3 }
 0x22b   : > { %637 = vst.msk [vmem:[%s210_s26 + $0x30] sm:$0xff] %vm235_vm0, %v624_v7 }
 0x22c   : > { %v531_v8 = vpop.f32.mrf.mxu0 }
 0x22d   : > { %632 = vst.msk [vmem:[%s210_s26 + $0x8] sm:$0x1] %vm631_vm6, %v531_v8 }
 0x232   : > { %v627_v9 = vpop.f32.mrf.mxu3 }
 0x233   : > { %v595_v10 = vpop.f32.mrf.mxu2  ;;  %638 = vst.msk [vmem:[%s210_s26 + $0x38] sm:$0x1] %vm631_vm6, %v627_v9 }
 0x234   : > { %v563_v11 = vpop.f32.mrf.mxu1  ;;  %636 = vst.msk [vmem:[%s210_s26 + $0x28] sm:$0x1] %vm631_vm6, %v595_v10 }
 0x235   : > { %634 = vst.msk [vmem:[%s210_s26 + $0x18] sm:$0x1] %vm631_vm6, %v563_v11 }
 0x236 PF: > { %s13_s12 = sadd.s32 1, %s819_s12  }
 0x237   : > { %p10_p4 = scmp.ge.s32.totalorder %s13_s12, 4  }
 0x239   :  { %12 = sbr.rel (!%p10_p4) target bundleno = 1 (0x1), region = 68 }

// kernel: decoder_forward.24
= control target key start
LH: loop header
LB: loop body
LE: loop exit
PB: predicated region body
PF: predicated region fallthrough
CT: control target
= control target key end

     0   :  { %vm27_vm0 = vcmask 261120   ;;  %v222_v2 = vmov 0.0   ;;  %vm30_vm1 = vcmask 254976   ;;  %v223_v33 = vmov 32.0   ;;  %s325_s1 = inlined_call_operand.vmem [shape: f32[32,32], index: 1, kind: input, shape index: {}]   ;;  %s326_s0 = inlined_call_operand.vmem [shape: f32[18,32], index: 0, kind: input, shape index: {}]   ;;  %s327_s2 = inlined_call_operand.vmem [shape: f32[1,32], index: 2, kind: input, shape index: {}]   ;;  %s328_s3 = inlined_call_operand.vmem [shape: f32[18,32], index: 3, kind: input, shape index: {}]   ;;  %s329_s4 = inlined_call_operand.vmem [shape: f32[1,32], index: 4, kind: input, shape index: {}]   ;;  %s330_s5 = inlined_call_operand.vmem [shape: f32[1,32], index: 5, kind: input, shape index: {}]   ;;  %s331_s6 = inlined_call_operand.vmem [shape: f32[18,32], index: 6, kind: output, shape index: {}]  }
   0x1   :  { %v41_v0 = vld [vmem:[%s325_s1 + $0x18] sm:$0xff]  ;;  %v40_v1 = vld [vmem:[%s325_s1 + $0x10] sm:$0xff]  ;;  %28 = vst.msk [vmem:[#allocation2] sm:$0xff] %vm27_vm0, %v222_v2  ;;  %v39_v3 = vld [vmem:[%s325_s1 + $0x8] sm:$0xff]  ;;  %214 = vrcp.f32 %v223_v33 }
   0x2   :  { %64 = vmatpush.msra.mxu0 %v41_v0  ;;  %202 = vmatpush.msra.mxu2 %v41_v0  ;;  %29 = vst.msk [vmem:[#allocation2 + $0x8] sm:$0xff] %vm27_vm0, %v222_v2  ;;  %v38_v4 = vld [vmem:[%s325_s1] sm:$0xff]  ;;  %v37_v6 = vld [vmem:[%s326_s0 + $0x10] sm:$0x3]  ;;  %v36_v7 = vld [vmem:[%s326_s0 + $0x8] sm:$0xff] }
   0x3   :  { %201 = vmatpush.msra.mxu1 %v41_v0  ;;  %v35_v5 = vld [vmem:[%s326_s0] sm:$0xff]  ;;  %31 = vst.msk [vmem:[#allocation2 + $0x10] sm:$0x3] %vm30_vm1, %v222_v2  ;;  %v99_v24 = vld [vmem:[%s328_s3 + $0x8] sm:$0xff]  ;;  %v100_v27 = vld [vmem:[%s328_s3 + $0x10] sm:$0x3] }
   0x4   :  { %65 = vmatpush.msra.mxu0 %v40_v1  ;;  %204 = vmatpush.msra.mxu2 %v40_v1  ;;  %v211_v17 = vld [vmem:[%s327_s2] ss:$0 sm:$0xff] }
   0x5   :  { %203 = vmatpush.msra.mxu1 %v40_v1  ;;  %v98_v19 = vld [vmem:[%s328_s3] sm:$0xff] }
   0x6   :  { %66 = vmatpush.msra.mxu0 %v39_v3  ;;  %206 = vmatpush.msra.mxu2 %v39_v3 }
   0x7   :  { %205 = vmatpush.msra.mxu1 %v39_v3  ;;  %v215_v34 = vpop.eup %214 }
   0x8   :  { %67 = vmatpush.msra.mxu0 %v38_v4  ;;  %208 = vmatpush.msra.mxu2 %v38_v4  ;;  %v32_v8 = vld [vmem:[#allocation2] sm:$0xff]  ;;  %v116_v35 = vmul.f32 32.0, %v215_v34  ;;  %vm120_vm2 = vweird.f32 %v215_v34 }
   0x9   :  { %198 = vmatmul.msk.f32.vlgmr.msra.gmra.mxu0 %vm27_vm0, %v35_v5  ;;  %200 = vmatmul.msk.f32.vlgmr.msra.gmra.mxu2 %vm27_vm0, %v37_v6  ;;  %v33_v10 = vld [vmem:[#allocation2 + $0x8] sm:$0xff] }
   0xa   :  { %207 = vmatpush.msra.mxu1 %v38_v4  ;;  %v34_v14 = vld [vmem:[#allocation2 + $0x10] sm:$0x3]  ;;  %v117_v36 = vsub.f32 1.0, %v116_v35 }
   0xb   :  { %199 = vmatmul.msk.f32.vlgmr.msra.gmra.mxu1 %vm27_vm0, %v36_v7 }
   0xc   :  { %v118_v37 = vmul.f32 %v215_v34, %v117_v36 }
   0xe   :  { %v119_v38 = vadd.f32 %v215_v34, %v118_v37 }
  0x10   :  { %v121_v39 = vsel %vm120_vm2, %v215_v34, %v119_v38 }
  0x86   :  { %v69_v9 = vpop.f32.mrf.mxu0 }
  0x87   :  { %v78_v11 = vadd.f32 %v69_v9, %v32_v8  ;;  %v212_v8 = vld [vmem:[%s329_s4] ss:$0 sm:$0xff] }
  0x88   :  { %v72_v12 = vpop.f32.mrf.mxu1 }
  0x89   :  { %81 = vst.msk [vmem:[#allocation2] sm:$0xff] %vm27_vm0, %v78_v11  ;;  %v79_v13 = vadd.f32 %v72_v12, %v33_v10  ;;  %v213_v11 = vld [vmem:[%s330_s5] ss:$0 sm:$0xff] }
  0x8b   :  { %82 = vst.msk [vmem:[#allocation2 + $0x8] sm:$0xff] %vm27_vm0, %v79_v13 }
  0x8c   :  { %v75_v15 = vpop.f32.mrf.mxu2 }
  0x8d   :  { %v80_v16 = vadd.f32 %v75_v15, %v34_v14 }
  0x8f   :  { %84 = vst.msk [vmem:[#allocation2 + $0x10] sm:$0x3] %vm30_vm1, %v80_v16 }
  0x90   :  { %v88_v18 = vld [vmem:[#allocation2] sm:$0xff] }
  0x91   :  { %v95_v20 = vadd.f32 %v211_v17, %v88_v18 }
  0x92   :  { %v89_v21 = vld [vmem:[#allocation2 + $0x8] sm:$0xff] }
  0x93   :  { %v101_v22 = vadd.f32 %v98_v19, %v95_v20  ;;  %v96_v23 = vadd.f32 %v211_v17, %v89_v21 }
  0x95   :  { %v106_v25 = vsel %vm27_vm0, %v101_v22, 0.0  ;;  %v102_v29 = vadd.f32 %v99_v24, %v96_v23 }
  0x96   :  { %107 = vadd.xlane.f32.xlu0 %v106_v25  ;;  %v90_v26 = vld [vmem:[#allocation2 + $0x10] sm:$0x3] }
  0x97   :  { %v97_v28 = vadd.f32 %v211_v17, %v90_v26  ;;  %v109_v32 = vsel %vm27_vm0, %v102_v29, 0.0 }
  0x99   :  { %v103_v30 = vadd.f32 %v100_v27, %v97_v28 }
  0x9b   :  { %v112_v31 = vsel %vm30_vm1, %v103_v30, 0.0 }
  0x9c   :  { %113 = vadd.xlane.f32.xlu1 %v112_v31 }
  0x9e   :  { %110 = vadd.xlane.f32.xlu0 %v109_v32 }
 0x109   :  { %v108_v40 = vpop.xlane.xlu0 %107 }
 0x10a   :  { %v122_v41 = vmul.f32 %v121_v39, %v108_v40 }
 0x10c   :  { %v125_v42 = vsub.f32 %v101_v22, %v122_v41 }
 0x10e   :  { %v128_v43 = vmul.f32 %v125_v42, %v125_v42 }
 0x10f   :  { %v114_v45 = vpop.xlane.xlu1 %113 }
 0x110   :  { %v131_v44 = vsel %vm27_vm0, %v128_v43, 0.0  ;;  %v124_v48 = vmul.f32 %v121_v39, %v114_v45 }
 0x111   :  { %132 = vadd.xlane.f32.xlu1 %v131_v44  ;;  %v111_v46 = vpop.xlane.xlu0 %110 }
 0x112   :  { %v123_v47 = vmul.f32 %v121_v39, %v111_v46  ;;  %v127_v51 = vsub.f32 %v103_v30, %v124_v48 }
 0x114   :  { %v126_v49 = vsub.f32 %v102_v29, %v123_v47  ;;  %v130_v53 = vmul.f32 %v127_v51, %v127_v51 }
 0x116   :  { %v129_v50 = vmul.f32 %v126_v49, %v126_v49  ;;  %v137_v54 = vsel %vm30_vm1, %v130_v53, 0.0 }
 0x118   :  { %v134_v52 = vsel %vm27_vm0, %v129_v50, 0.0 }
 0x119   :  { %135 = vadd.xlane.f32.xlu2 %v134_v52 }
 0x121   :  { %138 = vadd.xlane.f32.xlu2 %v137_v54 }
 0x184   :  { %v133_v55 = vpop.xlane.xlu1 %132 }
 0x185   :  { %v140_v56 = vmul.f32 %v133_v55, %v121_v39 }
 0x187   :  { %v143_v57 = vadd.f32 1e-12, %v140_v56 }
 0x189   :  { %216 = vrsqrt.f32 %v143_v57  ;;  %vm152_vm4 = vweird.f32 %v143_v57 }
 0x18c   :  { %v136_v58 = vpop.xlane.xlu2 %135 }
 0x18d   :  { %v141_v59 = vmul.f32 %v136_v58, %v121_v39 }
 0x18f   :  { %v217_v60 = vpop.eup %216  ;;  %v144_v61 = vadd.f32 1e-12, %v141_v59 }
 0x190   :  { %v147_v62 = vmul.f32 %v217_v60, %v143_v57  ;;  %vm153_vm3 = vweird.f32 %v217_v60 }
 0x191   :  { %218 = vrsqrt.f32 %v144_v61  ;;  %vm154_vm5 = vmor %vm152_vm4, %vm153_vm3  ;;  %vm162_vm7 = vweird.f32 %v144_v61 }
 0x192   :  { %v148_v63 = vmul.f32 %v217_v60, %v147_v62 }
 0x194   :  { %v149_v0 = vmul.f32 0.5, %v148_v63  ;;  %v139_v1 = vpop.xlane.xlu2 %138 }
 0x195   :  { %v142_v2 = vmul.f32 %v139_v1, %v121_v39 }
 0x196   :  { %v150_v3 = vsub.f32 1.5, %v149_v0 }
 0x197   :  { %v219_v4 = vpop.eup %218  ;;  %v145_v5 = vadd.f32 1e-12, %v142_v2 }
 0x198   :  { %v151_v6 = vmul.f32 %v217_v60, %v150_v3  ;;  %v157_v7 = vmul.f32 %v219_v4, %v144_v61  ;;  %vm163_vm6 = vweird.f32 %v219_v4 }
 0x199   :  { %220 = vrsqrt.f32 %v145_v5  ;;  %vm164_vm8 = vmor %vm162_vm7, %vm163_vm6  ;;  %vm172_vm10 = vweird.f32 %v145_v5 }
 0x19a   :  { %v155_v9 = vsel %vm154_vm5, %v217_v60, %v151_v6  ;;  %v158_v10 = vmul.f32 %v219_v4, %v157_v7 }
 0x19b   :  { %v176_v12 = vmul.f32 %v155_v9, %v125_v42 }
 0x19c   :  { %v159_v13 = vmul.f32 0.5, %v158_v10 }
 0x19d   :  { %v182_v14 = vmul.f32 %v212_v8, %v176_v12 }
 0x19e   :  { %v160_v15 = vsub.f32 1.5, %v159_v13 }
 0x19f   :  { %v221_v16 = vpop.eup %220  ;;  %v188_v17 = vadd.f32 %v213_v11, %v182_v14 }
 0x1a0   :  { %v161_v18 = vmul.f32 %v219_v4, %v160_v15  ;;  %v167_v19 = vmul.f32 %v221_v16, %v145_v5  ;;  %vm173_vm9 = vweird.f32 %v221_v16 }
 0x1a1   :  { %191 = vst.msk [vmem:[%s331_s6] sm:$0xff] %vm27_vm0, %v188_v17  ;;  %vm174_vm11 = vmor %vm172_vm10, %vm173_vm9 }
 0x1a2   :  { %v165_v20 = vsel %vm164_vm8, %v219_v4, %v161_v18  ;;  %v168_v21 = vmul.f32 %v221_v16, %v167_v19 }
 0x1a3   :  { %v177_v22 = vmul.f32 %v165_v20, %v126_v49 }
 0x1a4   :  { %v169_v23 = vmul.f32 0.5, %v168_v21 }
 0x1a5   :  { %v183_v24 = vmul.f32 %v212_v8, %v177_v22 }
 0x1a6   :  { %v170_v25 = vsub.f32 1.5, %v169_v23 }
 0x1a7   :  { %v189_v26 = vadd.f32 %v213_v11, %v183_v24 }
 0x1a8   :  { %v171_v27 = vmul.f32 %v221_v16, %v170_v25 }
 0x1a9   :  { %192 = vst.msk [vmem:[%s331_s6 + $0x8] sm:$0xff] %vm27_vm0, %v189_v26 }
 0x1aa   :  { %v175_v28 = vsel %vm174_vm11, %v221_v16, %v171_v27 }
 0x1ab   :  { %v178_v29 = vmul.f32 %v175_v28, %v127_v51 }
 0x1ad   :  { %v184_v30 = vmul.f32 %v212_v8, %v178_v29 }
 0x1af   :  { %v190_v31 = vadd.f32 %v213_v11, %v184_v30 }
 0x1b1   :  { %193 = vst.msk [vmem:[%s331_s6 + $0x10] sm:$0x3] %vm30_vm1, %v190_v31 }

// kernel: decoder_forward.25
= control target key start
LH: loop header
LB: loop body
LE: loop exit
PB: predicated region body
PF: predicated region fallthrough
CT: control target
= control target key end

     0   :  { %vm18_vm0 = vcmask 261120   ;;  %v109_v2 = vmov 0.0   ;;  %vm21_vm1 = vcmask 254976   ;;  %s175_s1 = inlined_call_operand.vmem [shape: f32[32,32], index: 1, kind: input, shape index: {}]   ;;  %s176_s0 = inlined_call_operand.vmem [shape: f32[18,32], index: 0, kind: input, shape index: {}]   ;;  %s177_s2 = inlined_call_operand.vmem [shape: f32[1,32], index: 2, kind: input, shape index: {}]   ;;  %s178_s3 = inlined_call_operand.vmem [shape: f32[18,32], index: 3, kind: output, shape index: {}]  }
   0x1   :  { %v32_v0 = vld [vmem:[%s175_s1 + $0x18] sm:$0xff]  ;;  %v31_v1 = vld [vmem:[%s175_s1 + $0x10] sm:$0xff]  ;;  %19 = vst.msk [vmem:[#allocation2] sm:$0xff] %vm18_vm0, %v109_v2  ;;  %v30_v3 = vld [vmem:[%s175_s1 + $0x8] sm:$0xff] }
   0x2   :  { %100 = vmatpush.msra.mxu2 %v32_v0  ;;  %55 = vmatpush.msra.mxu0 %v32_v0  ;;  %20 = vst.msk [vmem:[#allocation2 + $0x8] sm:$0xff] %vm18_vm0, %v109_v2  ;;  %v29_v4 = vld [vmem:[%s175_s1] sm:$0xff]  ;;  %v28_v5 = vld [vmem:[%s176_s0 + $0x10] sm:$0x3]  ;;  %v27_v7 = vld [vmem:[%s176_s0 + $0x8] sm:$0xff] }
   0x3   :  { %99 = vmatpush.msra.mxu1 %v32_v0  ;;  %v26_v6 = vld [vmem:[%s176_s0] sm:$0xff]  ;;  %22 = vst.msk [vmem:[#allocation2 + $0x10] sm:$0x3] %vm21_vm1, %v109_v2 }
   0x4   :  { %102 = vmatpush.msra.mxu2 %v31_v1  ;;  %56 = vmatpush.msra.mxu0 %v31_v1  ;;  %v108_v17 = vld [vmem:[%s177_s2] ss:$0 sm:$0xff] }
   0x5   :  { %101 = vmatpush.msra.mxu1 %v31_v1 }
   0x6   :  { %104 = vmatpush.msra.mxu2 %v30_v3  ;;  %57 = vmatpush.msra.mxu0 %v30_v3 }
   0x7   :  { %103 = vmatpush.msra.mxu1 %v30_v3 }
   0x8   :  { %106 = vmatpush.msra.mxu2 %v29_v4  ;;  %58 = vmatpush.msra.mxu0 %v29_v4  ;;  %v23_v8 = vld [vmem:[#allocation2] sm:$0xff] }
   0x9   :  { %98 = vmatmul.msk.f32.vlgmr.msra.gmra.mxu2 %vm18_vm0, %v28_v5  ;;  %105 = vmatpush.msra.mxu1 %v29_v4  ;;  %v24_v9 = vld [vmem:[#allocation2 + $0x8] sm:$0xff] }
   0xa   :  { %96 = vmatmul.msk.f32.vlgmr.msra.gmra.mxu0 %vm18_vm0, %v26_v6  ;;  %97 = vmatmul.msk.f32.vlgmr.msra.gmra.mxu1 %vm18_vm0, %v27_v7  ;;  %v25_v14 = vld [vmem:[#allocation2 + $0x10] sm:$0x3] }
  0x87   :  { %v60_v10 = vpop.f32.mrf.mxu0  ;;  %v63_v11 = vpop.f32.mrf.mxu1 }
  0x88   :  { %v69_v12 = vadd.f32 %v60_v10, %v23_v8  ;;  %v70_v13 = vadd.f32 %v63_v11, %v24_v9 }
  0x8a   :  { %72 = vst.msk [vmem:[#allocation2] sm:$0xff] %vm18_vm0, %v69_v12 }
  0x8b   :  { %73 = vst.msk [vmem:[#allocation2 + $0x8] sm:$0xff] %vm18_vm0, %v70_v13 }
  0x8c   :  { %v66_v15 = vpop.f32.mrf.mxu2 }
  0x8d   :  { %v71_v16 = vadd.f32 %v66_v15, %v25_v14 }
  0x8f   :  { %75 = vst.msk [vmem:[#allocation2 + $0x10] sm:$0x3] %vm21_vm1, %v71_v16 }
  0x91   :  { %v79_v18 = vld [vmem:[#allocation2] sm:$0xff] }
  0x92   :  { %v80_v19 = vld [vmem:[#allocation2 + $0x8] sm:$0xff]  ;;  %v86_v20 = vadd.f32 %v108_v17, %v79_v18 }
  0x93   :  { %v87_v21 = vadd.f32 %v108_v17, %v80_v19 }
  0x94   :  { %89 = vst.msk [vmem:[%s178_s3] sm:$0xff] %vm18_vm0, %v86_v20 }
  0x95   :  { %90 = vst.msk [vmem:[%s178_s3 + $0x8] sm:$0xff] %vm18_vm0, %v87_v21 }
  0x96   :  { %v81_v22 = vld [vmem:[#allocation2 + $0x10] sm:$0x3] }
  0x97   :  { %v88_v23 = vadd.f32 %v108_v17, %v81_v22 }
  0x99   :  { %91 = vst.msk [vmem:[%s178_s3 + $0x10] sm:$0x3] %vm21_vm1, %v88_v23 }

// kernel: decoder_forward.26
= control target key start
LH: loop header
LB: loop body
LE: loop exit
PB: predicated region body
PF: predicated region fallthrough
CT: control target
= control target key end

     0   :  { %vm18_vm0 = vcmask 523264   ;;  %v127_v2 = vmov 0.0   ;;  %vm35_vm1 = vcmask 261120   ;;  %s199_s1 = inlined_call_operand.vmem [shape: f32[32,64], index: 1, kind: input, shape index: {}]   ;;  %s200_s2 = inlined_call_operand.vmem [shape: f32[1,64], index: 2, kind: input, shape index: {}]   ;;  %s201_s0 = inlined_call_operand.vmem [shape: f32[32,32], index: 0, kind: input, shape index: {}]   ;;  %s202_s3 = inlined_call_operand.vmem [shape: f32[32,64], index: 3, kind: output, shape index: {}]  }
   0x1   :  { %v34_v0 = vld [vmem:[%s199_s1 + $0x18] sm:$0xff]  ;;  %v33_v1 = vld [vmem:[%s199_s1 + $0x10] sm:$0xff]  ;;  %19 = vst.msk [vmem:[#allocation2] sm:$0xff] %vm18_vm0, %v127_v2  ;;  %v32_v3 = vld [vmem:[%s199_s1 + $0x8] sm:$0xff] }
   0x2   :  { %114 = vmatpush.msra.mxu2 %v34_v0  ;;  %115 = vmatpush.msra.mxu3 %v34_v0  ;;  %20 = vst.msk [vmem:[#allocation2 + $0x8] sm:$0xff] %vm18_vm0, %v127_v2  ;;  %v31_v4 = vld [vmem:[%s199_s1] sm:$0xff]  ;;  %v29_v5 = vld [vmem:[%s201_s0 + $0x10] sm:$0xff]  ;;  %v30_v6 = vld [vmem:[%s201_s0 + $0x18] sm:$0xff] }
   0x3   :  { %60 = vmatpush.msra.mxu0 %v34_v0  ;;  %113 = vmatpush.msra.mxu1 %v34_v0  ;;  %21 = vst.msk [vmem:[#allocation2 + $0x10] sm:$0xff] %vm18_vm0, %v127_v2  ;;  %v27_v7 = vld [vmem:[%s201_s0] sm:$0xff]  ;;  %v28_v8 = vld [vmem:[%s201_s0 + $0x8] sm:$0xff] }
   0x4   :  { %117 = vmatpush.msra.mxu2 %v33_v1  ;;  %118 = vmatpush.msra.mxu3 %v33_v1  ;;  %22 = vst.msk [vmem:[#allocation2 + $0x18] sm:$0xff] %vm18_vm0, %v127_v2  ;;  %v126_v21 = vld [vmem:[%s200_s2] ss:$0 sm:$0xff] }
   0x5   :  { %61 = vmatpush.msra.mxu0 %v33_v1  ;;  %116 = vmatpush.msra.mxu1 %v33_v1 }
   0x6   :  { %120 = vmatpush.msra.mxu2 %v32_v3  ;;  %121 = vmatpush.msra.mxu3 %v32_v3 }
   0x7   :  { %62 = vmatpush.msra.mxu0 %v32_v3  ;;  %119 = vmatpush.msra.mxu1 %v32_v3 }
   0x8   :  { %123 = vmatpush.msra.mxu2 %v31_v4  ;;  %124 = vmatpush.msra.mxu3 %v31_v4  ;;  %v23_v9 = vld [vmem:[#allocation2] sm:$0xff] }
   0x9   :  { %111 = vmatmul.msk.f32.vlgmr.msra.gmra.mxu2 %vm35_vm1, %v29_v5  ;;  %112 = vmatmul.msk.f32.vlgmr.msra.gmra.mxu3 %vm35_vm1, %v30_v6  ;;  %v24_v10 = vld [vmem:[#allocation2 + $0x8] sm:$0xff] }
   0xa   :  { %63 = vmatpush.msra.mxu0 %v31_v4  ;;  %122 = vmatpush.msra.mxu1 %v31_v4  ;;  %v25_v15 = vld [vmem:[#allocation2 + $0x10] sm:$0xff] }
   0xb   :  { %109 = vmatmul.msk.f32.vlgmr.msra.gmra.mxu0 %vm35_vm1, %v27_v7  ;;  %110 = vmatmul.msk.f32.vlgmr.msra.gmra.mxu1 %vm35_vm1, %v28_v8  ;;  %v26_v16 = vld [vmem:[#allocation2 + $0x18] sm:$0xff] }
  0x88   :  { %v65_v11 = vpop.f32.mrf.mxu0  ;;  %v68_v12 = vpop.f32.mrf.mxu1 }
  0x89   :  { %v77_v13 = vadd.f32 %v65_v11, %v23_v9  ;;  %v78_v14 = vadd.f32 %v68_v12, %v24_v10 }
  0x8b   :  { %82 = vst.msk [vmem:[#allocation2] sm:$0xff] %vm18_vm0, %v77_v13 }
  0x8c   :  { %83 = vst.msk [vmem:[#allocation2 + $0x8] sm:$0xff] %vm18_vm0, %v78_v14  ;;  %v71_v17 = vpop.f32.mrf.mxu2  ;;  %v74_v18 = vpop.f32.mrf.mxu3 }
  0x8d   :  { %v79_v19 = vadd.f32 %v71_v17, %v25_v15  ;;  %v80_v20 = vadd.f32 %v74_v18, %v26_v16 }
  0x8f   :  { %84 = vst.msk [vmem:[#allocation2 + $0x10] sm:$0xff] %vm18_vm0, %v79_v19 }
  0x90   :  { %85 = vst.msk [vmem:[#allocation2 + $0x18] sm:$0xff] %vm18_vm0, %v80_v20 }
  0x92   :  { %v89_v22 = vld [vmem:[#allocation2] sm:$0xff] }
  0x93   :  { %v97_v23 = vadd.f32 %v126_v21, %v89_v22  ;;  %v90_v24 = vld [vmem:[#allocation2 + $0x8] sm:$0xff] }
  0x94   :  { %v98_v25 = vadd.f32 %v126_v21, %v90_v24 }
  0x95   :  { %101 = vst.msk [vmem:[%s202_s3] sm:$0xff] %vm18_vm0, %v97_v23 }
  0x96   :  { %102 = vst.msk [vmem:[%s202_s3 + $0x8] sm:$0xff] %vm18_vm0, %v98_v25  ;;  %v91_v26 = vld [vmem:[#allocation2 + $0x10] sm:$0xff] }
  0x97   :  { %v99_v27 = vadd.f32 %v126_v21, %v91_v26  ;;  %v92_v28 = vld [vmem:[#allocation2 + $0x18] sm:$0xff] }
  0x98   :  { %v100_v29 = vadd.f32 %v126_v21, %v92_v28 }
  0x99   :  { %103 = vst.msk [vmem:[%s202_s3 + $0x10] sm:$0xff] %vm18_vm0, %v99_v27 }
  0x9a   :  { %104 = vst.msk [vmem:[%s202_s3 + $0x18] sm:$0xff] %vm18_vm0, %v100_v29 }

// kernel: decoder_forward.29
= control target key start
LH: loop header
LB: loop body
LE: loop exit
PB: predicated region body
PF: predicated region fallthrough
CT: control target
= control target key end

     0   :  { %vm18_vm0 = vcmask 523264   ;;  %v242_v2 = vmov 0.0   ;;  %vm33_vm1 = vcmask 261120   ;;  %vm21_vm2 = vcmask 517120   ;;  %s334_s1 = inlined_call_operand.vmem [shape: f32[32,64], index: 1, kind: input, shape index: {}]   ;;  %s335_s0 = inlined_call_operand.vmem [shape: f32[18,32], index: 0, kind: input, shape index: {}]   ;;  %s336_s2 = inlined_call_operand.vmem [shape: f32[1,64], index: 2, kind: input, shape index: {}]   ;;  %s337_s3 = inlined_call_operand.vmem [shape: f32[18,64], index: 3, kind: output, shape index: {}]  }
   0x1   :  { %v32_v0 = vld [vmem:[%s334_s1 + $0x18] sm:$0xff]  ;;  %v31_v1 = vld [vmem:[%s334_s1 + $0x10] sm:$0xff]  ;;  %19 = vst.msk [vmem:[#allocation2] sm:$0xff] %vm18_vm0, %v242_v2  ;;  %v30_v3 = vld [vmem:[%s334_s1 + $0x8] sm:$0xff] }
   0x2   :  { %55 = vmatpush.msra.mxu0 %v32_v0  ;;  %220 = vmatpush.msra.mxu1 %v32_v0  ;;  %20 = vst.msk [vmem:[#allocation2 + $0x8] sm:$0xff] %vm18_vm0, %v242_v2  ;;  %v29_v4 = vld [vmem:[%s334_s1] sm:$0xff]  ;;  %v27_v6 = vld [vmem:[%s335_s0 + $0x8] sm:$0xff]  ;;  %v28_v7 = vld [vmem:[%s335_s0 + $0x10] sm:$0x3] }
   0x3   :  { %221 = vmatpush.msra.mxu2 %v32_v0  ;;  %v26_v5 = vld [vmem:[%s335_s0] sm:$0xff]  ;;  %22 = vst.msk [vmem:[#allocation2 + $0x10] sm:$0x3] %vm21_vm2, %v242_v2 }
   0x4   :  { %56 = vmatpush.msra.mxu0 %v31_v1  ;;  %222 = vmatpush.msra.mxu1 %v31_v1  ;;  %v229_v16 = vld [vmem:[%s336_s2] ss:$0 sm:$0xff] }
   0x5   :  { %223 = vmatpush.msra.mxu2 %v31_v1 }
   0x6   :  { %57 = vmatpush.msra.mxu0 %v30_v3  ;;  %224 = vmatpush.msra.mxu1 %v30_v3 }
   0x7   :  { %225 = vmatpush.msra.mxu2 %v30_v3 }
   0x8   :  { %58 = vmatpush.msra.mxu0 %v29_v4  ;;  %226 = vmatpush.msra.mxu1 %v29_v4  ;;  %v23_v8 = vld [vmem:[#allocation2] sm:$0xff] }
   0x9   :  { %227 = vmatpush.msra.mxu2 %v29_v4  ;;  %217 = vmatmul.msk.f32.vlgmr.msra.gmra.mxu0 %vm33_vm1, %v26_v5  ;;  %v24_v9 = vld [vmem:[#allocation2 + $0x8] sm:$0xff] }
   0xa   :  { %218 = vmatmul.msk.f32.vlgmr.msra.gmra.mxu1 %vm33_vm1, %v27_v6  ;;  %219 = vmatmul.msk.f32.vlgmr.msra.gmra.mxu2 %vm33_vm1, %v28_v7  ;;  %v25_v14 = vld [vmem:[#allocation2 + $0x10] sm:$0x3] }
  0x86   :  { %v60_v10 = vpop.f32.mrf.mxu0 }
  0x87   :  { %v69_v11 = vadd.f32 %v60_v10, %v23_v8  ;;  %v63_v12 = vpop.f32.mrf.mxu1 }
  0x88   :  { %v70_v13 = vadd.f32 %v63_v12, %v24_v9 }
  0x89   :  { %73 = vst.msk [vmem:[#allocation2] sm:$0xff] %vm18_vm0, %v69_v11 }
  0x8a   :  { %74 = vst.msk [vmem:[#allocation2 + $0x8] sm:$0xff] %vm18_vm0, %v70_v13 }
  0x8d   :  { %v66_v15 = vpop.f32.mrf.mxu2 }
  0x8e   :  { %v71_v17 = vadd.f32 %v66_v15, %v25_v14 }
  0x90   :  { %76 = vst.msk [vmem:[#allocation2 + $0x10] sm:$0x3] %vm21_vm2, %v71_v17  ;;  %v80_v18 = vld [vmem:[#allocation2] sm:$0xff] }
  0x91   :  { %v81_v19 = vld [vmem:[#allocation2 + $0x8] sm:$0xff]  ;;  %v293_v20 = vadd.f32 %v229_v16, %v80_v18 }
  0x92   :  { %v295_v21 = vadd.f32 %v229_v16, %v81_v19 }
  0x93   :  { %v298_v22 = vmul.f32 0.70710677, %v293_v20 }
  0x94   :  { %v301_v23 = vmul.f32 0.70710677, %v295_v21 }
  0x95   :  { %v93_v24 = vand.u32 2147483647, %v298_v22  ;;  %vm192_vm15 = vcmp.ge.f32.partialorder %v298_v22, 0.0 }
  0x96   :  { %v94_v25 = vand.u32 2147483647, %v301_v23  ;;  %vm193_vm1 = vcmp.ge.f32.partialorder %v301_v23, 0.0 }
  0x97   :  { %v82_v26 = vld [vmem:[#allocation2 + $0x10] sm:$0x3]  ;;  %v96_v27 = vmul.f32 0.3275911, %v93_v24  ;;  %v174_v55 = vsub.f32 0.0, %v93_v24 }
  0x98   :  { %v305_v28 = vadd.f32 %v229_v16, %v82_v26  ;;  %v97_v29 = vmul.f32 0.3275911, %v94_v25  ;;  %v175_v62 = vsub.f32 0.0, %v94_v25 }
  0x99   :  { %v99_v30 = vadd.f32 1.0, %v96_v27  ;;  %v177_v5 = vmul.f32 %v174_v55, %v93_v24 }
  0x9a   :  { %v308_v31 = vmul.f32 0.70710677, %v305_v28  ;;  %v100_v32 = vadd.f32 1.0, %v97_v29  ;;  %v178_v8 = vmul.f32 %v175_v62, %v94_v25 }
  0x9b   :  { %230 = vrcp.f32 %v99_v30  ;;  %vm107_vm3 = vweird.f32 %v99_v30  ;;  %v113_v41 = vand.u32 2147483648, %v99_v30  ;;  %v111_v44 = vand.u32 2147483647, %v99_v30 }
  0x9c   :  { %v311_v33 = vand.u32 2147483647, %v308_v31  ;;  %232 = vrcp.f32 %v100_v32  ;;  %v128_v45 = vand.u32 2147483648, %v100_v32  ;;  %vm122_vm5 = vweird.f32 %v100_v32 }
  0x9d   :  { %v126_v47 = vand.u32 2147483647, %v100_v32  ;;  %v114_v50 = vor.u32 1.1754944e-38, %v113_v41  ;;  %vm112_vm8 = vcmp.eq.f32.partialorder %v111_v44, 8.507059e+37  ;;  %v180_v16 = vmul.f32 1.442695, %v177_v5 }
  0x9e   :  { %v98_v34 = vmul.f32 0.3275911, %v311_v33  ;;  %v129_v54 = vor.u32 1.1754944e-38, %v128_v45  ;;  %v176_v13 = vsub.f32 0.0, %v311_v33  ;;  %v182_v18 = vmul.f32 1.442695, %v178_v8 }
  0x9f   :  { %vm127_vm10 = vcmp.eq.f32.partialorder %v126_v47, 8.507059e+37 }
  0xa0   :  { %v101_v35 = vadd.f32 1.0, %v98_v34  ;;  %v179_v24 = vmul.f32 %v176_v13, %v311_v33 }
  0xa1   :  { %v231_v36 = vpop.eup %230 }
  0xa2   :  { %v233_v37 = vpop.eup %232  ;;  %v103_v38 = vmul.f32 %v231_v36, %v99_v30  ;;  %234 = vrcp.f32 %v101_v35  ;;  %vm108_vm4 = vweird.f32 %v231_v36  ;;  %v143_v60 = vand.u32 2147483648, %v101_v35 }
  0xa3   :  { %v118_v39 = vmul.f32 %v233_v37, %v100_v32  ;;  %vm123_vm6 = vweird.f32 %v233_v37  ;;  %vm109_vm7 = vmor %vm107_vm3, %vm108_vm4  ;;  %v141_v0 = vand.u32 2147483647, %v101_v35  ;;  %vm137_vm12 = vweird.f32 %v101_v35 }
  0xa4   :  { %v104_v40 = vsub.f32 1.0, %v103_v38  ;;  %vm124_vm9 = vmor %vm122_vm5, %vm123_vm6  ;;  %v144_v6 = vor.u32 1.1754944e-38, %v143_v60  ;;  %236 = vpow2.f32 %v180_v16  ;;  %vm194_vm3 = vcmp.ge.f32.partialorder %v308_v31, 0.0 }
  0xa5   :  { %v119_v42 = vsub.f32 1.0, %v118_v39  ;;  %vm142_vm14 = vcmp.eq.f32.partialorder %v141_v0, 8.507059e+37  ;;  %238 = vpow2.f32 %v182_v18 }
  0xa6   :  { %v105_v43 = vmul.f32 %v231_v36, %v104_v40 }
  0xa7   :  { %v120_v46 = vmul.f32 %v233_v37, %v119_v42 }
  0xa8   :  { %v235_v48 = vpop.eup %234  ;;  %v106_v49 = vadd.f32 %v231_v36, %v105_v43 }
  0xa9   :  { %v121_v51 = vadd.f32 %v233_v37, %v120_v46  ;;  %v133_v52 = vmul.f32 %v235_v48, %v101_v35  ;;  %vm138_vm11 = vweird.f32 %v235_v48 }
  0xaa   :  { %v110_v53 = vsel %vm109_vm7, %v231_v36, %v106_v49  ;;  %vm139_vm13 = vmor %vm137_vm12, %vm138_vm11  ;;  %v184_v36 = vmul.f32 1.442695, %v179_v24  ;;  %v237_v40 = vpop.eup %236 }
  0xab   :  { %v115_v56 = vsel %vm112_vm8, %v114_v50, %v110_v53  ;;  %v125_v57 = vsel %vm124_vm9, %v233_v37, %v121_v51  ;;  %v134_v58 = vsub.f32 1.0, %v133_v52  ;;  %v239_v43 = vpop.eup %238 }
  0xac   :  { %v130_v59 = vsel %vm127_vm10, %v129_v54, %v125_v57  ;;  %v147_v61 = vmul.f32 1.0614054, %v115_v56  ;;  %240 = vpow2.f32 %v184_v36 }
  0xad   :  { %v135_v63 = vmul.f32 %v235_v48, %v134_v58  ;;  %v148_v1 = vmul.f32 1.0614054, %v130_v59  ;;  %v202_v58 = vmul.f32 0.5, %v295_v21  ;;  %v203_v21 = vmul.f32 0.5, %v305_v28 }
  0xae   :  { %v150_v2 = vadd.f32 -1.4531521, %v147_v61 }
  0xaf   :  { %v136_v3 = vadd.f32 %v235_v48, %v135_v63  ;;  %v151_v4 = vadd.f32 -1.4531521, %v148_v1 }
  0xb0   :  { %v153_v7 = vmul.f32 %v150_v2, %v115_v56 }
  0xb1   :  { %v140_v9 = vsel %vm139_vm13, %v235_v48, %v136_v3  ;;  %v154_v10 = vmul.f32 %v151_v4, %v130_v59 }
  0xb2   :  { %v145_v11 = vsel %vm142_vm14, %v144_v6, %v140_v9  ;;  %v156_v12 = vadd.f32 1.4214138, %v153_v7  ;;  %v241_v52 = vpop.eup %240 }
  0xb3   :  { %v149_v14 = vmul.f32 1.0614054, %v145_v11  ;;  %v157_v15 = vadd.f32 1.4214138, %v154_v10 }
  0xb4   :  { %v159_v17 = vmul.f32 %v156_v12, %v115_v56 }
  0xb5   :  { %v152_v19 = vadd.f32 -1.4531521, %v149_v14  ;;  %v160_v26 = vmul.f32 %v157_v15, %v130_v59 }
  0xb6   :  { %v162_v27 = vadd.f32 -0.28449672, %v159_v17 }
  0xb7   :  { %v155_v29 = vmul.f32 %v152_v19, %v145_v11  ;;  %v163_v30 = vadd.f32 -0.28449672, %v160_v26 }
  0xb8   :  { %v165_v25 = vmul.f32 %v162_v27, %v115_v56 }
  0xb9   :  { %v158_v32 = vadd.f32 1.4214138, %v155_v29  ;;  %v166_v34 = vmul.f32 %v163_v30, %v130_v59 }
  0xba   :  { %v168_v35 = vadd.f32 0.2548296, %v165_v25 }
  0xbb   :  { %v161_v37 = vmul.f32 %v158_v32, %v145_v11  ;;  %v169_v38 = vadd.f32 0.2548296, %v166_v34 }
  0xbc   :  { %v171_v39 = vmul.f32 %v168_v35, %v115_v56  ;;  %v201_v56 = vmul.f32 0.5, %v293_v20 }
  0xbd   :  { %v164_v41 = vadd.f32 -0.28449672, %v161_v37  ;;  %v172_v42 = vmul.f32 %v169_v38, %v130_v59 }
  0xbe   :  { %v186_v44 = vmul.f32 %v237_v40, %v171_v39 }
  0xbf   :  { %v167_v45 = vmul.f32 %v164_v41, %v145_v11  ;;  %v187_v33 = vmul.f32 %v239_v43, %v172_v42 }
  0xc0   :  { %v189_v46 = vsub.f32 1.0, %v186_v44 }
  0xc1   :  { %v170_v47 = vadd.f32 0.2548296, %v167_v45  ;;  %v190_v48 = vsub.f32 1.0, %v187_v33 }
  0xc2   :  { %v195_v49 = vsub.f32 0.0, %v189_v46 }
  0xc3   :  { %v173_v50 = vmul.f32 %v170_v47, %v145_v11  ;;  %v196_v51 = vsub.f32 0.0, %v190_v48 }
  0xc4   :  { %v198_v53 = vsel %vm192_vm15, %v189_v46, %v195_v49 }
  0xc5   :  { %v188_v54 = vmul.f32 %v241_v52, %v173_v50  ;;  %v199_v55 = vsel %vm193_vm1, %v190_v48, %v196_v51  ;;  %v204_v57 = vadd.f32 1.0, %v198_v53 }
  0xc6   :  { %v205_v59 = vadd.f32 1.0, %v199_v55 }
  0xc7   :  { %v191_v60 = vsub.f32 1.0, %v188_v54  ;;  %v207_v61 = vmul.f32 %v204_v57, %v201_v56 }
  0xc8   :  { %v208_v62 = vmul.f32 %v205_v59, %v202_v58 }
  0xc9   :  { %v197_v63 = vsub.f32 0.0, %v191_v60  ;;  %210 = vst.msk [vmem:[%s337_s3] sm:$0xff] %vm18_vm0, %v207_v61 }
  0xca   :  { %211 = vst.msk [vmem:[%s337_s3 + $0x8] sm:$0xff] %vm18_vm0, %v208_v62 }
  0xcb   :  { %v200_v20 = vsel %vm194_vm3, %v191_v60, %v197_v63 }
  0xcc   :  { %v206_v22 = vadd.f32 1.0, %v200_v20 }
  0xce   :  { %v209_v23 = vmul.f32 %v206_v22, %v203_v21 }
  0xd0   :  { %212 = vst.msk [vmem:[%s337_s3 + $0x10] sm:$0x3] %vm21_vm2, %v209_v23 }

// kernel: decoder_forward.27
= control target key start
LH: loop header
LB: loop body
LE: loop exit
PB: predicated region body
PF: predicated region fallthrough
CT: control target
= control target key end

     0   :  { %s789_s12 = smov 0   ;;  %s882_s0 = inlined_call_operand.vmem [shape: f32[2,4,9,8], index: 0, kind: input, shape index: {}]   ;;  %s883_s1 = inlined_call_operand.vmem [shape: f32[2,4,16,8], index: 1, kind: input, shape index: {}]   ;;  %s884_s2 = inlined_call_operand.vmem [shape: f32[2,4,16,8], index: 2, kind: input, shape index: {}]   ;;  %s885_s3 = inlined_call_operand.vmem [shape: f32[2,4,9,8], index: 3, kind: output, shape index: {}]  }
   0x1 LB: > { %s678_s13 = sadd.s32 4294967295, %s767_s12   ;;  %p682_p0 = scmp.ge.s32.totalorder %s767_s12, 1  ;;  %s767_s12 = sphi %s789_s12, %s13_s12  }
   0x2   : > { %p157_p1 = scmp.lt.s32.totalorder %s767_s12, 3 }
   0x4   : > { %p158_p2 = pnand %p682_p0, %p157_p1 }
   0x5   : > { %p191_p3 = scmp.lt.s32.totalorder (!%p158_p2), %s678_s13, 1 }
   0x6   : > { %161 = sbr.rel (%p158_p2) target bundleno = 563 (0x233), region = 32 }
   0xb   : > { %s887_s13 = smov (!%p191_p3, %s678_s13), 1  ;;  %vm235_vm0 = vcmask 64512   ;;  %vm384_vm1 = vcmask 130048   ;;  %vm388_vm2 = vcmask 122880   ;;  %vm591_vm3 = vcmask 57344  }
   0xc   : > { %s797_s14 = sshll.u32 %s887_s13, 6 }
   0xd   : > { %s200_s17 = scalar_lea.vmem %s883_s1, %s797_s14  ;;  %s195_s20 = scalar_lea.vmem %s882_s0, %s797_s14 }
   0xe   : > { %v220_v0 = vld [vmem:[%s200_s17 + $0x8] sm:$0xff]  ;;  %v219_v2 = vld [vmem:[%s200_s17] sm:$0xff]  ;;  %v222_v4 = vld [vmem:[%s200_s17 + $0x18] sm:$0xff]  ;;  %s205_s23 = scalar_lea.vmem %s884_s2, %s797_s14  ;;  %s210_s26 = scalar_lea.vmem %s885_s3, %s797_s14 }
   0xf   : > { %v224_v1 = vld [vmem:[%s200_s17 + $0x28] sm:$0xff]  ;;  %691 = vmatpush.xpose.msk.msra.mxu0 %vm235_vm0, %v220_v0  ;;  %v223_v3 = vld [vmem:[%s200_s17 + $0x20] sm:$0xff]  ;;  %v226_v5 = vld [vmem:[%s200_s17 + $0x38] sm:$0xff]  ;;  %695 = vmatpush.xpose.msk.msra.mxu1 %vm235_vm0, %v222_v4 }
  0x10   : > { %699 = vmatpush.xpose.msk.msra.mxu2 %vm235_vm0, %v224_v1  ;;  %703 = vmatpush.xpose.msk.msra.mxu3 %vm235_vm0, %v226_v5  ;;  %v221_v6 = vld [vmem:[%s200_s17 + $0x10] sm:$0xff]  ;;  %v211_v8 = vld [vmem:[%s195_s20] sm:$0xff]  ;;  %v216_v12 = vld [vmem:[%s195_s20 + $0x28] sm:$0x1] }
  0x11   : > { %v225_v7 = vld [vmem:[%s200_s17 + $0x30] sm:$0xff]  ;;  %v215_v9 = vld [vmem:[%s195_s20 + $0x20] sm:$0xff]  ;;  %v212_v13 = vld [vmem:[%s195_s20 + $0x8] sm:$0x1] }
  0x12   : > { %v213_v10 = vld [vmem:[%s195_s20 + $0x10] sm:$0xff]  ;;  %v214_v14 = vld [vmem:[%s195_s20 + $0x18] sm:$0x1] }
  0x13   : > { %692 = vmatpush.xpose.msk.msra.mxu0 %vm235_vm0, %v219_v2  ;;  %696 = vmatpush.xpose.msk.msra.mxu1 %vm235_vm0, %v221_v6  ;;  %v217_v11 = vld [vmem:[%s195_s20 + $0x30] sm:$0xff]  ;;  %v218_v15 = vld [vmem:[%s195_s20 + $0x38] sm:$0x1] }
  0x14   : > { %700 = vmatpush.xpose.msk.msra.mxu2 %vm235_vm0, %v223_v3  ;;  %704 = vmatpush.xpose.msk.msra.mxu3 %vm235_vm0, %v225_v7 }
  0x16   : > { %693 = vmatmul.msk.f32.vlgmr.msra.gmra.mxu0 %vm235_vm0, %v211_v8  ;;  %697 = vmatmul.msk.f32.vlgmr.msra.gmra.mxu1 %vm235_vm0, %v213_v10 }
  0x17   : > { %701 = vmatmul.msk.f32.vlgmr.msra.gmra.mxu2 %vm235_vm0, %v215_v9  ;;  %705 = vmatmul.msk.f32.vlgmr.msra.gmra.mxu3 %vm235_vm0, %v217_v11 }
  0x1e   : > { %694 = vmatmul.msk.f32.gmra.mxu0 %vm235_vm0, %v212_v13  ;;  %698 = vmatmul.msk.f32.gmra.mxu1 %vm235_vm0, %v214_v14 }
  0x1f   : > { %702 = vmatmul.msk.f32.gmra.mxu2 %vm235_vm0, %v216_v12  ;;  %706 = vmatmul.msk.f32.gmra.mxu3 %vm235_vm0, %v218_v15 }
  0x93   : > { %v265_v16 = vpop.f32.mrf.mxu0  ;;  %v300_v18 = vpop.f32.mrf.mxu1 }
  0x94   : > { %v376_v17 = vmul.f32 0.35355338, %v265_v16  ;;  %v378_v20 = vmul.f32 0.35355338, %v300_v18  ;;  %v228_v16 = vld [vmem:[%s205_s23 + $0x8] sm:$0xff] }
  0x95   : > { %494 = vmatpush.msrb.mxu0 %v228_v16  ;;  %v232_v18 = vld [vmem:[%s205_s23 + $0x28] sm:$0xff] }
  0x96   : > { %v385_v19 = vsel %vm384_vm1, %v376_v17, -inf  ;;  %v392_v25 = vsel %vm384_vm1, %v378_v20, -inf  ;;  %552 = vmatpush.msrb.mxu2 %v232_v18 }
  0x97   : > { %386 = vmax.xlane.f32.xlu1 %v385_v19  ;;  %v234_v19 = vld [vmem:[%s205_s23 + $0x38] sm:$0xff] }
  0x98   : > { %581 = vmatpush.msrb.mxu3 %v234_v19 }
  0x9a   : > { %v335_v21 = vpop.f32.mrf.mxu2  ;;  %v370_v23 = vpop.f32.mrf.mxu3 }
  0x9b   : > { %v380_v22 = vmul.f32 0.35355338, %v335_v21  ;;  %v303_v26 = vpop.f32.mrf.mxu1  ;;  %v382_v27 = vmul.f32 0.35355338, %v370_v23  ;;  %v268_v32 = vpop.f32.mrf.mxu0  ;;  %v230_v21 = vld [vmem:[%s205_s23 + $0x18] sm:$0xff]  ;;  %v229_v23 = vld [vmem:[%s205_s23 + $0x10] sm:$0xff] }
  0x9c   : > { %v379_v28 = vmul.f32 0.35355338, %v303_v26  ;;  %v377_v36 = vmul.f32 0.35355338, %v268_v32  ;;  %523 = vmatpush.msrb.mxu1 %v230_v21 }
  0x9d   : > { %v398_v24 = vsel %vm384_vm1, %v380_v22, -inf  ;;  %v404_v31 = vsel %vm384_vm1, %v382_v27, -inf }
  0x9e   : > { %399 = vmax.xlane.f32.xlu0 %v398_v24  ;;  %v395_v35 = vsel %vm388_vm2, %v379_v28, -inf  ;;  %v389_v39 = vsel %vm388_vm2, %v377_v36, -inf  ;;  %524 = vmatpush.msrb.mxu1 %v229_v23 }
  0x9f   : > { %393 = vmax.xlane.f32.xlu1 %v392_v25 }
  0xa2   : > { %v338_v29 = vpop.f32.mrf.mxu2  ;;  %v373_v33 = vpop.f32.mrf.mxu3 }
  0xa3   : > { %v381_v30 = vmul.f32 0.35355338, %v338_v29  ;;  %v383_v37 = vmul.f32 0.35355338, %v373_v33 }
  0xa5   : > { %v401_v34 = vsel %vm388_vm2, %v381_v30, -inf  ;;  %v407_v38 = vsel %vm388_vm2, %v383_v37, -inf }
  0xa6   : > { %405 = vmax.xlane.f32.xlu0 %v404_v31  ;;  %402 = vmax.xlane.f32.xlu2 %v401_v34 }
  0xa7   : > { %396 = vmax.xlane.f32.xlu1 %v395_v35 }
  0xae   : > { %408 = vmax.xlane.f32.xlu2 %v407_v38  ;;  %390 = vmax.xlane.f32.xlu0 %v389_v39 }
 0x10a   : > { %v387_v40 = vpop.xlane.xlu1 %386 }
 0x10b   : > { %v410_v41 = vsub.f32 %v376_v17, %v387_v40  ;;  %v227_v17 = vld [vmem:[%s205_s23] sm:$0xff] }
 0x10c   : > { %495 = vmatpush.msrb.mxu0 %v227_v17 }
 0x10d   : > { %v418_v42 = vmul.f32 1.442695, %v410_v41 }
 0x10f   : > { %729 = vpow2.f32 %v418_v42 }
 0x111   : > { %v400_v43 = vpop.xlane.xlu0 %399 }
 0x112   : > { %v414_v44 = vsub.f32 %v380_v22, %v400_v43  ;;  %v394_v45 = vpop.xlane.xlu1 %393  ;;  %v233_v22 = vld [vmem:[%s205_s23 + $0x30] sm:$0xff] }
 0x113   : > { %v412_v47 = vsub.f32 %v378_v20, %v394_v45  ;;  %v231_v20 = vld [vmem:[%s205_s23 + $0x20] sm:$0xff]  ;;  %582 = vmatpush.msrb.mxu3 %v233_v22 }
 0x114   : > { %v426_v46 = vmul.f32 1.442695, %v414_v44  ;;  %553 = vmatpush.msrb.mxu2 %v231_v20 }
 0x115   : > { %v831_v48 = vpop.eup %729  ;;  %v422_v50 = vmul.f32 1.442695, %v412_v47 }
 0x116   : > { %731 = vpow2.f32 %v426_v46  ;;  %v434_v49 = vsel %vm384_vm1, %v831_v48, 0.0 }
 0x117   : > { %435 = vadd.xlane.f32.xlu1 %v434_v49  ;;  %733 = vpow2.f32 %v422_v50 }
 0x119   : > { %v406_v51 = vpop.xlane.xlu0 %405  ;;  %v403_v52 = vpop.xlane.xlu2 %402 }
 0x11a   : > { %v416_v53 = vsub.f32 %v382_v27, %v406_v51  ;;  %v415_v56 = vsub.f32 %v381_v30, %v403_v52  ;;  %v397_v59 = vpop.xlane.xlu1 %396 }
 0x11b   : > { %v413_v2 = vsub.f32 %v379_v28, %v397_v59 }
 0x11c   : > { %v835_v54 = vpop.eup %731  ;;  %v430_v55 = vmul.f32 1.442695, %v416_v53  ;;  %v428_v58 = vmul.f32 1.442695, %v415_v56 }
 0x11d   : > { %v446_v57 = vsel %vm384_vm1, %v835_v54, 0.0  ;;  %v839_v62 = vpop.eup %733  ;;  %v424_v7 = vmul.f32 1.442695, %v413_v2 }
 0x11e   : > { %735 = vpow2.f32 %v430_v55  ;;  %447 = vadd.xlane.f32.xlu2 %v446_v57  ;;  %v440_v5 = vsel %vm384_vm1, %v839_v62, 0.0 }
 0x11f   : > { %737 = vpow2.f32 %v428_v58 }
 0x121   : > { %v409_v60 = vpop.xlane.xlu2 %408  ;;  %v391_v61 = vpop.xlane.xlu0 %390 }
 0x122   : > { %v417_v63 = vsub.f32 %v383_v37, %v409_v60  ;;  %v411_v0 = vsub.f32 %v377_v36, %v391_v61 }
 0x124   : > { %v841_v1 = vpop.eup %735  ;;  %v432_v3 = vmul.f32 1.442695, %v417_v63  ;;  %v420_v4 = vmul.f32 1.442695, %v411_v0 }
 0x125   : > { %v452_v6 = vsel %vm384_vm1, %v841_v1, 0.0  ;;  %v847_v8 = vpop.eup %737 }
 0x126   : > { %739 = vpow2.f32 %v432_v3  ;;  %441 = vadd.xlane.f32.xlu2 %v440_v5  ;;  %453 = vadd.xlane.f32.xlu0 %v452_v6  ;;  %v449_v12 = vsel %vm388_vm2, %v847_v8, 0.0 }
 0x127   : > { %741 = vpow2.f32 %v420_v4 }
 0x128   : > { %743 = vpow2.f32 %v424_v7 }
 0x12c   : > { %v740_v9 = vpop.eup %739 }
 0x12d   : > { %v742_v10 = vpop.eup %741  ;;  %v455_v11 = vsel %vm388_vm2, %v740_v9, 0.0 }
 0x12e   : > { %456 = vadd.xlane.f32.xlu1 %v455_v11  ;;  %450 = vadd.xlane.f32.xlu0 %v449_v12  ;;  %v437_v13 = vsel %vm388_vm2, %v742_v10, 0.0  ;;  %v744_v14 = vpop.eup %743 }
 0x12f   : > { %438 = vadd.xlane.f32.xlu2 %v437_v13  ;;  %v443_v15 = vsel %vm388_vm2, %v744_v14, 0.0 }
 0x136   : > { %444 = vadd.xlane.f32.xlu0 %v443_v15 }
 0x18a   : > { %v436_v24 = vpop.xlane.xlu1 %435 }
 0x18b   : > { %745 = vrcp.f32 %v436_v24 }
 0x191   : > { %v448_v25 = vpop.xlane.xlu2 %447  ;;  %v746_v26 = vpop.eup %745 }
 0x192   : > { %747 = vrcp.f32 %v448_v25  ;;  %v466_v27 = vmul.f32 %v746_v26, %v831_v48 }
 0x194   : > { %707 = vmatmul.msk.f32.vlgmr.msrb.gmra.mxu0 %vm384_vm1, %v466_v27 }
 0x198   : > { %v748_v28 = vpop.eup %747 }
 0x199   : > { %v442_v29 = vpop.xlane.xlu2 %441  ;;  %v454_v30 = vpop.xlane.xlu0 %453  ;;  %v470_v31 = vmul.f32 %v748_v28, %v835_v54 }
 0x19a   : > { %749 = vrcp.f32 %v442_v29 }
 0x19b   : > { %751 = vrcp.f32 %v454_v30  ;;  %711 = vmatmul.msk.f32.vlgmr.msrb.gmra.mxu2 %vm384_vm1, %v470_v31 }
 0x1a0   : > { %v750_v32 = vpop.eup %749 }
 0x1a1   : > { %v752_v33 = vpop.eup %751  ;;  %v457_v34 = vpop.xlane.xlu1 %456  ;;  %v468_v36 = vmul.f32 %v750_v32, %v839_v62 }
 0x1a2   : > { %v451_v35 = vpop.xlane.xlu0 %450  ;;  %753 = vrcp.f32 %v457_v34  ;;  %v439_v37 = vpop.xlane.xlu2 %438  ;;  %v472_v38 = vmul.f32 %v752_v33, %v841_v1 }
 0x1a3   : > { %755 = vrcp.f32 %v439_v37  ;;  %709 = vmatmul.msk.f32.vlgmr.msrb.gmra.mxu1 %vm384_vm1, %v468_v36 }
 0x1a4   : > { %757 = vrcp.f32 %v451_v35  ;;  %713 = vmatmul.msk.f32.vlgmr.msrb.gmra.mxu3 %vm384_vm1, %v472_v38 }
 0x1a8   : > { %v754_v39 = vpop.eup %753 }
 0x1a9   : > { %v756_v40 = vpop.eup %755  ;;  %v473_v42 = vmul.f32 %v754_v39, %v740_v9 }
 0x1aa   : > { %v445_v41 = vpop.xlane.xlu0 %444  ;;  %v758_v43 = vpop.eup %757  ;;  %v467_v44 = vmul.f32 %v756_v40, %v742_v10 }
 0x1ab   : > { %759 = vrcp.f32 %v445_v41  ;;  %v471_v45 = vmul.f32 %v758_v43, %v847_v8 }
 0x1ac   : > { %708 = vmatmul.msk.f32.gmra.mxu0 %vm384_vm1, %v467_v44  ;;  %714 = vmatmul.msk.f32.gmra.mxu3 %vm384_vm1, %v473_v42 }
 0x1ad   : > { %712 = vmatmul.msk.f32.gmra.mxu2 %vm384_vm1, %v471_v45 }
 0x1b1   : > { %v760_v46 = vpop.eup %759 }
 0x1b2   : > { %v469_v47 = vmul.f32 %v760_v46, %v744_v14 }
 0x1b4   : > { %710 = vmatmul.msk.f32.gmra.mxu1 %vm384_vm1, %v469_v47 }
 0x211   : > { %v497_v48 = vpop.f32.mrf.mxu0 }
 0x212   : > { %590 = vst.msk [vmem:[%s210_s26] sm:$0xff] %vm235_vm0, %v497_v48 }
 0x21e   : > { %v555_v49 = vpop.f32.mrf.mxu2 }
 0x21f   : > { %595 = vst.msk [vmem:[%s210_s26 + $0x20] sm:$0xff] %vm235_vm0, %v555_v49 }
 0x220   : > { %v526_v50 = vpop.f32.mrf.mxu1 }
 0x221   : > { %593 = vst.msk [vmem:[%s210_s26 + $0x10] sm:$0xff] %vm235_vm0, %v526_v50 }
 0x227   : > { %v584_v51 = vpop.f32.mrf.mxu3 }
 0x228   : > { %597 = vst.msk [vmem:[%s210_s26 + $0x30] sm:$0xff] %vm235_vm0, %v584_v51 }
 0x229   : > { %v500_v52 = vpop.f32.mrf.mxu0 }
 0x22a   : > { %592 = vst.msk [vmem:[%s210_s26 + $0x8] sm:$0x1] %vm591_vm3, %v500_v52 }
 0x22f   : > { %v587_v53 = vpop.f32.mrf.mxu3 }
 0x230   : > { %v558_v54 = vpop.f32.mrf.mxu2  ;;  %598 = vst.msk [vmem:[%s210_s26 + $0x38] sm:$0x1] %vm591_vm3, %v587_v53 }
 0x231   : > { %v529_v55 = vpop.f32.mrf.mxu1  ;;  %596 = vst.msk [vmem:[%s210_s26 + $0x28] sm:$0x1] %vm591_vm3, %v558_v54 }
 0x232   : > { %594 = vst.msk [vmem:[%s210_s26 + $0x18] sm:$0x1] %vm591_vm3, %v529_v55 }
 0x233 PF: > { %s13_s12 = sadd.s32 1, %s767_s12  }
 0x234   : > { %p10_p4 = scmp.ge.s32.totalorder %s13_s12, 4  }
 0x236   :  { %12 = sbr.rel (!%p10_p4) target bundleno = 1 (0x1), region = 68 }

// kernel: decoder_forward.30
= control target key start
LH: loop header
LB: loop body
LE: loop exit
PB: predicated region body
PF: predicated region fallthrough
CT: control target
= control target key end

     0   :  { %vm27_vm0 = vcmask 261120   ;;  %v235_v2 = vmov 0.0   ;;  %vm46_vm1 = vcmask 523264   ;;  %vm30_vm2 = vcmask 254976   ;;  %s347_s1 = inlined_call_operand.vmem [shape: f32[64,32], index: 1, kind: input, shape index: {}]   ;;  %s348_s0 = inlined_call_operand.vmem [shape: f32[18,64], index: 0, kind: input, shape index: {}]   ;;  %s349_s2 = inlined_call_operand.vmem [shape: f32[1,32], index: 2, kind: input, shape index: {}]   ;;  %s350_s3 = inlined_call_operand.vmem [shape: f32[18,32], index: 3, kind: input, shape index: {}]   ;;  %s351_s4 = inlined_call_operand.vmem [shape: f32[1,32], index: 4, kind: input, shape index: {}]   ;;  %s352_s5 = inlined_call_operand.vmem [shape: f32[1,32], index: 5, kind: input, shape index: {}]   ;;  %s353_s6 = inlined_call_operand.vmem [shape: f32[18,32], index: 6, kind: output, shape index: {}]  }
   0x1   :  { %v45_v0 = vld [vmem:[%s347_s1 + $0x38] sm:$0xff]  ;;  %v44_v1 = vld [vmem:[%s347_s1 + $0x30] sm:$0xff]  ;;  %28 = vst.msk [vmem:[#allocation2] sm:$0xff] %vm27_vm0, %v235_v2  ;;  %v43_v3 = vld [vmem:[%s347_s1 + $0x28] sm:$0xff]  ;;  %v236_v37 = vmov 32.0  }
   0x2   :  { %64 = vmatpush.msra.mxu0 %v45_v0  ;;  %207 = vmatpush.msra.mxu2 %v45_v0  ;;  %29 = vst.msk [vmem:[#allocation2 + $0x8] sm:$0xff] %vm27_vm0, %v235_v2  ;;  %v42_v4 = vld [vmem:[%s347_s1 + $0x20] sm:$0xff]  ;;  %v41_v5 = vld [vmem:[%s347_s1 + $0x18] sm:$0xff]  ;;  %v40_v6 = vld [vmem:[%s347_s1 + $0x10] sm:$0xff]  ;;  %227 = vrcp.f32 %v236_v37 }
   0x3   :  { %206 = vmatpush.msra.mxu1 %v45_v0  ;;  %v39_v7 = vld [vmem:[%s347_s1 + $0x8] sm:$0xff]  ;;  %v38_v8 = vld [vmem:[%s347_s1] sm:$0xff]  ;;  %v37_v10 = vld [vmem:[%s348_s0 + $0x10] sm:$0x3]  ;;  %31 = vst.msk [vmem:[#allocation2 + $0x10] sm:$0x3] %vm30_vm2, %v235_v2 }
   0x4   :  { %65 = vmatpush.msra.mxu0 %v44_v1  ;;  %209 = vmatpush.msra.mxu2 %v44_v1  ;;  %v35_v9 = vld [vmem:[%s348_s0] sm:$0xff]  ;;  %v36_v11 = vld [vmem:[%s348_s0 + $0x8] sm:$0xff]  ;;  %v105_v31 = vld [vmem:[%s350_s3 + $0x10] sm:$0x3] }
   0x5   :  { %208 = vmatpush.msra.mxu1 %v44_v1  ;;  %v224_v21 = vld [vmem:[%s349_s2] ss:$0 sm:$0xff]  ;;  %v104_v28 = vld [vmem:[%s350_s3 + $0x8] sm:$0xff] }
   0x6   :  { %66 = vmatpush.msra.mxu0 %v43_v3  ;;  %211 = vmatpush.msra.mxu2 %v43_v3  ;;  %v103_v23 = vld [vmem:[%s350_s3] sm:$0xff] }
   0x7   :  { %210 = vmatpush.msra.mxu1 %v43_v3 }
   0x8   :  { %67 = vmatpush.msra.mxu0 %v42_v4  ;;  %213 = vmatpush.msra.mxu2 %v42_v4  ;;  %v32_v12 = vld [vmem:[#allocation2] sm:$0xff]  ;;  %v228_v38 = vpop.eup %227 }
   0x9   :  { %212 = vmatpush.msra.mxu1 %v42_v4  ;;  %v33_v14 = vld [vmem:[#allocation2 + $0x8] sm:$0xff]  ;;  %v121_v39 = vmul.f32 32.0, %v228_v38  ;;  %vm125_vm3 = vweird.f32 %v228_v38 }
   0xa   :  { %68 = vmatpush.msra.mxu0 %v41_v5  ;;  %215 = vmatpush.msra.mxu2 %v41_v5  ;;  %v34_v18 = vld [vmem:[#allocation2 + $0x10] sm:$0x3] }
   0xb   :  { %214 = vmatpush.msra.mxu1 %v41_v5  ;;  %v122_v40 = vsub.f32 1.0, %v121_v39 }
   0xc   :  { %69 = vmatpush.msra.mxu0 %v40_v6  ;;  %217 = vmatpush.msra.mxu2 %v40_v6 }
   0xd   :  { %216 = vmatpush.msra.mxu1 %v40_v6  ;;  %v123_v41 = vmul.f32 %v228_v38, %v122_v40 }
   0xe   :  { %70 = vmatpush.msra.mxu0 %v39_v7  ;;  %219 = vmatpush.msra.mxu2 %v39_v7 }
   0xf   :  { %218 = vmatpush.msra.mxu1 %v39_v7  ;;  %v124_v42 = vadd.f32 %v228_v38, %v123_v41 }
  0x10   :  { %71 = vmatpush.msra.mxu0 %v38_v8  ;;  %221 = vmatpush.msra.mxu2 %v38_v8 }
  0x11   :  { %203 = vmatmul.msk.f32.vlgmr.msra.gmra.mxu0 %vm46_vm1, %v35_v9  ;;  %205 = vmatmul.msk.f32.vlgmr.msra.gmra.mxu2 %vm46_vm1, %v37_v10  ;;  %v126_v43 = vsel %vm125_vm3, %v228_v38, %v124_v42 }
  0x12   :  { %220 = vmatpush.msra.mxu1 %v38_v8 }
  0x13   :  { %204 = vmatmul.msk.f32.vlgmr.msra.gmra.mxu1 %vm46_vm1, %v36_v11 }
  0x8e   :  { %v73_v13 = vpop.f32.mrf.mxu0 }
  0x8f   :  { %v82_v15 = vadd.f32 %v73_v13, %v32_v12  ;;  %v225_v12 = vld [vmem:[%s351_s4] ss:$0 sm:$0xff] }
  0x90   :  { %v76_v16 = vpop.f32.mrf.mxu1 }
  0x91   :  { %86 = vst.msk [vmem:[#allocation2] sm:$0xff] %vm27_vm0, %v82_v15  ;;  %v83_v17 = vadd.f32 %v76_v16, %v33_v14  ;;  %v226_v15 = vld [vmem:[%s352_s5] ss:$0 sm:$0xff] }
  0x93   :  { %87 = vst.msk [vmem:[#allocation2 + $0x8] sm:$0xff] %vm27_vm0, %v83_v17 }
  0x94   :  { %v79_v19 = vpop.f32.mrf.mxu2 }
  0x95   :  { %v84_v20 = vadd.f32 %v79_v19, %v34_v18 }
  0x97   :  { %89 = vst.msk [vmem:[#allocation2 + $0x10] sm:$0x3] %vm30_vm2, %v84_v20 }
  0x98   :  { %v93_v22 = vld [vmem:[#allocation2] sm:$0xff] }
  0x99   :  { %v100_v24 = vadd.f32 %v224_v21, %v93_v22 }
  0x9a   :  { %v94_v25 = vld [vmem:[#allocation2 + $0x8] sm:$0xff] }
  0x9b   :  { %v106_v26 = vadd.f32 %v103_v23, %v100_v24  ;;  %v101_v27 = vadd.f32 %v224_v21, %v94_v25 }
  0x9d   :  { %v111_v29 = vsel %vm27_vm0, %v106_v26, 0.0  ;;  %v107_v33 = vadd.f32 %v104_v28, %v101_v27 }
  0x9e   :  { %112 = vadd.xlane.f32.xlu0 %v111_v29  ;;  %v95_v30 = vld [vmem:[#allocation2 + $0x10] sm:$0x3] }
  0x9f   :  { %v102_v32 = vadd.f32 %v224_v21, %v95_v30  ;;  %v114_v36 = vsel %vm27_vm0, %v107_v33, 0.0 }
  0xa1   :  { %v108_v34 = vadd.f32 %v105_v31, %v102_v32 }
  0xa3   :  { %v117_v35 = vsel %vm30_vm2, %v108_v34, 0.0 }
  0xa4   :  { %118 = vadd.xlane.f32.xlu1 %v117_v35 }
  0xa6   :  { %115 = vadd.xlane.f32.xlu0 %v114_v36 }
 0x111   :  { %v113_v44 = vpop.xlane.xlu0 %112 }
 0x112   :  { %v127_v45 = vmul.f32 %v126_v43, %v113_v44 }
 0x114   :  { %v130_v46 = vsub.f32 %v106_v26, %v127_v45 }
 0x116   :  { %v133_v47 = vmul.f32 %v130_v46, %v130_v46 }
 0x117   :  { %v119_v49 = vpop.xlane.xlu1 %118 }
 0x118   :  { %v136_v48 = vsel %vm27_vm0, %v133_v47, 0.0  ;;  %v129_v52 = vmul.f32 %v126_v43, %v119_v49 }
 0x119   :  { %137 = vadd.xlane.f32.xlu1 %v136_v48  ;;  %v116_v50 = vpop.xlane.xlu0 %115 }
 0x11a   :  { %v128_v51 = vmul.f32 %v126_v43, %v116_v50  ;;  %v132_v55 = vsub.f32 %v108_v34, %v129_v52 }
 0x11c   :  { %v131_v53 = vsub.f32 %v107_v33, %v128_v51  ;;  %v135_v57 = vmul.f32 %v132_v55, %v132_v55 }
 0x11e   :  { %v134_v54 = vmul.f32 %v131_v53, %v131_v53  ;;  %v142_v58 = vsel %vm30_vm2, %v135_v57, 0.0 }
 0x120   :  { %v139_v56 = vsel %vm27_vm0, %v134_v54, 0.0 }
 0x121   :  { %140 = vadd.xlane.f32.xlu2 %v139_v56 }
 0x129   :  { %143 = vadd.xlane.f32.xlu2 %v142_v58 }
 0x18c   :  { %v138_v59 = vpop.xlane.xlu1 %137 }
 0x18d   :  { %v145_v60 = vmul.f32 %v138_v59, %v126_v43 }
 0x18f   :  { %v148_v61 = vadd.f32 1e-12, %v145_v60 }
 0x191   :  { %229 = vrsqrt.f32 %v148_v61  ;;  %vm157_vm5 = vweird.f32 %v148_v61 }
 0x194   :  { %v141_v62 = vpop.xlane.xlu2 %140 }
 0x195   :  { %v146_v63 = vmul.f32 %v141_v62, %v126_v43 }
 0x197   :  { %v230_v0 = vpop.eup %229  ;;  %v149_v1 = vadd.f32 1e-12, %v146_v63 }
 0x198   :  { %v152_v2 = vmul.f32 %v230_v0, %v148_v61  ;;  %vm158_vm4 = vweird.f32 %v230_v0 }
 0x199   :  { %231 = vrsqrt.f32 %v149_v1  ;;  %vm159_vm6 = vmor %vm157_vm5, %vm158_vm4  ;;  %vm167_vm8 = vweird.f32 %v149_v1 }
 0x19a   :  { %v153_v3 = vmul.f32 %v230_v0, %v152_v2 }
 0x19c   :  { %v154_v4 = vmul.f32 0.5, %v153_v3  ;;  %v144_v5 = vpop.xlane.xlu2 %143 }
 0x19d   :  { %v147_v6 = vmul.f32 %v144_v5, %v126_v43 }
 0x19e   :  { %v155_v7 = vsub.f32 1.5, %v154_v4 }
 0x19f   :  { %v232_v8 = vpop.eup %231  ;;  %v150_v9 = vadd.f32 1e-12, %v147_v6 }
 0x1a0   :  { %v156_v10 = vmul.f32 %v230_v0, %v155_v7  ;;  %v162_v11 = vmul.f32 %v232_v8, %v149_v1  ;;  %vm168_vm7 = vweird.f32 %v232_v8 }
 0x1a1   :  { %233 = vrsqrt.f32 %v150_v9  ;;  %vm169_vm9 = vmor %vm167_vm8, %vm168_vm7  ;;  %vm177_vm11 = vweird.f32 %v150_v9 }
 0x1a2   :  { %v160_v13 = vsel %vm159_vm6, %v230_v0, %v156_v10  ;;  %v163_v14 = vmul.f32 %v232_v8, %v162_v11 }
 0x1a3   :  { %v181_v16 = vmul.f32 %v160_v13, %v130_v46 }
 0x1a4   :  { %v164_v17 = vmul.f32 0.5, %v163_v14 }
 0x1a5   :  { %v187_v18 = vmul.f32 %v225_v12, %v181_v16 }
 0x1a6   :  { %v165_v19 = vsub.f32 1.5, %v164_v17 }
 0x1a7   :  { %v234_v20 = vpop.eup %233  ;;  %v193_v21 = vadd.f32 %v226_v15, %v187_v18 }
 0x1a8   :  { %v166_v22 = vmul.f32 %v232_v8, %v165_v19  ;;  %v172_v23 = vmul.f32 %v234_v20, %v150_v9  ;;  %vm178_vm10 = vweird.f32 %v234_v20 }
 0x1a9   :  { %196 = vst.msk [vmem:[%s353_s6] sm:$0xff] %vm27_vm0, %v193_v21  ;;  %vm179_vm12 = vmor %vm177_vm11, %vm178_vm10 }
 0x1aa   :  { %v170_v24 = vsel %vm169_vm9, %v232_v8, %v166_v22  ;;  %v173_v25 = vmul.f32 %v234_v20, %v172_v23 }
 0x1ab   :  { %v182_v26 = vmul.f32 %v170_v24, %v131_v53 }
 0x1ac   :  { %v174_v27 = vmul.f32 0.5, %v173_v25 }
 0x1ad   :  { %v188_v28 = vmul.f32 %v225_v12, %v182_v26 }
 0x1ae   :  { %v175_v29 = vsub.f32 1.5, %v174_v27 }
 0x1af   :  { %v194_v30 = vadd.f32 %v226_v15, %v188_v28 }
 0x1b0   :  { %v176_v31 = vmul.f32 %v234_v20, %v175_v29 }
 0x1b1   :  { %197 = vst.msk [vmem:[%s353_s6 + $0x8] sm:$0xff] %vm27_vm0, %v194_v30 }
 0x1b2   :  { %v180_v32 = vsel %vm179_vm12, %v234_v20, %v176_v31 }
 0x1b3   :  { %v183_v33 = vmul.f32 %v180_v32, %v132_v55 }
 0x1b5   :  { %v189_v34 = vmul.f32 %v225_v12, %v183_v33 }
 0x1b7   :  { %v195_v35 = vadd.f32 %v226_v15, %v189_v34 }
 0x1b9   :  { %198 = vst.msk [vmem:[%s353_s6 + $0x10] sm:$0x3] %vm30_vm2, %v195_v35 }

// kernel: decoder_forward.40
= control target key start
LH: loop header
LB: loop body
LE: loop exit
PB: predicated region body
PF: predicated region fallthrough
CT: control target
= control target key end

     0   :  { %vm24_vm0 = vcmask 261120   ;;  %v345_v2 = vmov 0.0   ;;  %vm27_vm1 = vcmask 254976   ;;  %s463_s1 = inlined_call_operand.vmem [shape: f32[32,32], index: 1, kind: input, shape index: {}]   ;;  %s464_s0 = inlined_call_operand.vmem [shape: f32[18,32], index: 0, kind: input, shape index: {}]   ;;  %s465_s2 = inlined_call_operand.vmem [shape: f32[1,32], index: 2, kind: input, shape index: {}]   ;;  %s466_s3 = inlined_call_operand.vmem [shape: f32[1,32], index: 3, kind: input, shape index: {}]   ;;  %s467_s4 = inlined_call_operand.vmem [shape: f32[1,32], index: 4, kind: input, shape index: {}]   ;;  %s468_s5 = inlined_call_operand.vmem [shape: f32[18,32], index: 5, kind: output, shape index: {}]  }
   0x1   :  { %v38_v0 = vld [vmem:[%s463_s1 + $0x18] sm:$0xff]  ;;  %v37_v1 = vld [vmem:[%s463_s1 + $0x10] sm:$0xff]  ;;  %25 = vst.msk [vmem:[#allocation2] sm:$0xff] %vm24_vm0, %v345_v2  ;;  %v36_v3 = vld [vmem:[%s463_s1 + $0x8] sm:$0xff] }
   0x2   :  { %61 = vmatpush.msra.mxu0 %v38_v0  ;;  %312 = vmatpush.msra.mxu1 %v38_v0  ;;  %26 = vst.msk [vmem:[#allocation2 + $0x8] sm:$0xff] %vm24_vm0, %v345_v2  ;;  %v35_v4 = vld [vmem:[%s463_s1] sm:$0xff]  ;;  %v33_v6 = vld [vmem:[%s464_s0 + $0x8] sm:$0xff]  ;;  %v34_v7 = vld [vmem:[%s464_s0 + $0x10] sm:$0x3] }
   0x3   :  { %313 = vmatpush.msra.mxu2 %v38_v0  ;;  %v32_v5 = vld [vmem:[%s464_s0] sm:$0xff]  ;;  %28 = vst.msk [vmem:[#allocation2 + $0x10] sm:$0x3] %vm27_vm1, %v345_v2 }
   0x4   :  { %62 = vmatpush.msra.mxu0 %v37_v1  ;;  %314 = vmatpush.msra.mxu1 %v37_v1  ;;  %v322_v16 = vld [vmem:[%s465_s2] ss:$0 sm:$0xff] }
   0x5   :  { %315 = vmatpush.msra.mxu2 %v37_v1 }
   0x6   :  { %63 = vmatpush.msra.mxu0 %v36_v3  ;;  %316 = vmatpush.msra.mxu1 %v36_v3 }
   0x7   :  { %317 = vmatpush.msra.mxu2 %v36_v3 }
   0x8   :  { %64 = vmatpush.msra.mxu0 %v35_v4  ;;  %318 = vmatpush.msra.mxu1 %v35_v4  ;;  %v29_v8 = vld [vmem:[#allocation2] sm:$0xff] }
   0x9   :  { %319 = vmatpush.msra.mxu2 %v35_v4  ;;  %309 = vmatmul.msk.f32.vlgmr.msra.gmra.mxu0 %vm24_vm0, %v32_v5  ;;  %v30_v9 = vld [vmem:[#allocation2 + $0x8] sm:$0xff] }
   0xa   :  { %310 = vmatmul.msk.f32.vlgmr.msra.gmra.mxu1 %vm24_vm0, %v33_v6  ;;  %311 = vmatmul.msk.f32.vlgmr.msra.gmra.mxu2 %vm24_vm0, %v34_v7  ;;  %v31_v14 = vld [vmem:[#allocation2 + $0x10] sm:$0x3] }
  0x86   :  { %v66_v10 = vpop.f32.mrf.mxu0 }
  0x87   :  { %v75_v11 = vadd.f32 %v66_v10, %v29_v8  ;;  %v69_v12 = vpop.f32.mrf.mxu1 }
  0x88   :  { %v76_v13 = vadd.f32 %v69_v12, %v30_v9 }
  0x89   :  { %78 = vst.msk [vmem:[#allocation2] sm:$0xff] %vm24_vm0, %v75_v11 }
  0x8a   :  { %79 = vst.msk [vmem:[#allocation2 + $0x8] sm:$0xff] %vm24_vm0, %v76_v13 }
  0x8d   :  { %v72_v15 = vpop.f32.mrf.mxu2 }
  0x8e   :  { %v77_v17 = vadd.f32 %v72_v15, %v31_v14 }
  0x90   :  { %81 = vst.msk [vmem:[#allocation2 + $0x10] sm:$0x3] %vm27_vm1, %v77_v17  ;;  %v85_v18 = vld [vmem:[#allocation2] sm:$0xff] }
  0x91   :  { %v410_v19 = vadd.f32 %v322_v16, %v85_v18  ;;  %v86_v20 = vld [vmem:[#allocation2 + $0x8] sm:$0xff] }
  0x92   :  { %v412_v21 = vadd.f32 %v322_v16, %v86_v20 }
  0x93   :  { %v415_v22 = vmul.f32 0.70710677, %v410_v19 }
  0x94   :  { %v418_v23 = vmul.f32 0.70710677, %v412_v21 }
  0x95   :  { %v98_v24 = vand.u32 2147483647, %v415_v22  ;;  %vm197_vm14 = vcmp.ge.f32.partialorder %v415_v22, 0.0 }
  0x96   :  { %v99_v25 = vand.u32 2147483647, %v418_v23  ;;  %vm198_vm15 = vcmp.ge.f32.partialorder %v418_v23, 0.0 }
  0x97   :  { %v101_v26 = vmul.f32 0.3275911, %v98_v24  ;;  %v87_v27 = vld [vmem:[#allocation2 + $0x10] sm:$0x3]  ;;  %v179_v51 = vsub.f32 0.0, %v98_v24 }
  0x98   :  { %v422_v28 = vadd.f32 %v322_v16, %v87_v27  ;;  %v102_v29 = vmul.f32 0.3275911, %v99_v25  ;;  %v180_v56 = vsub.f32 0.0, %v99_v25 }
  0x99   :  { %v104_v30 = vadd.f32 1.0, %v101_v26  ;;  %v182_v3 = vmul.f32 %v179_v51, %v98_v24 }
  0x9a   :  { %v425_v31 = vmul.f32 0.70710677, %v422_v28  ;;  %v105_v32 = vadd.f32 1.0, %v102_v29  ;;  %v183_v8 = vmul.f32 %v180_v56, %v99_v25 }
  0x9b   :  { %325 = vrcp.f32 %v104_v30  ;;  %v118_v41 = vand.u32 2147483648, %v104_v30  ;;  %v116_v44 = vand.u32 2147483647, %v104_v30  ;;  %vm112_vm5 = vweird.f32 %v104_v30 }
  0x9c   :  { %v428_v33 = vand.u32 2147483647, %v425_v31  ;;  %327 = vrcp.f32 %v105_v32  ;;  %v133_v45 = vand.u32 2147483648, %v105_v32  ;;  %vm127_vm3 = vweird.f32 %v105_v32 }
  0x9d   :  { %v131_v47 = vand.u32 2147483647, %v105_v32  ;;  %v119_v50 = vor.u32 1.1754944e-38, %v118_v41  ;;  %vm117_vm7 = vcmp.eq.f32.partialorder %v116_v44, 8.507059e+37  ;;  %v185_v14 = vmul.f32 1.442695, %v182_v3 }
  0x9e   :  { %v103_v34 = vmul.f32 0.3275911, %v428_v33  ;;  %v134_v55 = vor.u32 1.1754944e-38, %v133_v45  ;;  %v181_v13 = vsub.f32 0.0, %v428_v33  ;;  %v187_v18 = vmul.f32 1.442695, %v183_v8 }
  0x9f   :  { %vm132_vm9 = vcmp.eq.f32.partialorder %v131_v47, 8.507059e+37 }
  0xa0   :  { %v106_v35 = vadd.f32 1.0, %v103_v34  ;;  %v184_v27 = vmul.f32 %v181_v13, %v428_v33 }
  0xa1   :  { %v326_v36 = vpop.eup %325 }
  0xa2   :  { %v328_v37 = vpop.eup %327  ;;  %v108_v38 = vmul.f32 %v326_v36, %v104_v30  ;;  %329 = vrcp.f32 %v106_v35  ;;  %vm113_vm2 = vweird.f32 %v326_v36  ;;  %vm142_vm10 = vweird.f32 %v106_v35 }
  0xa3   :  { %v123_v39 = vmul.f32 %v328_v37, %v105_v32  ;;  %vm128_vm4 = vweird.f32 %v328_v37  ;;  %vm114_vm6 = vmor %vm112_vm5, %vm113_vm2  ;;  %v148_v61 = vand.u32 2147483648, %v106_v35  ;;  %v146_v0 = vand.u32 2147483647, %v106_v35 }
  0xa4   :  { %v109_v40 = vsub.f32 1.0, %v108_v38  ;;  %vm129_vm8 = vmor %vm127_vm3, %vm128_vm4  ;;  %331 = vpow2.f32 %v185_v14  ;;  %vm199_vm2 = vcmp.ge.f32.partialorder %v425_v31, 0.0 }
  0xa5   :  { %v124_v42 = vsub.f32 1.0, %v123_v39  ;;  %v149_v7 = vor.u32 1.1754944e-38, %v148_v61  ;;  %vm147_vm13 = vcmp.eq.f32.partialorder %v146_v0, 8.507059e+37  ;;  %333 = vpow2.f32 %v187_v18 }
  0xa6   :  { %v110_v43 = vmul.f32 %v326_v36, %v109_v40  ;;  %v208_v0 = vmul.f32 0.5, %v422_v28 }
  0xa7   :  { %v125_v46 = vmul.f32 %v328_v37, %v124_v42 }
  0xa8   :  { %v330_v48 = vpop.eup %329  ;;  %v111_v49 = vadd.f32 %v326_v36, %v110_v43 }
  0xa9   :  { %v138_v52 = vmul.f32 %v330_v48, %v106_v35  ;;  %v126_v53 = vadd.f32 %v328_v37, %v125_v46  ;;  %vm143_vm11 = vweird.f32 %v330_v48 }
  0xaa   :  { %v115_v54 = vsel %vm114_vm6, %v326_v36, %v111_v49  ;;  %vm144_vm12 = vmor %vm142_vm10, %vm143_vm11  ;;  %v189_v36 = vmul.f32 1.442695, %v184_v27  ;;  %v332_v40 = vpop.eup %331 }
  0xab   :  { %v120_v57 = vsel %vm117_vm7, %v119_v50, %v115_v54  ;;  %v139_v58 = vsub.f32 1.0, %v138_v52  ;;  %v130_v59 = vsel %vm129_vm8, %v328_v37, %v126_v53  ;;  %v334_v43 = vpop.eup %333  ;;  %v206_v54 = vmul.f32 0.5, %v410_v19 }
  0xac   :  { %v152_v60 = vmul.f32 1.0614054, %v120_v57  ;;  %v135_v62 = vsel %vm132_vm9, %v134_v55, %v130_v59  ;;  %335 = vpow2.f32 %v189_v36 }
  0xad   :  { %v140_v63 = vmul.f32 %v330_v48, %v139_v58  ;;  %v153_v1 = vmul.f32 1.0614054, %v135_v62 }
  0xae   :  { %v155_v2 = vadd.f32 -1.4531521, %v152_v60 }
  0xaf   :  { %v141_v4 = vadd.f32 %v330_v48, %v140_v63  ;;  %v156_v5 = vadd.f32 -1.4531521, %v153_v1  ;;  %v207_v63 = vmul.f32 0.5, %v412_v21 }
  0xb0   :  { %v158_v6 = vmul.f32 %v155_v2, %v120_v57 }
  0xb1   :  { %v145_v9 = vsel %vm144_vm12, %v330_v48, %v141_v4  ;;  %v159_v10 = vmul.f32 %v156_v5, %v135_v62  ;;  %v346_v4 = vmov 32.0  }
  0xb2   :  { %v161_v11 = vadd.f32 1.4214138, %v158_v6  ;;  %v150_v12 = vsel %vm147_vm13, %v149_v7, %v145_v9  ;;  %v336_v52 = vpop.eup %335  ;;  %337 = vrcp.f32 %v346_v4 }
  0xb3   :  { %v154_v15 = vmul.f32 1.0614054, %v150_v12  ;;  %v162_v16 = vadd.f32 1.4214138, %v159_v10 }
  0xb4   :  { %v164_v17 = vmul.f32 %v161_v11, %v120_v57 }
  0xb5   :  { %v157_v20 = vadd.f32 -1.4531521, %v154_v15  ;;  %v165_v24 = vmul.f32 %v162_v16, %v135_v62 }
  0xb6   :  { %v167_v26 = vadd.f32 -0.28449672, %v164_v17 }
  0xb7   :  { %v160_v29 = vmul.f32 %v157_v20, %v150_v12  ;;  %v168_v25 = vadd.f32 -0.28449672, %v165_v24 }
  0xb8   :  { %v170_v30 = vmul.f32 %v167_v26, %v120_v57  ;;  %v338_v5 = vpop.eup %337 }
  0xb9   :  { %v163_v32 = vadd.f32 1.4214138, %v160_v29  ;;  %v171_v34 = vmul.f32 %v168_v25, %v135_v62  ;;  %v227_v6 = vmul.f32 32.0, %v338_v5  ;;  %vm231_vm3 = vweird.f32 %v338_v5 }
  0xba   :  { %v173_v35 = vadd.f32 0.2548296, %v170_v30 }
  0xbb   :  { %v166_v37 = vmul.f32 %v163_v32, %v150_v12  ;;  %v174_v38 = vadd.f32 0.2548296, %v171_v34  ;;  %v228_v7 = vsub.f32 1.0, %v227_v6 }
  0xbc   :  { %v176_v39 = vmul.f32 %v173_v35, %v120_v57 }
  0xbd   :  { %v169_v41 = vadd.f32 -0.28449672, %v166_v37  ;;  %v177_v42 = vmul.f32 %v174_v38, %v135_v62  ;;  %v229_v31 = vmul.f32 %v338_v5, %v228_v7 }
  0xbe   :  { %v191_v44 = vmul.f32 %v332_v40, %v176_v39 }
  0xbf   :  { %v172_v45 = vmul.f32 %v169_v41, %v150_v12  ;;  %v192_v33 = vmul.f32 %v334_v43, %v177_v42  ;;  %v230_v8 = vadd.f32 %v338_v5, %v229_v31 }
  0xc0   :  { %v194_v46 = vsub.f32 1.0, %v191_v44 }
  0xc1   :  { %v175_v47 = vadd.f32 0.2548296, %v172_v45  ;;  %v195_v48 = vsub.f32 1.0, %v192_v33  ;;  %v232_v21 = vsel %vm231_vm3, %v338_v5, %v230_v8 }
  0xc2   :  { %v200_v49 = vsub.f32 0.0, %v194_v46 }
  0xc3   :  { %v178_v50 = vmul.f32 %v175_v47, %v150_v12  ;;  %v201_v51 = vsub.f32 0.0, %v195_v48 }
  0xc4   :  { %v203_v53 = vsel %vm197_vm14, %v194_v46, %v200_v49  ;;  %v323_v46 = vld [vmem:[%s466_s3] ss:$0 sm:$0xff] }
  0xc5   :  { %v209_v55 = vadd.f32 1.0, %v203_v53  ;;  %v193_v56 = vmul.f32 %v336_v52, %v178_v50  ;;  %v204_v57 = vsel %vm198_vm15, %v195_v48, %v201_v51  ;;  %v324_v49 = vld [vmem:[%s467_s4] ss:$0 sm:$0xff] }
  0xc6   :  { %v210_v62 = vadd.f32 1.0, %v204_v57 }
  0xc7   :  { %v212_v58 = vmul.f32 %v209_v55, %v206_v54  ;;  %v196_v59 = vsub.f32 1.0, %v193_v56 }
  0xc8   :  { %v213_v1 = vmul.f32 %v210_v62, %v207_v63 }
  0xc9   :  { %v217_v60 = vsel %vm24_vm0, %v212_v58, 0.0  ;;  %v202_v61 = vsub.f32 0.0, %v196_v59 }
  0xca   :  { %218 = vadd.xlane.f32.xlu0 %v217_v60  ;;  %v220_v3 = vsel %vm24_vm0, %v213_v1, 0.0 }
  0xcb   :  { %v205_v22 = vsel %vm199_vm2, %v196_v59, %v202_v61 }
  0xcc   :  { %v211_v19 = vadd.f32 1.0, %v205_v22 }
  0xce   :  { %v214_v2 = vmul.f32 %v211_v19, %v208_v0 }
  0xd0   :  { %v223_v23 = vsel %vm27_vm1, %v214_v2, 0.0 }
  0xd1   :  { %224 = vadd.xlane.f32.xlu1 %v223_v23 }
  0xd2   :  { %221 = vadd.xlane.f32.xlu0 %v220_v3 }
 0x13d   :  { %v219_v9 = vpop.xlane.xlu0 %218 }
 0x13e   :  { %v233_v28 = vmul.f32 %v232_v21, %v219_v9 }
 0x140   :  { %v236_v10 = vsub.f32 %v212_v58, %v233_v28 }
 0x142   :  { %v239_v11 = vmul.f32 %v236_v10, %v236_v10 }
 0x144   :  { %v242_v12 = vsel %vm24_vm0, %v239_v11, 0.0  ;;  %v225_v13 = vpop.xlane.xlu1 %224 }
 0x145   :  { %243 = vadd.xlane.f32.xlu1 %v242_v12  ;;  %v222_v14 = vpop.xlane.xlu0 %221  ;;  %v235_v16 = vmul.f32 %v232_v21, %v225_v13 }
 0x146   :  { %v234_v15 = vmul.f32 %v232_v21, %v222_v14 }
 0x147   :  { %v238_v20 = vsub.f32 %v214_v2, %v235_v16 }
 0x148   :  { %v237_v17 = vsub.f32 %v213_v1, %v234_v15 }
 0x149   :  { %v241_v26 = vmul.f32 %v238_v20, %v238_v20 }
 0x14a   :  { %v240_v18 = vmul.f32 %v237_v17, %v237_v17 }
 0x14b   :  { %v248_v27 = vsel %vm27_vm1, %v241_v26, 0.0 }
 0x14c   :  { %v245_v24 = vsel %vm24_vm0, %v240_v18, 0.0 }
 0x14d   :  { %246 = vadd.xlane.f32.xlu2 %v245_v24 }
 0x155   :  { %249 = vadd.xlane.f32.xlu2 %v248_v27 }
 0x1b8   :  { %v244_v29 = vpop.xlane.xlu1 %243 }
 0x1b9   :  { %v251_v25 = vmul.f32 %v244_v29, %v232_v21 }
 0x1bb   :  { %v254_v30 = vadd.f32 1e-12, %v251_v25 }
 0x1bd   :  { %339 = vrsqrt.f32 %v254_v30  ;;  %vm263_vm5 = vweird.f32 %v254_v30 }
 0x1c0   :  { %v247_v32 = vpop.xlane.xlu2 %246 }
 0x1c1   :  { %v252_v34 = vmul.f32 %v247_v32, %v232_v21 }
 0x1c3   :  { %v340_v35 = vpop.eup %339  ;;  %v255_v36 = vadd.f32 1e-12, %v252_v34 }
 0x1c4   :  { %v258_v37 = vmul.f32 %v340_v35, %v254_v30  ;;  %vm264_vm4 = vweird.f32 %v340_v35 }
 0x1c5   :  { %341 = vrsqrt.f32 %v255_v36  ;;  %vm265_vm6 = vmor %vm263_vm5, %vm264_vm4  ;;  %vm273_vm8 = vweird.f32 %v255_v36 }
 0x1c6   :  { %v259_v38 = vmul.f32 %v340_v35, %v258_v37 }
 0x1c8   :  { %v260_v39 = vmul.f32 0.5, %v259_v38  ;;  %v250_v40 = vpop.xlane.xlu2 %249 }
 0x1c9   :  { %v253_v41 = vmul.f32 %v250_v40, %v232_v21 }
 0x1ca   :  { %v261_v42 = vsub.f32 1.5, %v260_v39 }
 0x1cb   :  { %v342_v43 = vpop.eup %341  ;;  %v256_v44 = vadd.f32 1e-12, %v253_v41 }
 0x1cc   :  { %v262_v45 = vmul.f32 %v340_v35, %v261_v42  ;;  %v268_v33 = vmul.f32 %v342_v43, %v255_v36  ;;  %vm274_vm7 = vweird.f32 %v342_v43 }
 0x1cd   :  { %343 = vrsqrt.f32 %v256_v44  ;;  %vm275_vm9 = vmor %vm273_vm8, %vm274_vm7  ;;  %vm283_vm11 = vweird.f32 %v256_v44 }
 0x1ce   :  { %v266_v47 = vsel %vm265_vm6, %v340_v35, %v262_v45  ;;  %v269_v48 = vmul.f32 %v342_v43, %v268_v33 }
 0x1cf   :  { %v287_v50 = vmul.f32 %v266_v47, %v236_v10 }
 0x1d0   :  { %v270_v51 = vmul.f32 0.5, %v269_v48 }
 0x1d1   :  { %v293_v52 = vmul.f32 %v323_v46, %v287_v50 }
 0x1d2   :  { %v271_v53 = vsub.f32 1.5, %v270_v51 }
 0x1d3   :  { %v344_v54 = vpop.eup %343  ;;  %v299_v55 = vadd.f32 %v324_v49, %v293_v52 }
 0x1d4   :  { %v272_v56 = vmul.f32 %v342_v43, %v271_v53  ;;  %v278_v57 = vmul.f32 %v344_v54, %v256_v44  ;;  %vm284_vm10 = vweird.f32 %v344_v54 }
 0x1d5   :  { %302 = vst.msk [vmem:[%s468_s5] sm:$0xff] %vm24_vm0, %v299_v55  ;;  %vm285_vm12 = vmor %vm283_vm11, %vm284_vm10 }
 0x1d6   :  { %v276_v58 = vsel %vm275_vm9, %v342_v43, %v272_v56  ;;  %v279_v59 = vmul.f32 %v344_v54, %v278_v57 }
 0x1d7   :  { %v288_v60 = vmul.f32 %v276_v58, %v237_v17 }
 0x1d8   :  { %v280_v61 = vmul.f32 0.5, %v279_v59 }
 0x1d9   :  { %v294_v62 = vmul.f32 %v323_v46, %v288_v60 }
 0x1da   :  { %v281_v22 = vsub.f32 1.5, %v280_v61 }
 0x1db   :  { %v300_v63 = vadd.f32 %v324_v49, %v294_v62 }
 0x1dc   :  { %v282_v0 = vmul.f32 %v344_v54, %v281_v22 }
 0x1dd   :  { %303 = vst.msk [vmem:[%s468_s5 + $0x8] sm:$0xff] %vm24_vm0, %v300_v63 }
 0x1de   :  { %v286_v19 = vsel %vm285_vm12, %v344_v54, %v282_v0 }
 0x1df   :  { %v289_v1 = vmul.f32 %v286_v19, %v238_v20 }
 0x1e1   :  { %v295_v2 = vmul.f32 %v323_v46, %v289_v1 }
 0x1e3   :  { %v301_v23 = vadd.f32 %v324_v49, %v295_v2 }
 0x1e5   :  { %304 = vst.msk [vmem:[%s468_s5 + $0x10] sm:$0x3] %vm27_vm1, %v301_v23 }

// kernel: decoder_forward.41
= control target key start
LH: loop header
LB: loop body
LE: loop exit
PB: predicated region body
PF: predicated region fallthrough
CT: control target
= control target key end

     0   :  { %vm18_vm0 = vcmask 523264   ;;  %v110_v2 = vmov 0.0   ;;  %vm33_vm1 = vcmask 261120   ;;  %vm21_vm2 = vcmask 517120   ;;  %s173_s1 = inlined_call_operand.vmem [shape: f32[32,64], index: 1, kind: input, shape index: {}]   ;;  %s174_s0 = inlined_call_operand.vmem [shape: f32[18,32], index: 0, kind: input, shape index: {}]   ;;  %s175_s2 = inlined_call_operand.vmem [shape: f32[1,64], index: 2, kind: input, shape index: {}]   ;;  %s176_s3 = inlined_call_operand.vmem [shape: f32[18,64], index: 3, kind: output, shape index: {}]  }
   0x1   :  { %v32_v0 = vld [vmem:[%s173_s1 + $0x18] sm:$0xff]  ;;  %v31_v1 = vld [vmem:[%s173_s1 + $0x10] sm:$0xff]  ;;  %19 = vst.msk [vmem:[#allocation2] sm:$0xff] %vm18_vm0, %v110_v2  ;;  %v30_v3 = vld [vmem:[%s173_s1 + $0x8] sm:$0xff] }
   0x2   :  { %101 = vmatpush.msra.mxu2 %v32_v0  ;;  %55 = vmatpush.msra.mxu0 %v32_v0  ;;  %20 = vst.msk [vmem:[#allocation2 + $0x8] sm:$0xff] %vm18_vm0, %v110_v2  ;;  %v29_v4 = vld [vmem:[%s173_s1] sm:$0xff]  ;;  %v28_v5 = vld [vmem:[%s174_s0 + $0x10] sm:$0x3]  ;;  %v27_v7 = vld [vmem:[%s174_s0 + $0x8] sm:$0xff] }
   0x3   :  { %100 = vmatpush.msra.mxu1 %v32_v0  ;;  %v26_v6 = vld [vmem:[%s174_s0] sm:$0xff]  ;;  %22 = vst.msk [vmem:[#allocation2 + $0x10] sm:$0x3] %vm21_vm2, %v110_v2 }
   0x4   :  { %103 = vmatpush.msra.mxu2 %v31_v1  ;;  %56 = vmatpush.msra.mxu0 %v31_v1  ;;  %v109_v17 = vld [vmem:[%s175_s2] ss:$0 sm:$0xff] }
   0x5   :  { %102 = vmatpush.msra.mxu1 %v31_v1 }
   0x6   :  { %105 = vmatpush.msra.mxu2 %v30_v3  ;;  %57 = vmatpush.msra.mxu0 %v30_v3 }
   0x7   :  { %104 = vmatpush.msra.mxu1 %v30_v3 }
   0x8   :  { %107 = vmatpush.msra.mxu2 %v29_v4  ;;  %58 = vmatpush.msra.mxu0 %v29_v4  ;;  %v23_v8 = vld [vmem:[#allocation2] sm:$0xff] }
   0x9   :  { %99 = vmatmul.msk.f32.vlgmr.msra.gmra.mxu2 %vm33_vm1, %v28_v5  ;;  %106 = vmatpush.msra.mxu1 %v29_v4  ;;  %v24_v9 = vld [vmem:[#allocation2 + $0x8] sm:$0xff] }
   0xa   :  { %97 = vmatmul.msk.f32.vlgmr.msra.gmra.mxu0 %vm33_vm1, %v26_v6  ;;  %98 = vmatmul.msk.f32.vlgmr.msra.gmra.mxu1 %vm33_vm1, %v27_v7  ;;  %v25_v14 = vld [vmem:[#allocation2 + $0x10] sm:$0x3] }
  0x87   :  { %v60_v10 = vpop.f32.mrf.mxu0  ;;  %v63_v11 = vpop.f32.mrf.mxu1 }
  0x88   :  { %v69_v12 = vadd.f32 %v60_v10, %v23_v8  ;;  %v70_v13 = vadd.f32 %v63_v11, %v24_v9 }
  0x8a   :  { %73 = vst.msk [vmem:[#allocation2] sm:$0xff] %vm18_vm0, %v69_v12 }
  0x8b   :  { %74 = vst.msk [vmem:[#allocation2 + $0x8] sm:$0xff] %vm18_vm0, %v70_v13 }
  0x8c   :  { %v66_v15 = vpop.f32.mrf.mxu2 }
  0x8d   :  { %v71_v16 = vadd.f32 %v66_v15, %v25_v14 }
  0x8f   :  { %76 = vst.msk [vmem:[#allocation2 + $0x10] sm:$0x3] %vm21_vm2, %v71_v16 }
  0x91   :  { %v80_v18 = vld [vmem:[#allocation2] sm:$0xff] }
  0x92   :  { %v81_v19 = vld [vmem:[#allocation2 + $0x8] sm:$0xff]  ;;  %v87_v20 = vadd.f32 %v109_v17, %v80_v18 }
  0x93   :  { %v88_v21 = vadd.f32 %v109_v17, %v81_v19 }
  0x94   :  { %90 = vst.msk [vmem:[%s176_s3] sm:$0xff] %vm18_vm0, %v87_v20 }
  0x95   :  { %91 = vst.msk [vmem:[%s176_s3 + $0x8] sm:$0xff] %vm18_vm0, %v88_v21 }
  0x96   :  { %v82_v22 = vld [vmem:[#allocation2 + $0x10] sm:$0x3] }
  0x97   :  { %v89_v23 = vadd.f32 %v109_v17, %v82_v22 }
  0x99   :  { %92 = vst.msk [vmem:[%s176_s3 + $0x10] sm:$0x3] %vm21_vm2, %v89_v23 }

</bundles_post_ra>
